<compile_context>
chip_gen: v7x
topology: tpu7x:2x2x1
jax: 0.10.0
libtpu: 0.0.40
codegen_flags: <defaults>
</compile_context>

<pallas_src>
import math
from functools import partial

import numpy as np
import jax
import jax.numpy as jnp
from jax.experimental import pallas as pl
from jax.experimental.pallas import tpu as pltpu

# ---- small synthetic shapes consistent with the module ----
BATCH = 2
IMG = 64
PATCH = 16
WIDTH = 32          # encoder.width (ViT-B/16 real value is 768)
TEXT_DIM = 16       # n_dims_text  (CLIP real value is 512)
N_QUERIES = 8
N_DEC_LAYERS = 2    # n_decoder_layers (module default 6; kept small)
N_HEADS = 4
MLP_HIDDEN = 256    # hardcoded hidden_dim=256 for ffn1 / ffn2 in ZUTIS.__init__
DEC_FFN = 64        # TransformerDecoderLayer dim_feedforward

H_PRE = IMG // PATCH            # 4
HW_PRE = H_PRE * H_PRE          # 16
H_FEAT = 2 * H_PRE              # 8  (after x2 bilinear upsample)
HW = H_FEAT * H_FEAT            # 64
PATCH_DIM = 3 * PATCH * PATCH   # 768
NQ_ALL = N_DEC_LAYERS * N_QUERIES


# ------------------------------------------------------------------ in-kernel helpers
def _layer_norm(x, g, b, eps=1e-5):
    mean = jnp.mean(x, axis=-1, keepdims=True)
    var = jnp.mean(jnp.square(x - mean), axis=-1, keepdims=True)
    return (x - mean) * jax.lax.rsqrt(var + eps) * g + b


def _mlp3(x, getp, pre):
    h = jnp.maximum(jnp.dot(x, getp(pre + '_w1'),
                            preferred_element_type=jnp.float32) + getp(pre + '_b1'), 0.0)
    h = jnp.maximum(jnp.dot(h, getp(pre + '_w2'),
                            preferred_element_type=jnp.float32) + getp(pre + '_b2'), 0.0)
    return jnp.dot(h, getp(pre + '_w3'),
                   preferred_element_type=jnp.float32) + getp(pre + '_b3')


def _mha(q_in, k_in, v_in, w_in, b_in, wo, bo, *, n_heads, shared_qk):
    """Multi-head attention on 2-D (tokens, d) operands, packed in-proj weight.

    Per-head contexts are laid side-by-side along lanes (d <= 128 so this is
    intra-vreg lane placement) and folded through a SINGLE output-projection
    matmul (one MXU push instead of n_heads pushes + f32 accumulates)."""
    d = q_in.shape[-1]
    hd = d // n_heads

    if shared_qk:               # self-attn: q and k share the input -> one fused matmul
        qk = jnp.dot(q_in, w_in[:, :2 * d],
                     preferred_element_type=jnp.float32) + b_in[:, :2 * d]
        q, k = qk[:, :d], qk[:, d:]
    else:
        q = jnp.dot(q_in, w_in[:, :d],
                    preferred_element_type=jnp.float32) + b_in[:, :d]
        k = jnp.dot(k_in, w_in[:, d:2 * d],
                    preferred_element_type=jnp.float32) + b_in[:, d:2 * d]
    v = jnp.dot(v_in, w_in[:, 2 * d:],
                preferred_element_type=jnp.float32) + b_in[:, 2 * d:]
    q = q * (1.0 / math.sqrt(hd))

    # TODO(synk): optionally batch the n_heads score/context matmuls into a single
    # block-diagonal-masked matmul (head-stacked sublanes) to remove the remaining
    # tiny K=hd MXU pushes; kept per-head here for lowering robustness.
    ctx = []
    for h in range(n_heads):
        sl = slice(h * hd, (h + 1) * hd)
        s = jax.lax.dot_general(q[:, sl], k[:, sl], (((1,), (1,)), ((), ())),
                                preferred_element_type=jnp.float32)   # (lq, lk)
        s = s - jnp.max(s, axis=-1, keepdims=True)
        e = jnp.exp(s)
        p_attn = e * pl.reciprocal(jnp.sum(e, axis=-1, keepdims=True), approx=True)
        ctx.append(jnp.dot(p_attn, v[:, sl], preferred_element_type=jnp.float32))
    ctx = jnp.concatenate(ctx, axis=-1)                               # (lq, d) lane placement
    return jnp.dot(ctx, wo, preferred_element_type=jnp.float32) + bo  # one out-proj push


def _decoder_layer(tgt, memory, mem_pos, query_pos, getp, pre, n_heads):
    # DETR TransformerDecoderLayer, post-norm, dropout=0.0
    qk_in = tgt + query_pos
    sa = _mha(qk_in, qk_in, tgt,
              getp(pre + 'sa_win'), getp(pre + 'sa_bin'),
              getp(pre + 'sa_wo'), getp(pre + 'sa_bo'),
              n_heads=n_heads, shared_qk=True)
    tgt = _layer_norm(tgt + sa, getp(pre + 'norm1_g'), getp(pre + 'norm1_b'))
    ca = _mha(tgt + query_pos, mem_pos, memory,
              getp(pre + 'ca_win'), getp(pre + 'ca_bin'),
              getp(pre + 'ca_wo'), getp(pre + 'ca_bo'),
              n_heads=n_heads, shared_qk=False)
    tgt = _layer_norm(tgt + ca, getp(pre + 'norm2_g'), getp(pre + 'norm2_b'))
    h = jnp.maximum(jnp.dot(tgt, getp(pre + 'lin1_w'),
                            preferred_element_type=jnp.float32) + getp(pre + 'lin1_b'), 0.0)
    h = jnp.dot(h, getp(pre + 'lin2_w'),
                preferred_element_type=jnp.float32) + getp(pre + 'lin2_b')
    tgt = _layer_norm(tgt + h, getp(pre + 'norm3_g'), getp(pre + 'norm3_b'))
    return tgt


def _lane_pack(x):
    """Pack (r, c) with c <= 128 and 128 % c == 0 into lane-dense (r*c//128, 128).

    Output row j, lanes [i*c:(i+1)*c] == x[i*(r*c//128) + j].  Pure lane placement
    (sub-vreg concat along the minor dim); inverted by _lane_unpack on the host."""
    r, c = x.shape
    k = 128 // c
    ro = (r * c) // 128
    return jnp.concatenate([x[i * ro:(i + 1) * ro, :] for i in range(k)], axis=1)


def _lane_unpack(y, c):
    """Host-side inverse of _lane_pack: (..., R, 128) -> (..., R*(128//c), c)."""
    k = 128 // c
    return jnp.concatenate([y[..., i * c:(i + 1) * c] for i in range(k)], axis=-2)


# ------------------------------------------------------------------ fused kernel
def _zutis_kernel(*refs, layout, n_slabs, n_heads):
    xp_ref, up_ref, pos_ref = refs[0:3]
    slab_refs = refs[3:3 + n_slabs]
    mask_ref, pt_ref = refs[3 + n_slabs:3 + n_slabs + 2]
    q_buf = refs[3 + n_slabs + 2]          # VMEM scratch (NQ_ALL, WIDTH)

    def getp(name):                        # static, 8-row-aligned slab slice
        sid, row, nrows = layout[name]
        return slab_refs[sid][row:row + nrows, :]

    xp = xp_ref[0]                 # (HW_PRE, 3*P*P)  — this batch element's patches
    up = up_ref[...]               # (HW, HW_PRE)     — bilinear x2 interpolation matrix
    pos = pos_ref[...]             # (HW, WIDTH)      — sine positional embedding

    # --- encoder: synthetic CLIP-ViT patch embedding ---
    # TODO(synk): pretrained CLIP ViT transformer blocks / class token omitted
    # (clip.load is external); encoder reduced to a patch-embedding projection.
    pt_pre = jnp.dot(xp, getp('patch_w'),
                     preferred_element_type=jnp.float32) + getp('patch_b')     # (HW_PRE, W)
    # x2 bilinear upsample of the token grid == one matmul with a Kron stencil matrix
    # TODO(synk): at real scale use two separable 1-D interpolation matmuls instead.
    patch_tokens = jnp.dot(up, pt_pre, preferred_element_type=jnp.float32)     # (HW, W)

    # --- ffn1 (stop_gradient is a no-op in the forward pass) ---
    memory = _mlp3(patch_tokens, getp, 'ffn1')                                 # (HW, W)

    # --- transformer decoder over learned queries (return_intermediate) ---
    query_pos = getp('query_embed')                                            # (NQ, W)
    mem_pos = memory + pos                                                     # hoisted out of the layer loop
    norm_g, norm_b = getp('dec_norm_g'), getp('dec_norm_b')
    tgt = jnp.zeros_like(query_pos)
    for l in range(N_DEC_LAYERS):
        tgt = _decoder_layer(tgt, memory, mem_pos, query_pos, getp, f'dec{l}_', n_heads)
        # write the normed intermediate straight into its row slot (no concat)
        q_buf[l * N_QUERIES:(l + 1) * N_QUERIES, :] = _layer_norm(tgt, norm_g, norm_b)
    queries = q_buf[...]                                                       # (NQ_ALL, W)

    # --- ffn2 + L2 normalize (tiny eps only to avoid 0/0; reference has none) ---
    q2 = _mlp3(queries, getp, 'ffn2')
    q2 = q2 * jax.lax.rsqrt(jnp.sum(q2 * q2, axis=-1, keepdims=True) + 1e-24)

    # --- mask proposals: sigmoid(q2 . decoder_input^T), exact sigmoid for outputs ---
    s = jax.lax.dot_general(q2, memory, (((1,), (1,)), ((), ())),
                            preferred_element_type=jnp.float32)                # (NQ_ALL, HW)
    mask_ref[0] = _lane_pack(1.0 / (1.0 + jnp.exp(-s)))                        # (8,128) unmasked vst

    # --- image-to-text projection + layer_norm over (h,w,c) + L2 normalize over c ---
    t = jnp.dot(patch_tokens, getp('proj'),
                preferred_element_type=jnp.float32)                            # (HW, TEXT)
    denom = float(t.shape[0] * t.shape[1])
    mean = jnp.sum(jnp.sum(t, axis=1, keepdims=True), axis=0, keepdims=True) / denom
    dcen = t - mean
    var = jnp.sum(jnp.sum(dcen * dcen, axis=1, keepdims=True), axis=0, keepdims=True) / denom
    t = dcen * jax.lax.rsqrt(var + 1e-5)
    # reference divides by (norm + 1e-7); single exact rsqrt with tiny eps instead
    t = t * jax.lax.rsqrt(jnp.sum(t * t, axis=-1, keepdims=True) + 1e-12)
    pt_ref[0] = _lane_pack(t)                                                  # (8,128) unmasked vst


# ------------------------------------------------------------------ host-side constants
def _bilinear_up2_matrix(n):
    # 1-D bilinear x2 interpolation operator (align_corners=False), shape (2n, n)
    m = np.zeros((2 * n, n), np.float32)
    for j in range(2 * n):
        src = min(max((j + 0.5) / 2.0 - 0.5, 0.0), n - 1.0)
        lo = int(math.floor(src))
        hi = min(lo + 1, n - 1)
        frac = src - lo
        m[j, lo] += 1.0 - frac
        m[j, hi] += frac
    return m


def _position_embedding_sine(h, w, num_pos_feats, temperature=10000.0):
    # DETR PositionEmbeddingSine(normalize=True), batch-independent, channel-last (hw, 2*npf)
    eps = 1e-6
    scale = 2.0 * math.pi
    y_embed = jnp.cumsum(jnp.ones((h, w), jnp.float32), axis=0)
    x_embed = jnp.cumsum(jnp.ones((h, w), jnp.float32), axis=1)
    y_embed = y_embed / (y_embed[-1:, :] + eps) * scale
    x_embed = x_embed / (x_embed[:, -1:] + eps) * scale
    dim_t = jnp.arange(num_pos_feats, dtype=jnp.float32)
    dim_t = temperature ** (2.0 * jnp.floor(dim_t / 2.0) / num_pos_feats)
    pos_x = x_embed[..., None] / dim_t
    pos_y = y_embed[..., None] / dim_t
    pos_x = jnp.stack([jnp.sin(pos_x[..., 0::2]), jnp.cos(pos_x[..., 1::2])],
                      axis=3).reshape(h, w, -1)
    pos_y = jnp.stack([jnp.sin(pos_y[..., 0::2]), jnp.cos(pos_y[..., 1::2])],
                      axis=3).reshape(h, w, -1)
    pos = jnp.concatenate([pos_y, pos_x], axis=2)           # (h, w, 2*npf)
    return pos.reshape(h * w, 2 * num_pos_feats)


def _pack_params(params):
    """Pack all 2-D params into one slab per lane width, each tensor 8-row aligned.

    Returns (slabs, layout) with layout[name] = (slab_index, row_offset, n_rows)."""
    widths = sorted({int(a.shape[-1]) for a in params.values()})
    slabs, layout = [], {}
    for sid, w_ in enumerate(widths):
        pieces, off = [], 0
        for name, arr in params.items():
            if int(arr.shape[-1]) != w_:
                continue
            r = int(arr.shape[0])
            r_pad = -(-r // 8) * 8
            pieces.append(arr)
            if r_pad != r:
                pieces.append(jnp.zeros((r_pad - r, w_), arr.dtype))
            layout[name] = (sid, off, r)
            off += r_pad
        slabs.append(jnp.concatenate(pieces, axis=0))
    return slabs, layout


# ------------------------------------------------------------------ ZUTIS forward
def zutis_forward(params, x):
    """x: (b, 3, H, W) float32 (NCHW). Returns dict(mask_proposals, patch_tokens)."""
    b, c_in, H, W = x.shape
    h_pre, w_pre = H // PATCH, W // PATCH
    hw_pre = h_pre * w_pre
    h_feat, w_feat = 2 * h_pre, 2 * w_pre
    hw = h_feat * w_feat
    nq_all = N_DEC_LAYERS * N_QUERIES

    # NCHW -> (b, hw_pre, 3*P*P) patch im2col.
    # TODO(synk): at real (WIDTH=768) scale fold this transpose into the kernel's
    # BlockSpec/index_map instead of materializing a copy in HBM.
    xp = x.reshape(b, c_in, h_pre, PATCH, w_pre, PATCH)
    xp = xp.transpose(0, 2, 4, 1, 3, 5).reshape(b, hw_pre, c_in * PATCH * PATCH)

    up = jnp.asarray(np.kron(_bilinear_up2_matrix(h_pre), _bilinear_up2_matrix(w_pre)))
    pos = _position_embedding_sine(h_feat, w_feat, WIDTH // 2)          # (hw, WIDTH)

    slabs, layout = _pack_params(params)

    # lane-dense packed outputs: (rows, 128) per batch element
    assert 128 % hw == 0 and (nq_all * hw) % 128 == 0
    assert 128 % TEXT_DIM == 0 and (hw * TEXT_DIM) % 128 == 0
    mask_rows = (nq_all * hw) // 128
    pt_rows = (hw * TEXT_DIM) // 128

    def invariant(shape):       # grid-invariant input: full block, single-buffered
        return pl.BlockSpec(tuple(shape), lambda i, _nd=len(shape): (0,) * _nd,
                            pipeline_mode=pl.Buffered(1))

    in_specs = ([pl.BlockSpec((1, hw_pre, xp.shape[-1]), lambda i: (i, 0, 0)),
                 invariant(up.shape), invariant(pos.shape)]
                + [invariant(s.shape) for s in slabs])
    out_specs = (pl.BlockSpec((1, mask_rows, 128), lambda i: (i, 0, 0)),
                 pl.BlockSpec((1, pt_rows, 128), lambda i: (i, 0, 0)))
    out_shape = (jax.ShapeDtypeStruct((b, mask_rows, 128), jnp.float32),
                 jax.ShapeDtypeStruct((b, pt_rows, 128), jnp.float32))

    # TODO(synk): at real WIDTH=768 stream decoder layers over an extra grid axis
    # with bf16 weight slabs (cast at dot inputs, f32 accumulation) so the weights
    # fit v7x's 64 MiB VMEM instead of keeping everything resident.
    kernel = partial(_zutis_kernel, layout=layout, n_slabs=len(slabs), n_heads=N_HEADS)
    masks_packed, pt_packed = pl.pallas_call(
        kernel,
        grid=(b,),
        in_specs=in_specs,
        out_specs=out_specs,
        out_shape=out_shape,
        scratch_shapes=[pltpu.VMEM((nq_all, WIDTH), jnp.float32)],
        compiler_params=pltpu.CompilerParams(
            dimension_semantics=("parallel",)),   # v7x: shard batch over both TCs
    )(xp, up, pos, *slabs)

    masks = _lane_unpack(masks_packed, hw)        # (b, nq_all, hw)
    pt = _lane_unpack(pt_packed, TEXT_DIM)        # (b, hw, TEXT_DIM)
    mask_proposals = masks.reshape(b, N_DEC_LAYERS, N_QUERIES, h_feat, w_feat)
    patch_tokens = pt.reshape(b, h_feat, w_feat, TEXT_DIM)
    return {'mask_proposals': mask_proposals, 'patch_tokens': patch_tokens}


# ------------------------------------------------------------------ params (flat dict)
def init_params(key):
    keys = iter(jax.random.split(key, 96))

    def w(shape, scale=0.02):
        return scale * jax.random.normal(next(keys), shape, jnp.float32)

    ones = lambda d: jnp.ones((1, d), jnp.float32)
    zeros = lambda d: jnp.zeros((1, d), jnp.float32)

    p = {
        'patch_w': w((PATCH_DIM, WIDTH)), 'patch_b': w((1, WIDTH)),
        'proj': w((WIDTH, TEXT_DIM)),
        'query_embed': w((N_QUERIES, WIDTH)),
    }
    for name in ('ffn1', 'ffn2'):
        p[name + '_w1'] = w((WIDTH, MLP_HIDDEN)); p[name + '_b1'] = w((1, MLP_HIDDEN))
        p[name + '_w2'] = w((MLP_HIDDEN, MLP_HIDDEN)); p[name + '_b2'] = w((1, MLP_HIDDEN))
        p[name + '_w3'] = w((MLP_HIDDEN, WIDTH)); p[name + '_b3'] = w((1, WIDTH))
    for l in range(N_DEC_LAYERS):
        pre = f'dec{l}_'
        for attn in ('sa', 'ca'):
            # packed like torch's in_proj_weight: columns = [q | k | v]
            p[pre + attn + '_win'] = w((WIDTH, 3 * WIDTH))
            p[pre + attn + '_bin'] = w((1, 3 * WIDTH))
            p[pre + attn + '_wo'] = w((WIDTH, WIDTH))
            p[pre + attn + '_bo'] = w((1, WIDTH))
        p[pre + 'lin1_w'] = w((WIDTH, DEC_FFN)); p[pre + 'lin1_b'] = w((1, DEC_FFN))
        p[pre + 'lin2_w'] = w((DEC_FFN, WIDTH)); p[pre + 'lin2_b'] = w((1, WIDTH))
        for n in ('norm1', 'norm2', 'norm3'):
            p[pre + n + '_g'] = ones(WIDTH); p[pre + n + '_b'] = zeros(WIDTH)
    p['dec_norm_g'] = ones(WIDTH); p['dec_norm_b'] = zeros(WIDTH)
    return p


if __name__ == "__main__":
    key = jax.random.PRNGKey(0)
    pkey, xkey = jax.random.split(key)
    params = init_params(pkey)
    x = jax.random.normal(xkey, (BATCH, 3, IMG, IMG), jnp.float32)

    out = jax.jit(zutis_forward)(params, x)
    jax.block_until_ready(out)

    hf = (IMG // PATCH) * 2
    assert out['mask_proposals'].shape == (BATCH, N_DEC_LAYERS, N_QUERIES, hf, hf)
    assert out['patch_tokens'].shape == (BATCH, hf, hf, TEXT_DIM)
    mp = out['mask_proposals']
    assert bool(jnp.all(jnp.isfinite(mp)))
    assert bool(jnp.all((mp >= 0.0) & (mp <= 1.0)))      # exact sigmoid output range
    assert bool(jnp.all(jnp.isfinite(out['patch_tokens'])))
    print("KERNEL_OK")
</pallas_src>

<mosaic_0001>
module attributes {stable_mosaic.version = 11 : i64} {
  func.func @_zutis_kernel(%arg0: i32, %arg1: memref<1x16x768xf32, #tpu.memory_space<vmem>>, %arg2: memref<64x16xf32, #tpu.memory_space<vmem>>, %arg3: memref<64x32xf32, #tpu.memory_space<vmem>>, %arg4: memref<32x16xf32, #tpu.memory_space<vmem>>, %arg5: memref<1728x32xf32, #tpu.memory_space<vmem>>, %arg6: memref<80x64xf32, #tpu.memory_space<vmem>>, %arg7: memref<160x96xf32, #tpu.memory_space<vmem>>, %arg8: memref<608x256xf32, #tpu.memory_space<vmem>>, %arg9: memref<1x8x128xf32, #tpu.memory_space<vmem>>, %arg10: memref<1x8x128xf32, #tpu.memory_space<vmem>>, %arg11: memref<16x32xf32, #tpu.memory_space<vmem>>) attributes {dimension_semantics = [#tpu.dimension_semantics<parallel>], iteration_bounds = array<i64: 2>, scalar_prefetch = 0 : i64, scratch_operands = 1 : i64, tpu.core_type = #tpu.core_type<tc>, window_params = [{transform_indices = @transform_0, window_bounds = array<i64: 1, 16, 768>}, {pipeline_mode = #tpu.pipeline_mode<synchronous>, transform_indices = @transform_1, window_bounds = array<i64: 64, 16>}, {pipeline_mode = #tpu.pipeline_mode<synchronous>, transform_indices = @transform_2, window_bounds = array<i64: 64, 32>}, {pipeline_mode = #tpu.pipeline_mode<synchronous>, transform_indices = @transform_3, window_bounds = array<i64: 32, 16>}, {pipeline_mode = #tpu.pipeline_mode<synchronous>, transform_indices = @transform_4, window_bounds = array<i64: 1728, 32>}, {pipeline_mode = #tpu.pipeline_mode<synchronous>, transform_indices = @transform_5, window_bounds = array<i64: 80, 64>}, {pipeline_mode = #tpu.pipeline_mode<synchronous>, transform_indices = @transform_6, window_bounds = array<i64: 160, 96>}, {pipeline_mode = #tpu.pipeline_mode<synchronous>, transform_indices = @transform_7, window_bounds = array<i64: 608, 256>}, {transform_indices = @transform_8, window_bounds = array<i64: 1, 8, 128>}, {transform_indices = @transform_9, window_bounds = array<i64: 1, 8, 128>}]} {
    %c0 = arith.constant 0 : index
    %c0_0 = arith.constant 0 : index
    %c0_1 = arith.constant 0 : index
    %0 = vector.load %arg1[%c0, %c0_0, %c0_1] : memref<1x16x768xf32, #tpu.memory_space<vmem>>, vector<1x16x768xf32>
    %1 = vector.shape_cast %0 : vector<1x16x768xf32> to vector<16x768xf32>
    %c0_2 = arith.constant 0 : index
    %c0_3 = arith.constant 0 : index
    %2 = vector.load %arg2[%c0_2, %c0_3] : memref<64x16xf32, #tpu.memory_space<vmem>>, vector<64x16xf32>
    %c0_4 = arith.constant 0 : index
    %c0_5 = arith.constant 0 : index
    %3 = vector.load %arg3[%c0_4, %c0_5] : memref<64x32xf32, #tpu.memory_space<vmem>>, vector<64x32xf32>
    %c952 = arith.constant 952 : index
    %c0_6 = arith.constant 0 : index
    %4 = vector.load %arg5[%c952, %c0_6] : memref<1728x32xf32, #tpu.memory_space<vmem>>, vector<768x32xf32>
    %cst = arith.constant dense<0.000000e+00> : vector<16x32xf32>
    %5 = tpu.matmul %1, %4, %cst {dimension_numbers = #tpu.dot_dimension_numbers<[1], [0], [0], [1], [0, 0, 1, 1], [], []>} : vector<16x768xf32>, vector<768x32xf32>, vector<16x32xf32> -> vector<16x32xf32>
    %c944 = arith.constant 944 : index
    %c0_7 = arith.constant 0 : index
    %6 = vector.load %arg5[%c944, %c0_7] : memref<1728x32xf32, #tpu.memory_space<vmem>>, vector<1x32xf32>
    %7 = vector.broadcast %6 : vector<1x32xf32> to vector<16x32xf32>
    %8 = arith.addf %5, %7 : vector<16x32xf32>
    %cst_8 = arith.constant dense<0.000000e+00> : vector<64x32xf32>
    %9 = tpu.matmul %2, %8, %cst_8 {dimension_numbers = #tpu.dot_dimension_numbers<[1], [0], [0], [1], [0, 0, 1, 1], [], []>} : vector<64x16xf32>, vector<16x32xf32>, vector<64x32xf32> -> vector<64x32xf32>
    %c16 = arith.constant 16 : index
    %c0_9 = arith.constant 0 : index
    %10 = vector.load %arg8[%c16, %c0_9] : memref<608x256xf32, #tpu.memory_space<vmem>>, vector<32x256xf32>
    %cst_10 = arith.constant dense<0.000000e+00> : vector<64x256xf32>
    %11 = tpu.matmul %9, %10, %cst_10 {dimension_numbers = #tpu.dot_dimension_numbers<[1], [0], [0], [1], [0, 0, 1, 1], [], []>} : vector<64x32xf32>, vector<32x256xf32>, vector<64x256xf32> -> vector<64x256xf32>
    %c0_11 = arith.constant 0 : index
    %c0_12 = arith.constant 0 : index
    %12 = vector.load %arg8[%c0_11, %c0_12] : memref<608x256xf32, #tpu.memory_space<vmem>>, vector<1x256xf32>
    %13 = vector.broadcast %12 : vector<1x256xf32> to vector<64x256xf32>
    %14 = arith.addf %11, %13 : vector<64x256xf32>
    %cst_13 = arith.constant 0.000000e+00 : f32
    %15 = vector.broadcast %cst_13 : f32 to vector<64x256xf32>
    %16 = arith.maximumf %14, %15 : vector<64x256xf32>
    %c48 = arith.constant 48 : index
    %c0_14 = arith.constant 0 : index
    %17 = vector.load %arg8[%c48, %c0_14] : memref<608x256xf32, #tpu.memory_space<vmem>>, vector<256x256xf32>
    %cst_15 = arith.constant dense<0.000000e+00> : vector<64x256xf32>
    %18 = tpu.matmul %16, %17, %cst_15 {dimension_numbers = #tpu.dot_dimension_numbers<[1], [0], [0], [1], [0, 0, 1, 1], [], []>} : vector<64x256xf32>, vector<256x256xf32>, vector<64x256xf32> -> vector<64x256xf32>
    %c8 = arith.constant 8 : index
    %c0_16 = arith.constant 0 : index
    %19 = vector.load %arg8[%c8, %c0_16] : memref<608x256xf32, #tpu.memory_space<vmem>>, vector<1x256xf32>
    %20 = vector.broadcast %19 : vector<1x256xf32> to vector<64x256xf32>
    %21 = arith.addf %18, %20 : vector<64x256xf32>
    %cst_17 = arith.constant 0.000000e+00 : f32
    %22 = vector.broadcast %cst_17 : f32 to vector<64x256xf32>
    %23 = arith.maximumf %21, %22 : vector<64x256xf32>
    %c424 = arith.constant 424 : index
    %c0_18 = arith.constant 0 : index
    %24 = vector.load %arg5[%c424, %c0_18] : memref<1728x32xf32, #tpu.memory_space<vmem>>, vector<256x32xf32>
    %cst_19 = arith.constant dense<0.000000e+00> : vector<64x32xf32>
    %25 = tpu.matmul %23, %24, %cst_19 {dimension_numbers = #tpu.dot_dimension_numbers<[1], [0], [0], [1], [0, 0, 1, 1], [], []>} : vector<64x256xf32>, vector<256x32xf32>, vector<64x32xf32> -> vector<64x32xf32>
    %c416 = arith.constant 416 : index
    %c0_20 = arith.constant 0 : index
    %26 = vector.load %arg5[%c416, %c0_20] : memref<1728x32xf32, #tpu.memory_space<vmem>>, vector<1x32xf32>
    %27 = vector.broadcast %26 : vector<1x32xf32> to vector<64x32xf32>
    %28 = arith.addf %25, %27 : vector<64x32xf32>
    %c1720 = arith.constant 1720 : index
    %c0_21 = arith.constant 0 : index
    %29 = vector.load %arg5[%c1720, %c0_21] : memref<1728x32xf32, #tpu.memory_space<vmem>>, vector<8x32xf32>
    %30 = arith.addf %28, %3 : vector<64x32xf32>
    %c408 = arith.constant 408 : index
    %c0_22 = arith.constant 0 : index
    %31 = vector.load %arg5[%c408, %c0_22] : memref<1728x32xf32, #tpu.memory_space<vmem>>, vector<1x32xf32>
    %c400 = arith.constant 400 : index
    %c0_23 = arith.constant 0 : index
    %32 = vector.load %arg5[%c400, %c0_23] : memref<1728x32xf32, #tpu.memory_space<vmem>>, vector<1x32xf32>
    %cst_24 = arith.constant 0.000000e+00 : f32
    %33 = vector.broadcast %cst_24 : f32 to vector<8x32xf32>
    %34 = arith.addf %33, %29 : vector<8x32xf32>
    %c48_25 = arith.constant 48 : index
    %c0_26 = arith.constant 0 : index
    %35 = vector.load %arg7[%c48_25, %c0_26] : memref<160x96xf32, #tpu.memory_space<vmem>>, vector<32x96xf32>
    %c40 = arith.constant 40 : index
    %c0_27 = arith.constant 0 : index
    %36 = vector.load %arg7[%c40, %c0_27] : memref<160x96xf32, #tpu.memory_space<vmem>>, vector<1x96xf32>
    %c168 = arith.constant 168 : index
    %c0_28 = arith.constant 0 : index
    %37 = vector.load %arg5[%c168, %c0_28] : memref<1728x32xf32, #tpu.memory_space<vmem>>, vector<32x32xf32>
    %c160 = arith.constant 160 : index
    %c0_29 = arith.constant 0 : index
    %38 = vector.load %arg5[%c160, %c0_29] : memref<1728x32xf32, #tpu.memory_space<vmem>>, vector<1x32xf32>
    %39 = vector.extract_strided_slice %35 {offsets = [0, 0], sizes = [32, 64], strides = [1, 1]} : vector<32x96xf32> to vector<32x64xf32>
    %cst_30 = arith.constant dense<0.000000e+00> : vector<8x64xf32>
    %40 = tpu.matmul %34, %39, %cst_30 {dimension_numbers = #tpu.dot_dimension_numbers<[1], [0], [0], [1], [0, 0, 1, 1], [], []>} : vector<8x32xf32>, vector<32x64xf32>, vector<8x64xf32> -> vector<8x64xf32>
    %41 = vector.extract_strided_slice %36 {offsets = [0, 0], sizes = [1, 64], strides = [1, 1]} : vector<1x96xf32> to vector<1x64xf32>
    %42 = vector.broadcast %41 : vector<1x64xf32> to vector<8x64xf32>
    %43 = arith.addf %40, %42 : vector<8x64xf32>
    %44 = vector.extract_strided_slice %43 {offsets = [0, 0], sizes = [8, 32], strides = [1, 1]} : vector<8x64xf32> to vector<8x32xf32>
    %45 = vector.extract_strided_slice %43 {offsets = [0, 32], sizes = [8, 32], strides = [1, 1]} : vector<8x64xf32> to vector<8x32xf32>
    %46 = vector.extract_strided_slice %35 {offsets = [0, 64], sizes = [32, 32], strides = [1, 1]} : vector<32x96xf32> to vector<32x32xf32>
    %cst_31 = arith.constant dense<0.000000e+00> : vector<8x32xf32>
    %47 = tpu.matmul %33, %46, %cst_31 {dimension_numbers = #tpu.dot_dimension_numbers<[1], [0], [0], [1], [0, 0, 1, 1], [], []>} : vector<8x32xf32>, vector<32x32xf32>, vector<8x32xf32> -> vector<8x32xf32>
    %48 = vector.extract_strided_slice %36 {offsets = [0, 64], sizes = [1, 32], strides = [1, 1]} : vector<1x96xf32> to vector<1x32xf32>
    %49 = vector.broadcast %48 : vector<1x32xf32> to vector<8x32xf32>
    %50 = arith.addf %47, %49 : vector<8x32xf32>
    %cst_32 = arith.constant 0.353553385 : f32
    %51 = vector.broadcast %cst_32 : f32 to vector<8x32xf32>
    %52 = arith.mulf %44, %51 : vector<8x32xf32>
    %53 = vector.extract_strided_slice %52 {offsets = [0, 0], sizes = [8, 8], strides = [1, 1]} : vector<8x32xf32> to vector<8x8xf32>
    %54 = vector.extract_strided_slice %45 {offsets = [0, 0], sizes = [8, 8], strides = [1, 1]} : vector<8x32xf32> to vector<8x8xf32>
    %cst_33 = arith.constant dense<0.000000e+00> : vector<8x8xf32>
    %55 = tpu.matmul %53, %54, %cst_33 {dimension_numbers = #tpu.dot_dimension_numbers<[1], [1], [0], [0], [0, 0, 1, 0], [], []>} : vector<8x8xf32>, vector<8x8xf32>, vector<8x8xf32> -> vector<8x8xf32>
    %cst_34 = arith.constant dense<0xFF800000> : vector<8xf32>
    %56 = vector.multi_reduction <maximumf>, %55, %cst_34 [1] : vector<8x8xf32> to vector<8xf32>
    %57 = vector.shape_cast %56 : vector<8xf32> to vector<8x1xf32>
    %58 = vector.broadcast %57 : vector<8x1xf32> to vector<8x8xf32>
    %59 = arith.subf %55, %58 : vector<8x8xf32>
    %60 = math.exp %59 : vector<8x8xf32>
    %cst_35 = arith.constant dense<0.000000e+00> : vector<8xf32>
    %61 = vector.multi_reduction <add>, %60, %cst_35 [1] : vector<8x8xf32> to vector<8xf32>
    %62 = vector.shape_cast %61 : vector<8xf32> to vector<8x1xf32>
    %63 = tpu.reciprocal %62 {approx = true} : vector<8x1xf32> -> vector<8x1xf32>
    %64 = vector.broadcast %63 : vector<8x1xf32> to vector<8x8xf32>
    %65 = arith.mulf %60, %64 : vector<8x8xf32>
    %66 = vector.extract_strided_slice %50 {offsets = [0, 0], sizes = [8, 8], strides = [1, 1]} : vector<8x32xf32> to vector<8x8xf32>
    %cst_36 = arith.constant dense<0.000000e+00> : vector<8x8xf32>
    %67 = tpu.matmul %65, %66, %cst_36 {dimension_numbers = #tpu.dot_dimension_numbers<[1], [0], [0], [1], [0, 0, 1, 1], [], []>} : vector<8x8xf32>, vector<8x8xf32>, vector<8x8xf32> -> vector<8x8xf32>
    %68 = vector.extract_strided_slice %52 {offsets = [0, 8], sizes = [8, 8], strides = [1, 1]} : vector<8x32xf32> to vector<8x8xf32>
    %69 = vector.extract_strided_slice %45 {offsets = [0, 8], sizes = [8, 8], strides = [1, 1]} : vector<8x32xf32> to vector<8x8xf32>
    %cst_37 = arith.constant dense<0.000000e+00> : vector<8x8xf32>
    %70 = tpu.matmul %68, %69, %cst_37 {dimension_numbers = #tpu.dot_dimension_numbers<[1], [1], [0], [0], [0, 0, 1, 0], [], []>} : vector<8x8xf32>, vector<8x8xf32>, vector<8x8xf32> -> vector<8x8xf32>
    %cst_38 = arith.constant dense<0xFF800000> : vector<8xf32>
    %71 = vector.multi_reduction <maximumf>, %70, %cst_38 [1] : vector<8x8xf32> to vector<8xf32>
    %72 = vector.shape_cast %71 : vector<8xf32> to vector<8x1xf32>
    %73 = vector.broadcast %72 : vector<8x1xf32> to vector<8x8xf32>
    %74 = arith.subf %70, %73 : vector<8x8xf32>
    %75 = math.exp %74 : vector<8x8xf32>
    %cst_39 = arith.constant dense<0.000000e+00> : vector<8xf32>
    %76 = vector.multi_reduction <add>, %75, %cst_39 [1] : vector<8x8xf32> to vector<8xf32>
    %77 = vector.shape_cast %76 : vector<8xf32> to vector<8x1xf32>
    %78 = tpu.reciprocal %77 {approx = true} : vector<8x1xf32> -> vector<8x1xf32>
    %79 = vector.broadcast %78 : vector<8x1xf32> to vector<8x8xf32>
    %80 = arith.mulf %75, %79 : vector<8x8xf32>
    %81 = vector.extract_strided_slice %50 {offsets = [0, 8], sizes = [8, 8], strides = [1, 1]} : vector<8x32xf32> to vector<8x8xf32>
    %cst_40 = arith.constant dense<0.000000e+00> : vector<8x8xf32>
    %82 = tpu.matmul %80, %81, %cst_40 {dimension_numbers = #tpu.dot_dimension_numbers<[1], [0], [0], [1], [0, 0, 1, 1], [], []>} : vector<8x8xf32>, vector<8x8xf32>, vector<8x8xf32> -> vector<8x8xf32>
    %83 = vector.extract_strided_slice %52 {offsets = [0, 16], sizes = [8, 8], strides = [1, 1]} : vector<8x32xf32> to vector<8x8xf32>
    %84 = vector.extract_strided_slice %45 {offsets = [0, 16], sizes = [8, 8], strides = [1, 1]} : vector<8x32xf32> to vector<8x8xf32>
    %cst_41 = arith.constant dense<0.000000e+00> : vector<8x8xf32>
    %85 = tpu.matmul %83, %84, %cst_41 {dimension_numbers = #tpu.dot_dimension_numbers<[1], [1], [0], [0], [0, 0, 1, 0], [], []>} : vector<8x8xf32>, vector<8x8xf32>, vector<8x8xf32> -> vector<8x8xf32>
    %cst_42 = arith.constant dense<0xFF800000> : vector<8xf32>
    %86 = vector.multi_reduction <maximumf>, %85, %cst_42 [1] : vector<8x8xf32> to vector<8xf32>
    %87 = vector.shape_cast %86 : vector<8xf32> to vector<8x1xf32>
    %88 = vector.broadcast %87 : vector<8x1xf32> to vector<8x8xf32>
    %89 = arith.subf %85, %88 : vector<8x8xf32>
    %90 = math.exp %89 : vector<8x8xf32>
    %cst_43 = arith.constant dense<0.000000e+00> : vector<8xf32>
    %91 = vector.multi_reduction <add>, %90, %cst_43 [1] : vector<8x8xf32> to vector<8xf32>
    %92 = vector.shape_cast %91 : vector<8xf32> to vector<8x1xf32>
    %93 = tpu.reciprocal %92 {approx = true} : vector<8x1xf32> -> vector<8x1xf32>
    %94 = vector.broadcast %93 : vector<8x1xf32> to vector<8x8xf32>
    %95 = arith.mulf %90, %94 : vector<8x8xf32>
    %96 = vector.extract_strided_slice %50 {offsets = [0, 16], sizes = [8, 8], strides = [1, 1]} : vector<8x32xf32> to vector<8x8xf32>
    %cst_44 = arith.constant dense<0.000000e+00> : vector<8x8xf32>
    %97 = tpu.matmul %95, %96, %cst_44 {dimension_numbers = #tpu.dot_dimension_numbers<[1], [0], [0], [1], [0, 0, 1, 1], [], []>} : vector<8x8xf32>, vector<8x8xf32>, vector<8x8xf32> -> vector<8x8xf32>
    %98 = vector.extract_strided_slice %52 {offsets = [0, 24], sizes = [8, 8], strides = [1, 1]} : vector<8x32xf32> to vector<8x8xf32>
    %99 = vector.extract_strided_slice %45 {offsets = [0, 24], sizes = [8, 8], strides = [1, 1]} : vector<8x32xf32> to vector<8x8xf32>
    %cst_45 = arith.constant dense<0.000000e+00> : vector<8x8xf32>
    %100 = tpu.matmul %98, %99, %cst_45 {dimension_numbers = #tpu.dot_dimension_numbers<[1], [1], [0], [0], [0, 0, 1, 0], [], []>} : vector<8x8xf32>, vector<8x8xf32>, vector<8x8xf32> -> vector<8x8xf32>
    %cst_46 = arith.constant dense<0xFF800000> : vector<8xf32>
    %101 = vector.multi_reduction <maximumf>, %100, %cst_46 [1] : vector<8x8xf32> to vector<8xf32>
    %102 = vector.shape_cast %101 : vector<8xf32> to vector<8x1xf32>
    %103 = vector.broadcast %102 : vector<8x1xf32> to vector<8x8xf32>
    %104 = arith.subf %100, %103 : vector<8x8xf32>
    %105 = math.exp %104 : vector<8x8xf32>
    %cst_47 = arith.constant dense<0.000000e+00> : vector<8xf32>
    %106 = vector.multi_reduction <add>, %105, %cst_47 [1] : vector<8x8xf32> to vector<8xf32>
    %107 = vector.shape_cast %106 : vector<8xf32> to vector<8x1xf32>
    %108 = tpu.reciprocal %107 {approx = true} : vector<8x1xf32> -> vector<8x1xf32>
    %109 = vector.broadcast %108 : vector<8x1xf32> to vector<8x8xf32>
    %110 = arith.mulf %105, %109 : vector<8x8xf32>
    %111 = vector.extract_strided_slice %50 {offsets = [0, 24], sizes = [8, 8], strides = [1, 1]} : vector<8x32xf32> to vector<8x8xf32>
    %cst_48 = arith.constant dense<0.000000e+00> : vector<8x8xf32>
    %112 = tpu.matmul %110, %111, %cst_48 {dimension_numbers = #tpu.dot_dimension_numbers<[1], [0], [0], [1], [0, 0, 1, 1], [], []>} : vector<8x8xf32>, vector<8x8xf32>, vector<8x8xf32> -> vector<8x8xf32>
    %113 = tpu.concatenate %67, %82, %97, %112 in 1 : vector<8x8xf32>, vector<8x8xf32>, vector<8x8xf32>, vector<8x8xf32> -> vector<8x32xf32>
    %cst_49 = arith.constant dense<0.000000e+00> : vector<8x32xf32>
    %114 = tpu.matmul %113, %37, %cst_49 {dimension_numbers = #tpu.dot_dimension_numbers<[1], [0], [0], [1], [0, 0, 1, 1], [], []>} : vector<8x32xf32>, vector<32x32xf32>, vector<8x32xf32> -> vector<8x32xf32>
    %115 = vector.broadcast %38 : vector<1x32xf32> to vector<8x32xf32>
    %116 = arith.addf %114, %115 : vector<8x32xf32>
    %117 = arith.addf %33, %116 : vector<8x32xf32>
    %c120 = arith.constant 120 : index
    %c0_50 = arith.constant 0 : index
    %118 = vector.load %arg5[%c120, %c0_50] : memref<1728x32xf32, #tpu.memory_space<vmem>>, vector<1x32xf32>
    %c112 = arith.constant 112 : index
    %c0_51 = arith.constant 0 : index
    %119 = vector.load %arg5[%c112, %c0_51] : memref<1728x32xf32, #tpu.memory_space<vmem>>, vector<1x32xf32>
    %cst_52 = arith.constant dense<0.000000e+00> : vector<8xf32>
    %120 = vector.multi_reduction <add>, %117, %cst_52 [1] : vector<8x32xf32> to vector<8xf32>
    %121 = vector.shape_cast %120 : vector<8xf32> to vector<8x1xf32>
    %cst_53 = arith.constant 3.200000e+01 : f32
    %122 = vector.broadcast %cst_53 : f32 to vector<8x1xf32>
    %123 = arith.divf %121, %122 : vector<8x1xf32>
    %124 = vector.broadcast %123 : vector<8x1xf32> to vector<8x32xf32>
    %125 = arith.subf %117, %124 : vector<8x32xf32>
    %126 = arith.mulf %125, %125 : vector<8x32xf32>
    %cst_54 = arith.constant dense<0.000000e+00> : vector<8xf32>
    %127 = vector.multi_reduction <add>, %126, %cst_54 [1] : vector<8x32xf32> to vector<8xf32>
    %128 = vector.shape_cast %127 : vector<8xf32> to vector<8x1xf32>
    %cst_55 = arith.constant 3.200000e+01 : f32
    %129 = vector.broadcast %cst_55 : f32 to vector<8x1xf32>
    %130 = arith.divf %128, %129 : vector<8x1xf32>
    %131 = vector.broadcast %123 : vector<8x1xf32> to vector<8x32xf32>
    %132 = arith.subf %117, %131 : vector<8x32xf32>
    %cst_56 = arith.constant 9.99999974E-6 : f32
    %133 = vector.broadcast %cst_56 : f32 to vector<8x1xf32>
    %134 = arith.addf %130, %133 : vector<8x1xf32>
    %135 = math.rsqrt %134 : vector<8x1xf32>
    %136 = vector.broadcast %135 : vector<8x1xf32> to vector<8x32xf32>
    %137 = arith.mulf %132, %136 : vector<8x32xf32>
    %138 = vector.broadcast %118 : vector<1x32xf32> to vector<8x32xf32>
    %139 = arith.mulf %137, %138 : vector<8x32xf32>
    %140 = vector.broadcast %119 : vector<1x32xf32> to vector<8x32xf32>
    %141 = arith.addf %139, %140 : vector<8x32xf32>
    %142 = arith.addf %141, %29 : vector<8x32xf32>
    %c8_57 = arith.constant 8 : index
    %c0_58 = arith.constant 0 : index
    %143 = vector.load %arg7[%c8_57, %c0_58] : memref<160x96xf32, #tpu.memory_space<vmem>>, vector<32x96xf32>
    %c0_59 = arith.constant 0 : index
    %c0_60 = arith.constant 0 : index
    %144 = vector.load %arg7[%c0_59, %c0_60] : memref<160x96xf32, #tpu.memory_space<vmem>>, vector<1x96xf32>
    %c8_61 = arith.constant 8 : index
    %c0_62 = arith.constant 0 : index
    %145 = vector.load %arg5[%c8_61, %c0_62] : memref<1728x32xf32, #tpu.memory_space<vmem>>, vector<32x32xf32>
    %c0_63 = arith.constant 0 : index
    %c0_64 = arith.constant 0 : index
    %146 = vector.load %arg5[%c0_63, %c0_64] : memref<1728x32xf32, #tpu.memory_space<vmem>>, vector<1x32xf32>
    %147 = vector.extract_strided_slice %143 {offsets = [0, 0], sizes = [32, 32], strides = [1, 1]} : vector<32x96xf32> to vector<32x32xf32>
    %cst_65 = arith.constant dense<0.000000e+00> : vector<8x32xf32>
    %148 = tpu.matmul %142, %147, %cst_65 {dimension_numbers = #tpu.dot_dimension_numbers<[1], [0], [0], [1], [0, 0, 1, 1], [], []>} : vector<8x32xf32>, vector<32x32xf32>, vector<8x32xf32> -> vector<8x32xf32>
    %149 = vector.extract_strided_slice %144 {offsets = [0, 0], sizes = [1, 32], strides = [1, 1]} : vector<1x96xf32> to vector<1x32xf32>
    %150 = vector.broadcast %149 : vector<1x32xf32> to vector<8x32xf32>
    %151 = arith.addf %148, %150 : vector<8x32xf32>
    %152 = vector.extract_strided_slice %143 {offsets = [0, 32], sizes = [32, 32], strides = [1, 1]} : vector<32x96xf32> to vector<32x32xf32>
    %cst_66 = arith.constant dense<0.000000e+00> : vector<64x32xf32>
    %153 = tpu.matmul %30, %152, %cst_66 {dimension_numbers = #tpu.dot_dimension_numbers<[1], [0], [0], [1], [0, 0, 1, 1], [], []>} : vector<64x32xf32>, vector<32x32xf32>, vector<64x32xf32> -> vector<64x32xf32>
    %154 = vector.extract_strided_slice %144 {offsets = [0, 32], sizes = [1, 32], strides = [1, 1]} : vector<1x96xf32> to vector<1x32xf32>
    %155 = vector.broadcast %154 : vector<1x32xf32> to vector<64x32xf32>
    %156 = arith.addf %153, %155 : vector<64x32xf32>
    %157 = vector.extract_strided_slice %143 {offsets = [0, 64], sizes = [32, 32], strides = [1, 1]} : vector<32x96xf32> to vector<32x32xf32>
    %cst_67 = arith.constant dense<0.000000e+00> : vector<64x32xf32>
    %158 = tpu.matmul %28, %157, %cst_67 {dimension_numbers = #tpu.dot_dimension_numbers<[1], [0], [0], [1], [0, 0, 1, 1], [], []>} : vector<64x32xf32>, vector<32x32xf32>, vector<64x32xf32> -> vector<64x32xf32>
    %159 = vector.extract_strided_slice %144 {offsets = [0, 64], sizes = [1, 32], strides = [1, 1]} : vector<1x96xf32> to vector<1x32xf32>
    %160 = vector.broadcast %159 : vector<1x32xf32> to vector<64x32xf32>
    %161 = arith.addf %158, %160 : vector<64x32xf32>
    %cst_68 = arith.constant 0.353553385 : f32
    %162 = vector.broadcast %cst_68 : f32 to vector<8x32xf32>
    %163 = arith.mulf %151, %162 : vector<8x32xf32>
    %164 = vector.extract_strided_slice %163 {offsets = [0, 0], sizes = [8, 8], strides = [1, 1]} : vector<8x32xf32> to vector<8x8xf32>
    %165 = vector.extract_strided_slice %156 {offsets = [0, 0], sizes = [64, 8], strides = [1, 1]} : vector<64x32xf32> to vector<64x8xf32>
    %cst_69 = arith.constant dense<0.000000e+00> : vector<8x64xf32>
    %166 = tpu.matmul %164, %165, %cst_69 {dimension_numbers = #tpu.dot_dimension_numbers<[1], [1], [0], [0], [0, 0, 1, 0], [], []>} : vector<8x8xf32>, vector<64x8xf32>, vector<8x64xf32> -> vector<8x64xf32>
    %cst_70 = arith.constant dense<0xFF800000> : vector<8xf32>
    %167 = vector.multi_reduction <maximumf>, %166, %cst_70 [1] : vector<8x64xf32> to vector<8xf32>
    %168 = vector.shape_cast %167 : vector<8xf32> to vector<8x1xf32>
    %169 = vector.broadcast %168 : vector<8x1xf32> to vector<8x64xf32>
    %170 = arith.subf %166, %169 : vector<8x64xf32>
    %171 = math.exp %170 : vector<8x64xf32>
    %cst_71 = arith.constant dense<0.000000e+00> : vector<8xf32>
    %172 = vector.multi_reduction <add>, %171, %cst_71 [1] : vector<8x64xf32> to vector<8xf32>
    %173 = vector.shape_cast %172 : vector<8xf32> to vector<8x1xf32>
    %174 = tpu.reciprocal %173 {approx = true} : vector<8x1xf32> -> vector<8x1xf32>
    %175 = vector.broadcast %174 : vector<8x1xf32> to vector<8x64xf32>
    %176 = arith.mulf %171, %175 : vector<8x64xf32>
    %177 = vector.extract_strided_slice %161 {offsets = [0, 0], sizes = [64, 8], strides = [1, 1]} : vector<64x32xf32> to vector<64x8xf32>
    %cst_72 = arith.constant dense<0.000000e+00> : vector<8x8xf32>
    %178 = tpu.matmul %176, %177, %cst_72 {dimension_numbers = #tpu.dot_dimension_numbers<[1], [0], [0], [1], [0, 0, 1, 1], [], []>} : vector<8x64xf32>, vector<64x8xf32>, vector<8x8xf32> -> vector<8x8xf32>
    %179 = vector.extract_strided_slice %163 {offsets = [0, 8], sizes = [8, 8], strides = [1, 1]} : vector<8x32xf32> to vector<8x8xf32>
    %180 = vector.extract_strided_slice %156 {offsets = [0, 8], sizes = [64, 8], strides = [1, 1]} : vector<64x32xf32> to vector<64x8xf32>
    %cst_73 = arith.constant dense<0.000000e+00> : vector<8x64xf32>
    %181 = tpu.matmul %179, %180, %cst_73 {dimension_numbers = #tpu.dot_dimension_numbers<[1], [1], [0], [0], [0, 0, 1, 0], [], []>} : vector<8x8xf32>, vector<64x8xf32>, vector<8x64xf32> -> vector<8x64xf32>
    %cst_74 = arith.constant dense<0xFF800000> : vector<8xf32>
    %182 = vector.multi_reduction <maximumf>, %181, %cst_74 [1] : vector<8x64xf32> to vector<8xf32>
    %183 = vector.shape_cast %182 : vector<8xf32> to vector<8x1xf32>
    %184 = vector.broadcast %183 : vector<8x1xf32> to vector<8x64xf32>
    %185 = arith.subf %181, %184 : vector<8x64xf32>
    %186 = math.exp %185 : vector<8x64xf32>
    %cst_75 = arith.constant dense<0.000000e+00> : vector<8xf32>
    %187 = vector.multi_reduction <add>, %186, %cst_75 [1] : vector<8x64xf32> to vector<8xf32>
    %188 = vector.shape_cast %187 : vector<8xf32> to vector<8x1xf32>
    %189 = tpu.reciprocal %188 {approx = true} : vector<8x1xf32> -> vector<8x1xf32>
    %190 = vector.broadcast %189 : vector<8x1xf32> to vector<8x64xf32>
    %191 = arith.mulf %186, %190 : vector<8x64xf32>
    %192 = vector.extract_strided_slice %161 {offsets = [0, 8], sizes = [64, 8], strides = [1, 1]} : vector<64x32xf32> to vector<64x8xf32>
    %cst_76 = arith.constant dense<0.000000e+00> : vector<8x8xf32>
    %193 = tpu.matmul %191, %192, %cst_76 {dimension_numbers = #tpu.dot_dimension_numbers<[1], [0], [0], [1], [0, 0, 1, 1], [], []>} : vector<8x64xf32>, vector<64x8xf32>, vector<8x8xf32> -> vector<8x8xf32>
    %194 = vector.extract_strided_slice %163 {offsets = [0, 16], sizes = [8, 8], strides = [1, 1]} : vector<8x32xf32> to vector<8x8xf32>
    %195 = vector.extract_strided_slice %156 {offsets = [0, 16], sizes = [64, 8], strides = [1, 1]} : vector<64x32xf32> to vector<64x8xf32>
    %cst_77 = arith.constant dense<0.000000e+00> : vector<8x64xf32>
    %196 = tpu.matmul %194, %195, %cst_77 {dimension_numbers = #tpu.dot_dimension_numbers<[1], [1], [0], [0], [0, 0, 1, 0], [], []>} : vector<8x8xf32>, vector<64x8xf32>, vector<8x64xf32> -> vector<8x64xf32>
    %cst_78 = arith.constant dense<0xFF800000> : vector<8xf32>
    %197 = vector.multi_reduction <maximumf>, %196, %cst_78 [1] : vector<8x64xf32> to vector<8xf32>
    %198 = vector.shape_cast %197 : vector<8xf32> to vector<8x1xf32>
    %199 = vector.broadcast %198 : vector<8x1xf32> to vector<8x64xf32>
    %200 = arith.subf %196, %199 : vector<8x64xf32>
    %201 = math.exp %200 : vector<8x64xf32>
    %cst_79 = arith.constant dense<0.000000e+00> : vector<8xf32>
    %202 = vector.multi_reduction <add>, %201, %cst_79 [1] : vector<8x64xf32> to vector<8xf32>
    %203 = vector.shape_cast %202 : vector<8xf32> to vector<8x1xf32>
    %204 = tpu.reciprocal %203 {approx = true} : vector<8x1xf32> -> vector<8x1xf32>
    %205 = vector.broadcast %204 : vector<8x1xf32> to vector<8x64xf32>
    %206 = arith.mulf %201, %205 : vector<8x64xf32>
    %207 = vector.extract_strided_slice %161 {offsets = [0, 16], sizes = [64, 8], strides = [1, 1]} : vector<64x32xf32> to vector<64x8xf32>
    %cst_80 = arith.constant dense<0.000000e+00> : vector<8x8xf32>
    %208 = tpu.matmul %206, %207, %cst_80 {dimension_numbers = #tpu.dot_dimension_numbers<[1], [0], [0], [1], [0, 0, 1, 1], [], []>} : vector<8x64xf32>, vector<64x8xf32>, vector<8x8xf32> -> vector<8x8xf32>
    %209 = vector.extract_strided_slice %163 {offsets = [0, 24], sizes = [8, 8], strides = [1, 1]} : vector<8x32xf32> to vector<8x8xf32>
    %210 = vector.extract_strided_slice %156 {offsets = [0, 24], sizes = [64, 8], strides = [1, 1]} : vector<64x32xf32> to vector<64x8xf32>
    %cst_81 = arith.constant dense<0.000000e+00> : vector<8x64xf32>
    %211 = tpu.matmul %209, %210, %cst_81 {dimension_numbers = #tpu.dot_dimension_numbers<[1], [1], [0], [0], [0, 0, 1, 0], [], []>} : vector<8x8xf32>, vector<64x8xf32>, vector<8x64xf32> -> vector<8x64xf32>
    %cst_82 = arith.constant dense<0xFF800000> : vector<8xf32>
    %212 = vector.multi_reduction <maximumf>, %211, %cst_82 [1] : vector<8x64xf32> to vector<8xf32>
    %213 = vector.shape_cast %212 : vector<8xf32> to vector<8x1xf32>
    %214 = vector.broadcast %213 : vector<8x1xf32> to vector<8x64xf32>
    %215 = arith.subf %211, %214 : vector<8x64xf32>
    %216 = math.exp %215 : vector<8x64xf32>
    %cst_83 = arith.constant dense<0.000000e+00> : vector<8xf32>
    %217 = vector.multi_reduction <add>, %216, %cst_83 [1] : vector<8x64xf32> to vector<8xf32>
    %218 = vector.shape_cast %217 : vector<8xf32> to vector<8x1xf32>
    %219 = tpu.reciprocal %218 {approx = true} : vector<8x1xf32> -> vector<8x1xf32>
    %220 = vector.broadcast %219 : vector<8x1xf32> to vector<8x64xf32>
    %221 = arith.mulf %216, %220 : vector<8x64xf32>
    %222 = vector.extract_strided_slice %161 {offsets = [0, 24], sizes = [64, 8], strides = [1, 1]} : vector<64x32xf32> to vector<64x8xf32>
    %cst_84 = arith.constant dense<0.000000e+00> : vector<8x8xf32>
    %223 = tpu.matmul %221, %222, %cst_84 {dimension_numbers = #tpu.dot_dimension_numbers<[1], [0], [0], [1], [0, 0, 1, 1], [], []>} : vector<8x64xf32>, vector<64x8xf32>, vector<8x8xf32> -> vector<8x8xf32>
    %224 = tpu.concatenate %178, %193, %208, %223 in 1 : vector<8x8xf32>, vector<8x8xf32>, vector<8x8xf32>, vector<8x8xf32> -> vector<8x32xf32>
    %cst_85 = arith.constant dense<0.000000e+00> : vector<8x32xf32>
    %225 = tpu.matmul %224, %145, %cst_85 {dimension_numbers = #tpu.dot_dimension_numbers<[1], [0], [0], [1], [0, 0, 1, 1], [], []>} : vector<8x32xf32>, vector<32x32xf32>, vector<8x32xf32> -> vector<8x32xf32>
    %226 = vector.broadcast %146 : vector<1x32xf32> to vector<8x32xf32>
    %227 = arith.addf %225, %226 : vector<8x32xf32>
    %228 = arith.addf %141, %227 : vector<8x32xf32>
    %c136 = arith.constant 136 : index
    %c0_86 = arith.constant 0 : index
    %229 = vector.load %arg5[%c136, %c0_86] : memref<1728x32xf32, #tpu.memory_space<vmem>>, vector<1x32xf32>
    %c128 = arith.constant 128 : index
    %c0_87 = arith.constant 0 : index
    %230 = vector.load %arg5[%c128, %c0_87] : memref<1728x32xf32, #tpu.memory_space<vmem>>, vector<1x32xf32>
    %cst_88 = arith.constant dense<0.000000e+00> : vector<8xf32>
    %231 = vector.multi_reduction <add>, %228, %cst_88 [1] : vector<8x32xf32> to vector<8xf32>
    %232 = vector.shape_cast %231 : vector<8xf32> to vector<8x1xf32>
    %cst_89 = arith.constant 3.200000e+01 : f32
    %233 = vector.broadcast %cst_89 : f32 to vector<8x1xf32>
    %234 = arith.divf %232, %233 : vector<8x1xf32>
    %235 = vector.broadcast %234 : vector<8x1xf32> to vector<8x32xf32>
    %236 = arith.subf %228, %235 : vector<8x32xf32>
    %237 = arith.mulf %236, %236 : vector<8x32xf32>
    %cst_90 = arith.constant dense<0.000000e+00> : vector<8xf32>
    %238 = vector.multi_reduction <add>, %237, %cst_90 [1] : vector<8x32xf32> to vector<8xf32>
    %239 = vector.shape_cast %238 : vector<8xf32> to vector<8x1xf32>
    %cst_91 = arith.constant 3.200000e+01 : f32
    %240 = vector.broadcast %cst_91 : f32 to vector<8x1xf32>
    %241 = arith.divf %239, %240 : vector<8x1xf32>
    %242 = vector.broadcast %234 : vector<8x1xf32> to vector<8x32xf32>
    %243 = arith.subf %228, %242 : vector<8x32xf32>
    %cst_92 = arith.constant 9.99999974E-6 : f32
    %244 = vector.broadcast %cst_92 : f32 to vector<8x1xf32>
    %245 = arith.addf %241, %244 : vector<8x1xf32>
    %246 = math.rsqrt %245 : vector<8x1xf32>
    %247 = vector.broadcast %246 : vector<8x1xf32> to vector<8x32xf32>
    %248 = arith.mulf %243, %247 : vector<8x32xf32>
    %249 = vector.broadcast %229 : vector<1x32xf32> to vector<8x32xf32>
    %250 = arith.mulf %248, %249 : vector<8x32xf32>
    %251 = vector.broadcast %230 : vector<1x32xf32> to vector<8x32xf32>
    %252 = arith.addf %250, %251 : vector<8x32xf32>
    %c8_93 = arith.constant 8 : index
    %c0_94 = arith.constant 0 : index
    %253 = vector.load %arg6[%c8_93, %c0_94] : memref<80x64xf32, #tpu.memory_space<vmem>>, vector<32x64xf32>
    %cst_95 = arith.constant dense<0.000000e+00> : vector<8x64xf32>
    %254 = tpu.matmul %252, %253, %cst_95 {dimension_numbers = #tpu.dot_dimension_numbers<[1], [0], [0], [1], [0, 0, 1, 1], [], []>} : vector<8x32xf32>, vector<32x64xf32>, vector<8x64xf32> -> vector<8x64xf32>
    %c0_96 = arith.constant 0 : index
    %c0_97 = arith.constant 0 : index
    %255 = vector.load %arg6[%c0_96, %c0_97] : memref<80x64xf32, #tpu.memory_space<vmem>>, vector<1x64xf32>
    %256 = vector.broadcast %255 : vector<1x64xf32> to vector<8x64xf32>
    %257 = arith.addf %254, %256 : vector<8x64xf32>
    %cst_98 = arith.constant 0.000000e+00 : f32
    %258 = vector.broadcast %cst_98 : f32 to vector<8x64xf32>
    %259 = arith.maximumf %257, %258 : vector<8x64xf32>
    %c48_99 = arith.constant 48 : index
    %c0_100 = arith.constant 0 : index
    %260 = vector.load %arg5[%c48_99, %c0_100] : memref<1728x32xf32, #tpu.memory_space<vmem>>, vector<64x32xf32>
    %cst_101 = arith.constant dense<0.000000e+00> : vector<8x32xf32>
    %261 = tpu.matmul %259, %260, %cst_101 {dimension_numbers = #tpu.dot_dimension_numbers<[1], [0], [0], [1], [0, 0, 1, 1], [], []>} : vector<8x64xf32>, vector<64x32xf32>, vector<8x32xf32> -> vector<8x32xf32>
    %c40_102 = arith.constant 40 : index
    %c0_103 = arith.constant 0 : index
    %262 = vector.load %arg5[%c40_102, %c0_103] : memref<1728x32xf32, #tpu.memory_space<vmem>>, vector<1x32xf32>
    %263 = vector.broadcast %262 : vector<1x32xf32> to vector<8x32xf32>
    %264 = arith.addf %261, %263 : vector<8x32xf32>
    %265 = arith.addf %252, %264 : vector<8x32xf32>
    %c152 = arith.constant 152 : index
    %c0_104 = arith.constant 0 : index
    %266 = vector.load %arg5[%c152, %c0_104] : memref<1728x32xf32, #tpu.memory_space<vmem>>, vector<1x32xf32>
    %c144 = arith.constant 144 : index
    %c0_105 = arith.constant 0 : index
    %267 = vector.load %arg5[%c144, %c0_105] : memref<1728x32xf32, #tpu.memory_space<vmem>>, vector<1x32xf32>
    %cst_106 = arith.constant dense<0.000000e+00> : vector<8xf32>
    %268 = vector.multi_reduction <add>, %265, %cst_106 [1] : vector<8x32xf32> to vector<8xf32>
    %269 = vector.shape_cast %268 : vector<8xf32> to vector<8x1xf32>
    %cst_107 = arith.constant 3.200000e+01 : f32
    %270 = vector.broadcast %cst_107 : f32 to vector<8x1xf32>
    %271 = arith.divf %269, %270 : vector<8x1xf32>
    %272 = vector.broadcast %271 : vector<8x1xf32> to vector<8x32xf32>
    %273 = arith.subf %265, %272 : vector<8x32xf32>
    %274 = arith.mulf %273, %273 : vector<8x32xf32>
    %cst_108 = arith.constant dense<0.000000e+00> : vector<8xf32>
    %275 = vector.multi_reduction <add>, %274, %cst_108 [1] : vector<8x32xf32> to vector<8xf32>
    %276 = vector.shape_cast %275 : vector<8xf32> to vector<8x1xf32>
    %cst_109 = arith.constant 3.200000e+01 : f32
    %277 = vector.broadcast %cst_109 : f32 to vector<8x1xf32>
    %278 = arith.divf %276, %277 : vector<8x1xf32>
    %279 = vector.broadcast %271 : vector<8x1xf32> to vector<8x32xf32>
    %280 = arith.subf %265, %279 : vector<8x32xf32>
    %cst_110 = arith.constant 9.99999974E-6 : f32
    %281 = vector.broadcast %cst_110 : f32 to vector<8x1xf32>
    %282 = arith.addf %278, %281 : vector<8x1xf32>
    %283 = math.rsqrt %282 : vector<8x1xf32>
    %284 = vector.broadcast %283 : vector<8x1xf32> to vector<8x32xf32>
    %285 = arith.mulf %280, %284 : vector<8x32xf32>
    %286 = vector.broadcast %266 : vector<1x32xf32> to vector<8x32xf32>
    %287 = arith.mulf %285, %286 : vector<8x32xf32>
    %288 = vector.broadcast %267 : vector<1x32xf32> to vector<8x32xf32>
    %289 = arith.addf %287, %288 : vector<8x32xf32>
    %cst_111 = arith.constant dense<0.000000e+00> : vector<8xf32>
    %290 = vector.multi_reduction <add>, %289, %cst_111 [1] : vector<8x32xf32> to vector<8xf32>
    %291 = vector.shape_cast %290 : vector<8xf32> to vector<8x1xf32>
    %cst_112 = arith.constant 3.200000e+01 : f32
    %292 = vector.broadcast %cst_112 : f32 to vector<8x1xf32>
    %293 = arith.divf %291, %292 : vector<8x1xf32>
    %294 = vector.broadcast %293 : vector<8x1xf32> to vector<8x32xf32>
    %295 = arith.subf %289, %294 : vector<8x32xf32>
    %296 = arith.mulf %295, %295 : vector<8x32xf32>
    %cst_113 = arith.constant dense<0.000000e+00> : vector<8xf32>
    %297 = vector.multi_reduction <add>, %296, %cst_113 [1] : vector<8x32xf32> to vector<8xf32>
    %298 = vector.shape_cast %297 : vector<8xf32> to vector<8x1xf32>
    %cst_114 = arith.constant 3.200000e+01 : f32
    %299 = vector.broadcast %cst_114 : f32 to vector<8x1xf32>
    %300 = arith.divf %298, %299 : vector<8x1xf32>
    %301 = vector.broadcast %293 : vector<8x1xf32> to vector<8x32xf32>
    %302 = arith.subf %289, %301 : vector<8x32xf32>
    %cst_115 = arith.constant 9.99999974E-6 : f32
    %303 = vector.broadcast %cst_115 : f32 to vector<8x1xf32>
    %304 = arith.addf %300, %303 : vector<8x1xf32>
    %305 = math.rsqrt %304 : vector<8x1xf32>
    %306 = vector.broadcast %305 : vector<8x1xf32> to vector<8x32xf32>
    %307 = arith.mulf %302, %306 : vector<8x32xf32>
    %308 = vector.broadcast %31 : vector<1x32xf32> to vector<8x32xf32>
    %309 = arith.mulf %307, %308 : vector<8x32xf32>
    %310 = vector.broadcast %32 : vector<1x32xf32> to vector<8x32xf32>
    %311 = arith.addf %309, %310 : vector<8x32xf32>
    %c0_116 = arith.constant 0 : index
    %c0_117 = arith.constant 0 : index
    %312 = vector.load %arg11[%c0_116, %c0_117] : memref<16x32xf32, #tpu.memory_space<vmem>>, vector<8x32xf32>
    tpu.vector_store %arg11[%c0_116, %c0_117], %311 {strides = array<i32>} : memref<16x32xf32, #tpu.memory_space<vmem>>, vector<8x32xf32>,
    %313 = arith.addf %289, %29 : vector<8x32xf32>
    %c128_118 = arith.constant 128 : index
    %c0_119 = arith.constant 0 : index
    %314 = vector.load %arg7[%c128_118, %c0_119] : memref<160x96xf32, #tpu.memory_space<vmem>>, vector<32x96xf32>
    %c120_120 = arith.constant 120 : index
    %c0_121 = arith.constant 0 : index
    %315 = vector.load %arg7[%c120_120, %c0_121] : memref<160x96xf32, #tpu.memory_space<vmem>>, vector<1x96xf32>
    %c368 = arith.constant 368 : index
    %c0_122 = arith.constant 0 : index
    %316 = vector.load %arg5[%c368, %c0_122] : memref<1728x32xf32, #tpu.memory_space<vmem>>, vector<32x32xf32>
    %c360 = arith.constant 360 : index
    %c0_123 = arith.constant 0 : index
    %317 = vector.load %arg5[%c360, %c0_123] : memref<1728x32xf32, #tpu.memory_space<vmem>>, vector<1x32xf32>
    %318 = vector.extract_strided_slice %314 {offsets = [0, 0], sizes = [32, 64], strides = [1, 1]} : vector<32x96xf32> to vector<32x64xf32>
    %cst_124 = arith.constant dense<0.000000e+00> : vector<8x64xf32>
    %319 = tpu.matmul %313, %318, %cst_124 {dimension_numbers = #tpu.dot_dimension_numbers<[1], [0], [0], [1], [0, 0, 1, 1], [], []>} : vector<8x32xf32>, vector<32x64xf32>, vector<8x64xf32> -> vector<8x64xf32>
    %320 = vector.extract_strided_slice %315 {offsets = [0, 0], sizes = [1, 64], strides = [1, 1]} : vector<1x96xf32> to vector<1x64xf32>
    %321 = vector.broadcast %320 : vector<1x64xf32> to vector<8x64xf32>
    %322 = arith.addf %319, %321 : vector<8x64xf32>
    %323 = vector.extract_strided_slice %322 {offsets = [0, 0], sizes = [8, 32], strides = [1, 1]} : vector<8x64xf32> to vector<8x32xf32>
    %324 = vector.extract_strided_slice %322 {offsets = [0, 32], sizes = [8, 32], strides = [1, 1]} : vector<8x64xf32> to vector<8x32xf32>
    %325 = vector.extract_strided_slice %314 {offsets = [0, 64], sizes = [32, 32], strides = [1, 1]} : vector<32x96xf32> to vector<32x32xf32>
    %cst_125 = arith.constant dense<0.000000e+00> : vector<8x32xf32>
    %326 = tpu.matmul %289, %325, %cst_125 {dimension_numbers = #tpu.dot_dimension_numbers<[1], [0], [0], [1], [0, 0, 1, 1], [], []>} : vector<8x32xf32>, vector<32x32xf32>, vector<8x32xf32> -> vector<8x32xf32>
    %327 = vector.extract_strided_slice %315 {offsets = [0, 64], sizes = [1, 32], strides = [1, 1]} : vector<1x96xf32> to vector<1x32xf32>
    %328 = vector.broadcast %327 : vector<1x32xf32> to vector<8x32xf32>
    %329 = arith.addf %326, %328 : vector<8x32xf32>
    %cst_126 = arith.constant 0.353553385 : f32
    %330 = vector.broadcast %cst_126 : f32 to vector<8x32xf32>
    %331 = arith.mulf %323, %330 : vector<8x32xf32>
    %332 = vector.extract_strided_slice %331 {offsets = [0, 0], sizes = [8, 8], strides = [1, 1]} : vector<8x32xf32> to vector<8x8xf32>
    %333 = vector.extract_strided_slice %324 {offsets = [0, 0], sizes = [8, 8], strides = [1, 1]} : vector<8x32xf32> to vector<8x8xf32>
    %cst_127 = arith.constant dense<0.000000e+00> : vector<8x8xf32>
    %334 = tpu.matmul %332, %333, %cst_127 {dimension_numbers = #tpu.dot_dimension_numbers<[1], [1], [0], [0], [0, 0, 1, 0], [], []>} : vector<8x8xf32>, vector<8x8xf32>, vector<8x8xf32> -> vector<8x8xf32>
    %cst_128 = arith.constant dense<0xFF800000> : vector<8xf32>
    %335 = vector.multi_reduction <maximumf>, %334, %cst_128 [1] : vector<8x8xf32> to vector<8xf32>
    %336 = vector.shape_cast %335 : vector<8xf32> to vector<8x1xf32>
    %337 = vector.broadcast %336 : vector<8x1xf32> to vector<8x8xf32>
    %338 = arith.subf %334, %337 : vector<8x8xf32>
    %339 = math.exp %338 : vector<8x8xf32>
    %cst_129 = arith.constant dense<0.000000e+00> : vector<8xf32>
    %340 = vector.multi_reduction <add>, %339, %cst_129 [1] : vector<8x8xf32> to vector<8xf32>
    %341 = vector.shape_cast %340 : vector<8xf32> to vector<8x1xf32>
    %342 = tpu.reciprocal %341 {approx = true} : vector<8x1xf32> -> vector<8x1xf32>
    %343 = vector.broadcast %342 : vector<8x1xf32> to vector<8x8xf32>
    %344 = arith.mulf %339, %343 : vector<8x8xf32>
    %345 = vector.extract_strided_slice %329 {offsets = [0, 0], sizes = [8, 8], strides = [1, 1]} : vector<8x32xf32> to vector<8x8xf32>
    %cst_130 = arith.constant dense<0.000000e+00> : vector<8x8xf32>
    %346 = tpu.matmul %344, %345, %cst_130 {dimension_numbers = #tpu.dot_dimension_numbers<[1], [0], [0], [1], [0, 0, 1, 1], [], []>} : vector<8x8xf32>, vector<8x8xf32>, vector<8x8xf32> -> vector<8x8xf32>
    %347 = vector.extract_strided_slice %331 {offsets = [0, 8], sizes = [8, 8], strides = [1, 1]} : vector<8x32xf32> to vector<8x8xf32>
    %348 = vector.extract_strided_slice %324 {offsets = [0, 8], sizes = [8, 8], strides = [1, 1]} : vector<8x32xf32> to vector<8x8xf32>
    %cst_131 = arith.constant dense<0.000000e+00> : vector<8x8xf32>
    %349 = tpu.matmul %347, %348, %cst_131 {dimension_numbers = #tpu.dot_dimension_numbers<[1], [1], [0], [0], [0, 0, 1, 0], [], []>} : vector<8x8xf32>, vector<8x8xf32>, vector<8x8xf32> -> vector<8x8xf32>
    %cst_132 = arith.constant dense<0xFF800000> : vector<8xf32>
    %350 = vector.multi_reduction <maximumf>, %349, %cst_132 [1] : vector<8x8xf32> to vector<8xf32>
    %351 = vector.shape_cast %350 : vector<8xf32> to vector<8x1xf32>
    %352 = vector.broadcast %351 : vector<8x1xf32> to vector<8x8xf32>
    %353 = arith.subf %349, %352 : vector<8x8xf32>
    %354 = math.exp %353 : vector<8x8xf32>
    %cst_133 = arith.constant dense<0.000000e+00> : vector<8xf32>
    %355 = vector.multi_reduction <add>, %354, %cst_133 [1] : vector<8x8xf32> to vector<8xf32>
    %356 = vector.shape_cast %355 : vector<8xf32> to vector<8x1xf32>
    %357 = tpu.reciprocal %356 {approx = true} : vector<8x1xf32> -> vector<8x1xf32>
    %358 = vector.broadcast %357 : vector<8x1xf32> to vector<8x8xf32>
    %359 = arith.mulf %354, %358 : vector<8x8xf32>
    %360 = vector.extract_strided_slice %329 {offsets = [0, 8], sizes = [8, 8], strides = [1, 1]} : vector<8x32xf32> to vector<8x8xf32>
    %cst_134 = arith.constant dense<0.000000e+00> : vector<8x8xf32>
    %361 = tpu.matmul %359, %360, %cst_134 {dimension_numbers = #tpu.dot_dimension_numbers<[1], [0], [0], [1], [0, 0, 1, 1], [], []>} : vector<8x8xf32>, vector<8x8xf32>, vector<8x8xf32> -> vector<8x8xf32>
    %362 = vector.extract_strided_slice %331 {offsets = [0, 16], sizes = [8, 8], strides = [1, 1]} : vector<8x32xf32> to vector<8x8xf32>
    %363 = vector.extract_strided_slice %324 {offsets = [0, 16], sizes = [8, 8], strides = [1, 1]} : vector<8x32xf32> to vector<8x8xf32>
    %cst_135 = arith.constant dense<0.000000e+00> : vector<8x8xf32>
    %364 = tpu.matmul %362, %363, %cst_135 {dimension_numbers = #tpu.dot_dimension_numbers<[1], [1], [0], [0], [0, 0, 1, 0], [], []>} : vector<8x8xf32>, vector<8x8xf32>, vector<8x8xf32> -> vector<8x8xf32>
    %cst_136 = arith.constant dense<0xFF800000> : vector<8xf32>
    %365 = vector.multi_reduction <maximumf>, %364, %cst_136 [1] : vector<8x8xf32> to vector<8xf32>
    %366 = vector.shape_cast %365 : vector<8xf32> to vector<8x1xf32>
    %367 = vector.broadcast %366 : vector<8x1xf32> to vector<8x8xf32>
    %368 = arith.subf %364, %367 : vector<8x8xf32>
    %369 = math.exp %368 : vector<8x8xf32>
    %cst_137 = arith.constant dense<0.000000e+00> : vector<8xf32>
    %370 = vector.multi_reduction <add>, %369, %cst_137 [1] : vector<8x8xf32> to vector<8xf32>
    %371 = vector.shape_cast %370 : vector<8xf32> to vector<8x1xf32>
    %372 = tpu.reciprocal %371 {approx = true} : vector<8x1xf32> -> vector<8x1xf32>
    %373 = vector.broadcast %372 : vector<8x1xf32> to vector<8x8xf32>
    %374 = arith.mulf %369, %373 : vector<8x8xf32>
    %375 = vector.extract_strided_slice %329 {offsets = [0, 16], sizes = [8, 8], strides = [1, 1]} : vector<8x32xf32> to vector<8x8xf32>
    %cst_138 = arith.constant dense<0.000000e+00> : vector<8x8xf32>
    %376 = tpu.matmul %374, %375, %cst_138 {dimension_numbers = #tpu.dot_dimension_numbers<[1], [0], [0], [1], [0, 0, 1, 1], [], []>} : vector<8x8xf32>, vector<8x8xf32>, vector<8x8xf32> -> vector<8x8xf32>
    %377 = vector.extract_strided_slice %331 {offsets = [0, 24], sizes = [8, 8], strides = [1, 1]} : vector<8x32xf32> to vector<8x8xf32>
    %378 = vector.extract_strided_slice %324 {offsets = [0, 24], sizes = [8, 8], strides = [1, 1]} : vector<8x32xf32> to vector<8x8xf32>
    %cst_139 = arith.constant dense<0.000000e+00> : vector<8x8xf32>
    %379 = tpu.matmul %377, %378, %cst_139 {dimension_numbers = #tpu.dot_dimension_numbers<[1], [1], [0], [0], [0, 0, 1, 0], [], []>} : vector<8x8xf32>, vector<8x8xf32>, vector<8x8xf32> -> vector<8x8xf32>
    %cst_140 = arith.constant dense<0xFF800000> : vector<8xf32>
    %380 = vector.multi_reduction <maximumf>, %379, %cst_140 [1] : vector<8x8xf32> to vector<8xf32>
    %381 = vector.shape_cast %380 : vector<8xf32> to vector<8x1xf32>
    %382 = vector.broadcast %381 : vector<8x1xf32> to vector<8x8xf32>
    %383 = arith.subf %379, %382 : vector<8x8xf32>
    %384 = math.exp %383 : vector<8x8xf32>
    %cst_141 = arith.constant dense<0.000000e+00> : vector<8xf32>
    %385 = vector.multi_reduction <add>, %384, %cst_141 [1] : vector<8x8xf32> to vector<8xf32>
    %386 = vector.shape_cast %385 : vector<8xf32> to vector<8x1xf32>
    %387 = tpu.reciprocal %386 {approx = true} : vector<8x1xf32> -> vector<8x1xf32>
    %388 = vector.broadcast %387 : vector<8x1xf32> to vector<8x8xf32>
    %389 = arith.mulf %384, %388 : vector<8x8xf32>
    %390 = vector.extract_strided_slice %329 {offsets = [0, 24], sizes = [8, 8], strides = [1, 1]} : vector<8x32xf32> to vector<8x8xf32>
    %cst_142 = arith.constant dense<0.000000e+00> : vector<8x8xf32>
    %391 = tpu.matmul %389, %390, %cst_142 {dimension_numbers = #tpu.dot_dimension_numbers<[1], [0], [0], [1], [0, 0, 1, 1], [], []>} : vector<8x8xf32>, vector<8x8xf32>, vector<8x8xf32> -> vector<8x8xf32>
    %392 = tpu.concatenate %346, %361, %376, %391 in 1 : vector<8x8xf32>, vector<8x8xf32>, vector<8x8xf32>, vector<8x8xf32> -> vector<8x32xf32>
    %cst_143 = arith.constant dense<0.000000e+00> : vector<8x32xf32>
    %393 = tpu.matmul %392, %316, %cst_143 {dimension_numbers = #tpu.dot_dimension_numbers<[1], [0], [0], [1], [0, 0, 1, 1], [], []>} : vector<8x32xf32>, vector<32x32xf32>, vector<8x32xf32> -> vector<8x32xf32>
    %394 = vector.broadcast %317 : vector<1x32xf32> to vector<8x32xf32>
    %395 = arith.addf %393, %394 : vector<8x32xf32>
    %396 = arith.addf %289, %395 : vector<8x32xf32>
    %c320 = arith.constant 320 : index
    %c0_144 = arith.constant 0 : index
    %397 = vector.load %arg5[%c320, %c0_144] : memref<1728x32xf32, #tpu.memory_space<vmem>>, vector<1x32xf32>
    %c312 = arith.constant 312 : index
    %c0_145 = arith.constant 0 : index
    %398 = vector.load %arg5[%c312, %c0_145] : memref<1728x32xf32, #tpu.memory_space<vmem>>, vector<1x32xf32>
    %cst_146 = arith.constant dense<0.000000e+00> : vector<8xf32>
    %399 = vector.multi_reduction <add>, %396, %cst_146 [1] : vector<8x32xf32> to vector<8xf32>
    %400 = vector.shape_cast %399 : vector<8xf32> to vector<8x1xf32>
    %cst_147 = arith.constant 3.200000e+01 : f32
    %401 = vector.broadcast %cst_147 : f32 to vector<8x1xf32>
    %402 = arith.divf %400, %401 : vector<8x1xf32>
    %403 = vector.broadcast %402 : vector<8x1xf32> to vector<8x32xf32>
    %404 = arith.subf %396, %403 : vector<8x32xf32>
    %405 = arith.mulf %404, %404 : vector<8x32xf32>
    %cst_148 = arith.constant dense<0.000000e+00> : vector<8xf32>
    %406 = vector.multi_reduction <add>, %405, %cst_148 [1] : vector<8x32xf32> to vector<8xf32>
    %407 = vector.shape_cast %406 : vector<8xf32> to vector<8x1xf32>
    %cst_149 = arith.constant 3.200000e+01 : f32
    %408 = vector.broadcast %cst_149 : f32 to vector<8x1xf32>
    %409 = arith.divf %407, %408 : vector<8x1xf32>
    %410 = vector.broadcast %402 : vector<8x1xf32> to vector<8x32xf32>
    %411 = arith.subf %396, %410 : vector<8x32xf32>
    %cst_150 = arith.constant 9.99999974E-6 : f32
    %412 = vector.broadcast %cst_150 : f32 to vector<8x1xf32>
    %413 = arith.addf %409, %412 : vector<8x1xf32>
    %414 = math.rsqrt %413 : vector<8x1xf32>
    %415 = vector.broadcast %414 : vector<8x1xf32> to vector<8x32xf32>
    %416 = arith.mulf %411, %415 : vector<8x32xf32>
    %417 = vector.broadcast %397 : vector<1x32xf32> to vector<8x32xf32>
    %418 = arith.mulf %416, %417 : vector<8x32xf32>
    %419 = vector.broadcast %398 : vector<1x32xf32> to vector<8x32xf32>
    %420 = arith.addf %418, %419 : vector<8x32xf32>
    %421 = arith.addf %420, %29 : vector<8x32xf32>
    %c88 = arith.constant 88 : index
    %c0_151 = arith.constant 0 : index
    %422 = vector.load %arg7[%c88, %c0_151] : memref<160x96xf32, #tpu.memory_space<vmem>>, vector<32x96xf32>
    %c80 = arith.constant 80 : index
    %c0_152 = arith.constant 0 : index
    %423 = vector.load %arg7[%c80, %c0_152] : memref<160x96xf32, #tpu.memory_space<vmem>>, vector<1x96xf32>
    %c208 = arith.constant 208 : index
    %c0_153 = arith.constant 0 : index
    %424 = vector.load %arg5[%c208, %c0_153] : memref<1728x32xf32, #tpu.memory_space<vmem>>, vector<32x32xf32>
    %c200 = arith.constant 200 : index
    %c0_154 = arith.constant 0 : index
    %425 = vector.load %arg5[%c200, %c0_154] : memref<1728x32xf32, #tpu.memory_space<vmem>>, vector<1x32xf32>
    %426 = vector.extract_strided_slice %422 {offsets = [0, 0], sizes = [32, 32], strides = [1, 1]} : vector<32x96xf32> to vector<32x32xf32>
    %cst_155 = arith.constant dense<0.000000e+00> : vector<8x32xf32>
    %427 = tpu.matmul %421, %426, %cst_155 {dimension_numbers = #tpu.dot_dimension_numbers<[1], [0], [0], [1], [0, 0, 1, 1], [], []>} : vector<8x32xf32>, vector<32x32xf32>, vector<8x32xf32> -> vector<8x32xf32>
    %428 = vector.extract_strided_slice %423 {offsets = [0, 0], sizes = [1, 32], strides = [1, 1]} : vector<1x96xf32> to vector<1x32xf32>
    %429 = vector.broadcast %428 : vector<1x32xf32> to vector<8x32xf32>
    %430 = arith.addf %427, %429 : vector<8x32xf32>
    %431 = vector.extract_strided_slice %422 {offsets = [0, 32], sizes = [32, 32], strides = [1, 1]} : vector<32x96xf32> to vector<32x32xf32>
    %cst_156 = arith.constant dense<0.000000e+00> : vector<64x32xf32>
    %432 = tpu.matmul %30, %431, %cst_156 {dimension_numbers = #tpu.dot_dimension_numbers<[1], [0], [0], [1], [0, 0, 1, 1], [], []>} : vector<64x32xf32>, vector<32x32xf32>, vector<64x32xf32> -> vector<64x32xf32>
    %433 = vector.extract_strided_slice %423 {offsets = [0, 32], sizes = [1, 32], strides = [1, 1]} : vector<1x96xf32> to vector<1x32xf32>
    %434 = vector.broadcast %433 : vector<1x32xf32> to vector<64x32xf32>
    %435 = arith.addf %432, %434 : vector<64x32xf32>
    %436 = vector.extract_strided_slice %422 {offsets = [0, 64], sizes = [32, 32], strides = [1, 1]} : vector<32x96xf32> to vector<32x32xf32>
    %cst_157 = arith.constant dense<0.000000e+00> : vector<64x32xf32>
    %437 = tpu.matmul %28, %436, %cst_157 {dimension_numbers = #tpu.dot_dimension_numbers<[1], [0], [0], [1], [0, 0, 1, 1], [], []>} : vector<64x32xf32>, vector<32x32xf32>, vector<64x32xf32> -> vector<64x32xf32>
    %438 = vector.extract_strided_slice %423 {offsets = [0, 64], sizes = [1, 32], strides = [1, 1]} : vector<1x96xf32> to vector<1x32xf32>
    %439 = vector.broadcast %438 : vector<1x32xf32> to vector<64x32xf32>
    %440 = arith.addf %437, %439 : vector<64x32xf32>
    %cst_158 = arith.constant 0.353553385 : f32
    %441 = vector.broadcast %cst_158 : f32 to vector<8x32xf32>
    %442 = arith.mulf %430, %441 : vector<8x32xf32>
    %443 = vector.extract_strided_slice %442 {offsets = [0, 0], sizes = [8, 8], strides = [1, 1]} : vector<8x32xf32> to vector<8x8xf32>
    %444 = vector.extract_strided_slice %435 {offsets = [0, 0], sizes = [64, 8], strides = [1, 1]} : vector<64x32xf32> to vector<64x8xf32>
    %cst_159 = arith.constant dense<0.000000e+00> : vector<8x64xf32>
    %445 = tpu.matmul %443, %444, %cst_159 {dimension_numbers = #tpu.dot_dimension_numbers<[1], [1], [0], [0], [0, 0, 1, 0], [], []>} : vector<8x8xf32>, vector<64x8xf32>, vector<8x64xf32> -> vector<8x64xf32>
    %cst_160 = arith.constant dense<0xFF800000> : vector<8xf32>
    %446 = vector.multi_reduction <maximumf>, %445, %cst_160 [1] : vector<8x64xf32> to vector<8xf32>
    %447 = vector.shape_cast %446 : vector<8xf32> to vector<8x1xf32>
    %448 = vector.broadcast %447 : vector<8x1xf32> to vector<8x64xf32>
    %449 = arith.subf %445, %448 : vector<8x64xf32>
    %450 = math.exp %449 : vector<8x64xf32>
    %cst_161 = arith.constant dense<0.000000e+00> : vector<8xf32>
    %451 = vector.multi_reduction <add>, %450, %cst_161 [1] : vector<8x64xf32> to vector<8xf32>
    %452 = vector.shape_cast %451 : vector<8xf32> to vector<8x1xf32>
    %453 = tpu.reciprocal %452 {approx = true} : vector<8x1xf32> -> vector<8x1xf32>
    %454 = vector.broadcast %453 : vector<8x1xf32> to vector<8x64xf32>
    %455 = arith.mulf %450, %454 : vector<8x64xf32>
    %456 = vector.extract_strided_slice %440 {offsets = [0, 0], sizes = [64, 8], strides = [1, 1]} : vector<64x32xf32> to vector<64x8xf32>
    %cst_162 = arith.constant dense<0.000000e+00> : vector<8x8xf32>
    %457 = tpu.matmul %455, %456, %cst_162 {dimension_numbers = #tpu.dot_dimension_numbers<[1], [0], [0], [1], [0, 0, 1, 1], [], []>} : vector<8x64xf32>, vector<64x8xf32>, vector<8x8xf32> -> vector<8x8xf32>
    %458 = vector.extract_strided_slice %442 {offsets = [0, 8], sizes = [8, 8], strides = [1, 1]} : vector<8x32xf32> to vector<8x8xf32>
    %459 = vector.extract_strided_slice %435 {offsets = [0, 8], sizes = [64, 8], strides = [1, 1]} : vector<64x32xf32> to vector<64x8xf32>
    %cst_163 = arith.constant dense<0.000000e+00> : vector<8x64xf32>
    %460 = tpu.matmul %458, %459, %cst_163 {dimension_numbers = #tpu.dot_dimension_numbers<[1], [1], [0], [0], [0, 0, 1, 0], [], []>} : vector<8x8xf32>, vector<64x8xf32>, vector<8x64xf32> -> vector<8x64xf32>
    %cst_164 = arith.constant dense<0xFF800000> : vector<8xf32>
    %461 = vector.multi_reduction <maximumf>, %460, %cst_164 [1] : vector<8x64xf32> to vector<8xf32>
    %462 = vector.shape_cast %461 : vector<8xf32> to vector<8x1xf32>
    %463 = vector.broadcast %462 : vector<8x1xf32> to vector<8x64xf32>
    %464 = arith.subf %460, %463 : vector<8x64xf32>
    %465 = math.exp %464 : vector<8x64xf32>
    %cst_165 = arith.constant dense<0.000000e+00> : vector<8xf32>
    %466 = vector.multi_reduction <add>, %465, %cst_165 [1] : vector<8x64xf32> to vector<8xf32>
    %467 = vector.shape_cast %466 : vector<8xf32> to vector<8x1xf32>
    %468 = tpu.reciprocal %467 {approx = true} : vector<8x1xf32> -> vector<8x1xf32>
    %469 = vector.broadcast %468 : vector<8x1xf32> to vector<8x64xf32>
    %470 = arith.mulf %465, %469 : vector<8x64xf32>
    %471 = vector.extract_strided_slice %440 {offsets = [0, 8], sizes = [64, 8], strides = [1, 1]} : vector<64x32xf32> to vector<64x8xf32>
    %cst_166 = arith.constant dense<0.000000e+00> : vector<8x8xf32>
    %472 = tpu.matmul %470, %471, %cst_166 {dimension_numbers = #tpu.dot_dimension_numbers<[1], [0], [0], [1], [0, 0, 1, 1], [], []>} : vector<8x64xf32>, vector<64x8xf32>, vector<8x8xf32> -> vector<8x8xf32>
    %473 = vector.extract_strided_slice %442 {offsets = [0, 16], sizes = [8, 8], strides = [1, 1]} : vector<8x32xf32> to vector<8x8xf32>
    %474 = vector.extract_strided_slice %435 {offsets = [0, 16], sizes = [64, 8], strides = [1, 1]} : vector<64x32xf32> to vector<64x8xf32>
    %cst_167 = arith.constant dense<0.000000e+00> : vector<8x64xf32>
    %475 = tpu.matmul %473, %474, %cst_167 {dimension_numbers = #tpu.dot_dimension_numbers<[1], [1], [0], [0], [0, 0, 1, 0], [], []>} : vector<8x8xf32>, vector<64x8xf32>, vector<8x64xf32> -> vector<8x64xf32>
    %cst_168 = arith.constant dense<0xFF800000> : vector<8xf32>
    %476 = vector.multi_reduction <maximumf>, %475, %cst_168 [1] : vector<8x64xf32> to vector<8xf32>
    %477 = vector.shape_cast %476 : vector<8xf32> to vector<8x1xf32>
    %478 = vector.broadcast %477 : vector<8x1xf32> to vector<8x64xf32>
    %479 = arith.subf %475, %478 : vector<8x64xf32>
    %480 = math.exp %479 : vector<8x64xf32>
    %cst_169 = arith.constant dense<0.000000e+00> : vector<8xf32>
    %481 = vector.multi_reduction <add>, %480, %cst_169 [1] : vector<8x64xf32> to vector<8xf32>
    %482 = vector.shape_cast %481 : vector<8xf32> to vector<8x1xf32>
    %483 = tpu.reciprocal %482 {approx = true} : vector<8x1xf32> -> vector<8x1xf32>
    %484 = vector.broadcast %483 : vector<8x1xf32> to vector<8x64xf32>
    %485 = arith.mulf %480, %484 : vector<8x64xf32>
    %486 = vector.extract_strided_slice %440 {offsets = [0, 16], sizes = [64, 8], strides = [1, 1]} : vector<64x32xf32> to vector<64x8xf32>
    %cst_170 = arith.constant dense<0.000000e+00> : vector<8x8xf32>
    %487 = tpu.matmul %485, %486, %cst_170 {dimension_numbers = #tpu.dot_dimension_numbers<[1], [0], [0], [1], [0, 0, 1, 1], [], []>} : vector<8x64xf32>, vector<64x8xf32>, vector<8x8xf32> -> vector<8x8xf32>
    %488 = vector.extract_strided_slice %442 {offsets = [0, 24], sizes = [8, 8], strides = [1, 1]} : vector<8x32xf32> to vector<8x8xf32>
    %489 = vector.extract_strided_slice %435 {offsets = [0, 24], sizes = [64, 8], strides = [1, 1]} : vector<64x32xf32> to vector<64x8xf32>
    %cst_171 = arith.constant dense<0.000000e+00> : vector<8x64xf32>
    %490 = tpu.matmul %488, %489, %cst_171 {dimension_numbers = #tpu.dot_dimension_numbers<[1], [1], [0], [0], [0, 0, 1, 0], [], []>} : vector<8x8xf32>, vector<64x8xf32>, vector<8x64xf32> -> vector<8x64xf32>
    %cst_172 = arith.constant dense<0xFF800000> : vector<8xf32>
    %491 = vector.multi_reduction <maximumf>, %490, %cst_172 [1] : vector<8x64xf32> to vector<8xf32>
    %492 = vector.shape_cast %491 : vector<8xf32> to vector<8x1xf32>
    %493 = vector.broadcast %492 : vector<8x1xf32> to vector<8x64xf32>
    %494 = arith.subf %490, %493 : vector<8x64xf32>
    %495 = math.exp %494 : vector<8x64xf32>
    %cst_173 = arith.constant dense<0.000000e+00> : vector<8xf32>
    %496 = vector.multi_reduction <add>, %495, %cst_173 [1] : vector<8x64xf32> to vector<8xf32>
    %497 = vector.shape_cast %496 : vector<8xf32> to vector<8x1xf32>
    %498 = tpu.reciprocal %497 {approx = true} : vector<8x1xf32> -> vector<8x1xf32>
    %499 = vector.broadcast %498 : vector<8x1xf32> to vector<8x64xf32>
    %500 = arith.mulf %495, %499 : vector<8x64xf32>
    %501 = vector.extract_strided_slice %440 {offsets = [0, 24], sizes = [64, 8], strides = [1, 1]} : vector<64x32xf32> to vector<64x8xf32>
    %cst_174 = arith.constant dense<0.000000e+00> : vector<8x8xf32>
    %502 = tpu.matmul %500, %501, %cst_174 {dimension_numbers = #tpu.dot_dimension_numbers<[1], [0], [0], [1], [0, 0, 1, 1], [], []>} : vector<8x64xf32>, vector<64x8xf32>, vector<8x8xf32> -> vector<8x8xf32>
    %503 = tpu.concatenate %457, %472, %487, %502 in 1 : vector<8x8xf32>, vector<8x8xf32>, vector<8x8xf32>, vector<8x8xf32> -> vector<8x32xf32>
    %cst_175 = arith.constant dense<0.000000e+00> : vector<8x32xf32>
    %504 = tpu.matmul %503, %424, %cst_175 {dimension_numbers = #tpu.dot_dimension_numbers<[1], [0], [0], [1], [0, 0, 1, 1], [], []>} : vector<8x32xf32>, vector<32x32xf32>, vector<8x32xf32> -> vector<8x32xf32>
    %505 = vector.broadcast %425 : vector<1x32xf32> to vector<8x32xf32>
    %506 = arith.addf %504, %505 : vector<8x32xf32>
    %507 = arith.addf %420, %506 : vector<8x32xf32>
    %c336 = arith.constant 336 : index
    %c0_176 = arith.constant 0 : index
    %508 = vector.load %arg5[%c336, %c0_176] : memref<1728x32xf32, #tpu.memory_space<vmem>>, vector<1x32xf32>
    %c328 = arith.constant 328 : index
    %c0_177 = arith.constant 0 : index
    %509 = vector.load %arg5[%c328, %c0_177] : memref<1728x32xf32, #tpu.memory_space<vmem>>, vector<1x32xf32>
    %cst_178 = arith.constant dense<0.000000e+00> : vector<8xf32>
    %510 = vector.multi_reduction <add>, %507, %cst_178 [1] : vector<8x32xf32> to vector<8xf32>
    %511 = vector.shape_cast %510 : vector<8xf32> to vector<8x1xf32>
    %cst_179 = arith.constant 3.200000e+01 : f32
    %512 = vector.broadcast %cst_179 : f32 to vector<8x1xf32>
    %513 = arith.divf %511, %512 : vector<8x1xf32>
    %514 = vector.broadcast %513 : vector<8x1xf32> to vector<8x32xf32>
    %515 = arith.subf %507, %514 : vector<8x32xf32>
    %516 = arith.mulf %515, %515 : vector<8x32xf32>
    %cst_180 = arith.constant dense<0.000000e+00> : vector<8xf32>
    %517 = vector.multi_reduction <add>, %516, %cst_180 [1] : vector<8x32xf32> to vector<8xf32>
    %518 = vector.shape_cast %517 : vector<8xf32> to vector<8x1xf32>
    %cst_181 = arith.constant 3.200000e+01 : f32
    %519 = vector.broadcast %cst_181 : f32 to vector<8x1xf32>
    %520 = arith.divf %518, %519 : vector<8x1xf32>
    %521 = vector.broadcast %513 : vector<8x1xf32> to vector<8x32xf32>
    %522 = arith.subf %507, %521 : vector<8x32xf32>
    %cst_182 = arith.constant 9.99999974E-6 : f32
    %523 = vector.broadcast %cst_182 : f32 to vector<8x1xf32>
    %524 = arith.addf %520, %523 : vector<8x1xf32>
    %525 = math.rsqrt %524 : vector<8x1xf32>
    %526 = vector.broadcast %525 : vector<8x1xf32> to vector<8x32xf32>
    %527 = arith.mulf %522, %526 : vector<8x32xf32>
    %528 = vector.broadcast %508 : vector<1x32xf32> to vector<8x32xf32>
    %529 = arith.mulf %527, %528 : vector<8x32xf32>
    %530 = vector.broadcast %509 : vector<1x32xf32> to vector<8x32xf32>
    %531 = arith.addf %529, %530 : vector<8x32xf32>
    %c48_183 = arith.constant 48 : index
    %c0_184 = arith.constant 0 : index
    %532 = vector.load %arg6[%c48_183, %c0_184] : memref<80x64xf32, #tpu.memory_space<vmem>>, vector<32x64xf32>
    %cst_185 = arith.constant dense<0.000000e+00> : vector<8x64xf32>
    %533 = tpu.matmul %531, %532, %cst_185 {dimension_numbers = #tpu.dot_dimension_numbers<[1], [0], [0], [1], [0, 0, 1, 1], [], []>} : vector<8x32xf32>, vector<32x64xf32>, vector<8x64xf32> -> vector<8x64xf32>
    %c40_186 = arith.constant 40 : index
    %c0_187 = arith.constant 0 : index
    %534 = vector.load %arg6[%c40_186, %c0_187] : memref<80x64xf32, #tpu.memory_space<vmem>>, vector<1x64xf32>
    %535 = vector.broadcast %534 : vector<1x64xf32> to vector<8x64xf32>
    %536 = arith.addf %533, %535 : vector<8x64xf32>
    %cst_188 = arith.constant 0.000000e+00 : f32
    %537 = vector.broadcast %cst_188 : f32 to vector<8x64xf32>
    %538 = arith.maximumf %536, %537 : vector<8x64xf32>
    %c248 = arith.constant 248 : index
    %c0_189 = arith.constant 0 : index
    %539 = vector.load %arg5[%c248, %c0_189] : memref<1728x32xf32, #tpu.memory_space<vmem>>, vector<64x32xf32>
    %cst_190 = arith.constant dense<0.000000e+00> : vector<8x32xf32>
    %540 = tpu.matmul %538, %539, %cst_190 {dimension_numbers = #tpu.dot_dimension_numbers<[1], [0], [0], [1], [0, 0, 1, 1], [], []>} : vector<8x64xf32>, vector<64x32xf32>, vector<8x32xf32> -> vector<8x32xf32>
    %c240 = arith.constant 240 : index
    %c0_191 = arith.constant 0 : index
    %541 = vector.load %arg5[%c240, %c0_191] : memref<1728x32xf32, #tpu.memory_space<vmem>>, vector<1x32xf32>
    %542 = vector.broadcast %541 : vector<1x32xf32> to vector<8x32xf32>
    %543 = arith.addf %540, %542 : vector<8x32xf32>
    %544 = arith.addf %531, %543 : vector<8x32xf32>
    %c352 = arith.constant 352 : index
    %c0_192 = arith.constant 0 : index
    %545 = vector.load %arg5[%c352, %c0_192] : memref<1728x32xf32, #tpu.memory_space<vmem>>, vector<1x32xf32>
    %c344 = arith.constant 344 : index
    %c0_193 = arith.constant 0 : index
    %546 = vector.load %arg5[%c344, %c0_193] : memref<1728x32xf32, #tpu.memory_space<vmem>>, vector<1x32xf32>
    %cst_194 = arith.constant dense<0.000000e+00> : vector<8xf32>
    %547 = vector.multi_reduction <add>, %544, %cst_194 [1] : vector<8x32xf32> to vector<8xf32>
    %548 = vector.shape_cast %547 : vector<8xf32> to vector<8x1xf32>
    %cst_195 = arith.constant 3.200000e+01 : f32
    %549 = vector.broadcast %cst_195 : f32 to vector<8x1xf32>
    %550 = arith.divf %548, %549 : vector<8x1xf32>
    %551 = vector.broadcast %550 : vector<8x1xf32> to vector<8x32xf32>
    %552 = arith.subf %544, %551 : vector<8x32xf32>
    %553 = arith.mulf %552, %552 : vector<8x32xf32>
    %cst_196 = arith.constant dense<0.000000e+00> : vector<8xf32>
    %554 = vector.multi_reduction <add>, %553, %cst_196 [1] : vector<8x32xf32> to vector<8xf32>
    %555 = vector.shape_cast %554 : vector<8xf32> to vector<8x1xf32>
    %cst_197 = arith.constant 3.200000e+01 : f32
    %556 = vector.broadcast %cst_197 : f32 to vector<8x1xf32>
    %557 = arith.divf %555, %556 : vector<8x1xf32>
    %558 = vector.broadcast %550 : vector<8x1xf32> to vector<8x32xf32>
    %559 = arith.subf %544, %558 : vector<8x32xf32>
    %cst_198 = arith.constant 9.99999974E-6 : f32
    %560 = vector.broadcast %cst_198 : f32 to vector<8x1xf32>
    %561 = arith.addf %557, %560 : vector<8x1xf32>
    %562 = math.rsqrt %561 : vector<8x1xf32>
    %563 = vector.broadcast %562 : vector<8x1xf32> to vector<8x32xf32>
    %564 = arith.mulf %559, %563 : vector<8x32xf32>
    %565 = vector.broadcast %545 : vector<1x32xf32> to vector<8x32xf32>
    %566 = arith.mulf %564, %565 : vector<8x32xf32>
    %567 = vector.broadcast %546 : vector<1x32xf32> to vector<8x32xf32>
    %568 = arith.addf %566, %567 : vector<8x32xf32>
    %cst_199 = arith.constant dense<0.000000e+00> : vector<8xf32>
    %569 = vector.multi_reduction <add>, %568, %cst_199 [1] : vector<8x32xf32> to vector<8xf32>
    %570 = vector.shape_cast %569 : vector<8xf32> to vector<8x1xf32>
    %cst_200 = arith.constant 3.200000e+01 : f32
    %571 = vector.broadcast %cst_200 : f32 to vector<8x1xf32>
    %572 = arith.divf %570, %571 : vector<8x1xf32>
    %573 = vector.broadcast %572 : vector<8x1xf32> to vector<8x32xf32>
    %574 = arith.subf %568, %573 : vector<8x32xf32>
    %575 = arith.mulf %574, %574 : vector<8x32xf32>
    %cst_201 = arith.constant dense<0.000000e+00> : vector<8xf32>
    %576 = vector.multi_reduction <add>, %575, %cst_201 [1] : vector<8x32xf32> to vector<8xf32>
    %577 = vector.shape_cast %576 : vector<8xf32> to vector<8x1xf32>
    %cst_202 = arith.constant 3.200000e+01 : f32
    %578 = vector.broadcast %cst_202 : f32 to vector<8x1xf32>
    %579 = arith.divf %577, %578 : vector<8x1xf32>
    %580 = vector.broadcast %572 : vector<8x1xf32> to vector<8x32xf32>
    %581 = arith.subf %568, %580 : vector<8x32xf32>
    %cst_203 = arith.constant 9.99999974E-6 : f32
    %582 = vector.broadcast %cst_203 : f32 to vector<8x1xf32>
    %583 = arith.addf %579, %582 : vector<8x1xf32>
    %584 = math.rsqrt %583 : vector<8x1xf32>
    %585 = vector.broadcast %584 : vector<8x1xf32> to vector<8x32xf32>
    %586 = arith.mulf %581, %585 : vector<8x32xf32>
    %587 = vector.broadcast %31 : vector<1x32xf32> to vector<8x32xf32>
    %588 = arith.mulf %586, %587 : vector<8x32xf32>
    %589 = vector.broadcast %32 : vector<1x32xf32> to vector<8x32xf32>
    %590 = arith.addf %588, %589 : vector<8x32xf32>
    %c8_204 = arith.constant 8 : index
    %c0_205 = arith.constant 0 : index
    %591 = vector.load %arg11[%c8_204, %c0_205] : memref<16x32xf32, #tpu.memory_space<vmem>>, vector<8x32xf32>
    tpu.vector_store %arg11[%c8_204, %c0_205], %590 {strides = array<i32>} : memref<16x32xf32, #tpu.memory_space<vmem>>, vector<8x32xf32>,
    %c0_206 = arith.constant 0 : index
    %c0_207 = arith.constant 0 : index
    %592 = vector.load %arg11[%c0_206, %c0_207] : memref<16x32xf32, #tpu.memory_space<vmem>>, vector<16x32xf32>
    %c320_208 = arith.constant 320 : index
    %c0_209 = arith.constant 0 : index
    %593 = vector.load %arg8[%c320_208, %c0_209] : memref<608x256xf32, #tpu.memory_space<vmem>>, vector<32x256xf32>
    %cst_210 = arith.constant dense<0.000000e+00> : vector<16x256xf32>
    %594 = tpu.matmul %592, %593, %cst_210 {dimension_numbers = #tpu.dot_dimension_numbers<[1], [0], [0], [1], [0, 0, 1, 1], [], []>} : vector<16x32xf32>, vector<32x256xf32>, vector<16x256xf32> -> vector<16x256xf32>
    %c304 = arith.constant 304 : index
    %c0_211 = arith.constant 0 : index
    %595 = vector.load %arg8[%c304, %c0_211] : memref<608x256xf32, #tpu.memory_space<vmem>>, vector<1x256xf32>
    %596 = vector.broadcast %595 : vector<1x256xf32> to vector<16x256xf32>
    %597 = arith.addf %594, %596 : vector<16x256xf32>
    %cst_212 = arith.constant 0.000000e+00 : f32
    %598 = vector.broadcast %cst_212 : f32 to vector<16x256xf32>
    %599 = arith.maximumf %597, %598 : vector<16x256xf32>
    %c352_213 = arith.constant 352 : index
    %c0_214 = arith.constant 0 : index
    %600 = vector.load %arg8[%c352_213, %c0_214] : memref<608x256xf32, #tpu.memory_space<vmem>>, vector<256x256xf32>
    %cst_215 = arith.constant dense<0.000000e+00> : vector<16x256xf32>
    %601 = tpu.matmul %599, %600, %cst_215 {dimension_numbers = #tpu.dot_dimension_numbers<[1], [0], [0], [1], [0, 0, 1, 1], [], []>} : vector<16x256xf32>, vector<256x256xf32>, vector<16x256xf32> -> vector<16x256xf32>
    %c312_216 = arith.constant 312 : index
    %c0_217 = arith.constant 0 : index
    %602 = vector.load %arg8[%c312_216, %c0_217] : memref<608x256xf32, #tpu.memory_space<vmem>>, vector<1x256xf32>
    %603 = vector.broadcast %602 : vector<1x256xf32> to vector<16x256xf32>
    %604 = arith.addf %601, %603 : vector<16x256xf32>
    %cst_218 = arith.constant 0.000000e+00 : f32
    %605 = vector.broadcast %cst_218 : f32 to vector<16x256xf32>
    %606 = arith.maximumf %604, %605 : vector<16x256xf32>
    %c688 = arith.constant 688 : index
    %c0_219 = arith.constant 0 : index
    %607 = vector.load %arg5[%c688, %c0_219] : memref<1728x32xf32, #tpu.memory_space<vmem>>, vector<256x32xf32>
    %cst_220 = arith.constant dense<0.000000e+00> : vector<16x32xf32>
    %608 = tpu.matmul %606, %607, %cst_220 {dimension_numbers = #tpu.dot_dimension_numbers<[1], [0], [0], [1], [0, 0, 1, 1], [], []>} : vector<16x256xf32>, vector<256x32xf32>, vector<16x32xf32> -> vector<16x32xf32>
    %c680 = arith.constant 680 : index
    %c0_221 = arith.constant 0 : index
    %609 = vector.load %arg5[%c680, %c0_221] : memref<1728x32xf32, #tpu.memory_space<vmem>>, vector<1x32xf32>
    %610 = vector.broadcast %609 : vector<1x32xf32> to vector<16x32xf32>
    %611 = arith.addf %608, %610 : vector<16x32xf32>
    %612 = arith.mulf %611, %611 : vector<16x32xf32>
    %cst_222 = arith.constant dense<0.000000e+00> : vector<16xf32>
    %613 = vector.multi_reduction <add>, %612, %cst_222 [1] : vector<16x32xf32> to vector<16xf32>
    %614 = vector.shape_cast %613 : vector<16xf32> to vector<16x1xf32>
    %cst_223 = arith.constant 1.000000e-24 : f32
    %615 = vector.broadcast %cst_223 : f32 to vector<16x1xf32>
    %616 = arith.addf %614, %615 : vector<16x1xf32>
    %617 = math.rsqrt %616 : vector<16x1xf32>
    %618 = vector.broadcast %617 : vector<16x1xf32> to vector<16x32xf32>
    %619 = arith.mulf %611, %618 : vector<16x32xf32>
    %cst_224 = arith.constant dense<0.000000e+00> : vector<16x64xf32>
    %620 = tpu.matmul %619, %28, %cst_224 {dimension_numbers = #tpu.dot_dimension_numbers<[1], [1], [0], [0], [0, 0, 1, 0], [], []>} : vector<16x32xf32>, vector<64x32xf32>, vector<16x64xf32> -> vector<16x64xf32>
    %cst_225 = arith.constant 0.000000e+00 : f32
    %621 = vector.broadcast %cst_225 : f32 to vector<16x64xf32>
    %622 = arith.subf %621, %620 : vector<16x64xf32>
    %623 = math.exp %622 : vector<16x64xf32>
    %cst_226 = arith.constant 1.000000e+00 : f32
    %624 = vector.broadcast %cst_226 : f32 to vector<16x64xf32>
    %625 = arith.addf %624, %623 : vector<16x64xf32>
    %cst_227 = arith.constant 1.000000e+00 : f32
    %626 = vector.broadcast %cst_227 : f32 to vector<16x64xf32>
    %627 = arith.divf %626, %625 : vector<16x64xf32>
    %628 = vector.extract_strided_slice %627 {offsets = [0, 0], sizes = [8, 64], strides = [1, 1]} : vector<16x64xf32> to vector<8x64xf32>
    %629 = vector.extract_strided_slice %627 {offsets = [8, 0], sizes = [8, 64], strides = [1, 1]} : vector<16x64xf32> to vector<8x64xf32>
    %630 = tpu.concatenate %628, %629 in 1 : vector<8x64xf32>, vector<8x64xf32> -> vector<8x128xf32>
    %c0_228 = arith.constant 0 : index
    %c0_229 = arith.constant 0 : index
    %c0_230 = arith.constant 0 : index
    %631 = vector.load %arg9[%c0_228, %c0_229, %c0_230] : memref<1x8x128xf32, #tpu.memory_space<vmem>>, vector<1x8x128xf32>
    %632 = vector.shape_cast %631 : vector<1x8x128xf32> to vector<8x128xf32>
    %633 = vector.shape_cast %630 : vector<8x128xf32> to vector<1x8x128xf32>
    tpu.vector_store %arg9[%c0_228, %c0_229, %c0_230], %633 {strides = array<i32>} : memref<1x8x128xf32, #tpu.memory_space<vmem>>, vector<1x8x128xf32>,
    %c0_231 = arith.constant 0 : index
    %c0_232 = arith.constant 0 : index
    %634 = vector.load %arg4[%c0_231, %c0_232] : memref<32x16xf32, #tpu.memory_space<vmem>>, vector<32x16xf32>
    %cst_233 = arith.constant dense<0.000000e+00> : vector<64x16xf32>
    %635 = tpu.matmul %9, %634, %cst_233 {dimension_numbers = #tpu.dot_dimension_numbers<[1], [0], [0], [1], [0, 0, 1, 1], [], []>} : vector<64x32xf32>, vector<32x16xf32>, vector<64x16xf32> -> vector<64x16xf32>
    %cst_234 = arith.constant dense<0.000000e+00> : vector<64xf32>
    %636 = vector.multi_reduction <add>, %635, %cst_234 [1] : vector<64x16xf32> to vector<64xf32>
    %637 = vector.shape_cast %636 : vector<64xf32> to vector<64x1xf32>
    %cst_235 = arith.constant dense<0.000000e+00> : vector<1xf32>
    %638 = vector.multi_reduction <add>, %637, %cst_235 [0] : vector<64x1xf32> to vector<1xf32>
    %639 = vector.shape_cast %638 : vector<1xf32> to vector<1x1xf32>
    %cst_236 = arith.constant 1.024000e+03 : f32
    %640 = vector.broadcast %cst_236 : f32 to vector<1x1xf32>
    %641 = arith.divf %639, %640 : vector<1x1xf32>
    %642 = vector.broadcast %641 : vector<1x1xf32> to vector<64x16xf32>
    %643 = arith.subf %635, %642 : vector<64x16xf32>
    %644 = arith.mulf %643, %643 : vector<64x16xf32>
    %cst_237 = arith.constant dense<0.000000e+00> : vector<64xf32>
    %645 = vector.multi_reduction <add>, %644, %cst_237 [1] : vector<64x16xf32> to vector<64xf32>
    %646 = vector.shape_cast %645 : vector<64xf32> to vector<64x1xf32>
    %cst_238 = arith.constant dense<0.000000e+00> : vector<1xf32>
    %647 = vector.multi_reduction <add>, %646, %cst_238 [0] : vector<64x1xf32> to vector<1xf32>
    %648 = vector.shape_cast %647 : vector<1xf32> to vector<1x1xf32>
    %cst_239 = arith.constant 1.024000e+03 : f32
    %649 = vector.broadcast %cst_239 : f32 to vector<1x1xf32>
    %650 = arith.divf %648, %649 : vector<1x1xf32>
    %cst_240 = arith.constant 9.99999974E-6 : f32
    %651 = vector.broadcast %cst_240 : f32 to vector<1x1xf32>
    %652 = arith.addf %650, %651 : vector<1x1xf32>
    %653 = math.rsqrt %652 : vector<1x1xf32>
    %654 = vector.broadcast %653 : vector<1x1xf32> to vector<64x16xf32>
    %655 = arith.mulf %643, %654 : vector<64x16xf32>
    %656 = arith.mulf %655, %655 : vector<64x16xf32>
    %cst_241 = arith.constant dense<0.000000e+00> : vector<64xf32>
    %657 = vector.multi_reduction <add>, %656, %cst_241 [1] : vector<64x16xf32> to vector<64xf32>
    %658 = vector.shape_cast %657 : vector<64xf32> to vector<64x1xf32>
    %cst_242 = arith.constant 9.99999996E-13 : f32
    %659 = vector.broadcast %cst_242 : f32 to vector<64x1xf32>
    %660 = arith.addf %658, %659 : vector<64x1xf32>
    %661 = math.rsqrt %660 : vector<64x1xf32>
    %662 = vector.broadcast %661 : vector<64x1xf32> to vector<64x16xf32>
    %663 = arith.mulf %655, %662 : vector<64x16xf32>
    %664 = vector.extract_strided_slice %663 {offsets = [0, 0], sizes = [8, 16], strides = [1, 1]} : vector<64x16xf32> to vector<8x16xf32>
    %665 = vector.extract_strided_slice %663 {offsets = [8, 0], sizes = [8, 16], strides = [1, 1]} : vector<64x16xf32> to vector<8x16xf32>
    %666 = vector.extract_strided_slice %663 {offsets = [16, 0], sizes = [8, 16], strides = [1, 1]} : vector<64x16xf32> to vector<8x16xf32>
    %667 = vector.extract_strided_slice %663 {offsets = [24, 0], sizes = [8, 16], strides = [1, 1]} : vector<64x16xf32> to vector<8x16xf32>
    %668 = vector.extract_strided_slice %663 {offsets = [32, 0], sizes = [8, 16], strides = [1, 1]} : vector<64x16xf32> to vector<8x16xf32>
    %669 = vector.extract_strided_slice %663 {offsets = [40, 0], sizes = [8, 16], strides = [1, 1]} : vector<64x16xf32> to vector<8x16xf32>
    %670 = vector.extract_strided_slice %663 {offsets = [48, 0], sizes = [8, 16], strides = [1, 1]} : vector<64x16xf32> to vector<8x16xf32>
    %671 = vector.extract_strided_slice %663 {offsets = [56, 0], sizes = [8, 16], strides = [1, 1]} : vector<64x16xf32> to vector<8x16xf32>
    %672 = tpu.concatenate %664, %665, %666, %667, %668, %669, %670, %671 in 1 : vector<8x16xf32>, vector<8x16xf32>, vector<8x16xf32>, vector<8x16xf32>, vector<8x16xf32>, vector<8x16xf32>, vector<8x16xf32>, vector<8x16xf32> -> vector<8x128xf32>
    %c0_243 = arith.constant 0 : index
    %c0_244 = arith.constant 0 : index
    %c0_245 = arith.constant 0 : index
    %673 = vector.load %arg10[%c0_243, %c0_244, %c0_245] : memref<1x8x128xf32, #tpu.memory_space<vmem>>, vector<1x8x128xf32>
    %674 = vector.shape_cast %673 : vector<1x8x128xf32> to vector<8x128xf32>
    %675 = vector.shape_cast %672 : vector<8x128xf32> to vector<1x8x128xf32>
    tpu.vector_store %arg10[%c0_243, %c0_244, %c0_245], %675 {strides = array<i32>} : memref<1x8x128xf32, #tpu.memory_space<vmem>>, vector<1x8x128xf32>,
    return
  }
  func.func @transform_0(%arg0: i32) -> (i32, i32, i32) {
    %c0_i32 = arith.constant 0 : i32
    %c0_i32_0 = arith.constant 0 : i32
    %c0_i32_1 = arith.constant 0 : i32
    return %arg0, %c0_i32, %c0_i32_0 : i32, i32, i32
  }
  func.func @transform_1(%arg0: i32) -> (i32, i32) {
    %c0_i32 = arith.constant 0 : i32
    %c0_i32_0 = arith.constant 0 : i32
    %c0_i32_1 = arith.constant 0 : i32
    return %c0_i32, %c0_i32_0 : i32, i32
  }
  func.func @transform_2(%arg0: i32) -> (i32, i32) {
    %c0_i32 = arith.constant 0 : i32
    %c0_i32_0 = arith.constant 0 : i32
    %c0_i32_1 = arith.constant 0 : i32
    return %c0_i32, %c0_i32_0 : i32, i32
  }
  func.func @transform_3(%arg0: i32) -> (i32, i32) {
    %c0_i32 = arith.constant 0 : i32
    %c0_i32_0 = arith.constant 0 : i32
    %c0_i32_1 = arith.constant 0 : i32
    return %c0_i32, %c0_i32_0 : i32, i32
  }
  func.func @transform_4(%arg0: i32) -> (i32, i32) {
    %c0_i32 = arith.constant 0 : i32
    %c0_i32_0 = arith.constant 0 : i32
    %c0_i32_1 = arith.constant 0 : i32
    return %c0_i32, %c0_i32_0 : i32, i32
  }
  func.func @transform_5(%arg0: i32) -> (i32, i32) {
    %c0_i32 = arith.constant 0 : i32
    %c0_i32_0 = arith.constant 0 : i32
    %c0_i32_1 = arith.constant 0 : i32
    return %c0_i32, %c0_i32_0 : i32, i32
  }
  func.func @transform_6(%arg0: i32) -> (i32, i32) {
    %c0_i32 = arith.constant 0 : i32
    %c0_i32_0 = arith.constant 0 : i32
    %c0_i32_1 = arith.constant 0 : i32
    return %c0_i32, %c0_i32_0 : i32, i32
  }
  func.func @transform_7(%arg0: i32) -> (i32, i32) {
    %c0_i32 = arith.constant 0 : i32
    %c0_i32_0 = arith.constant 0 : i32
    %c0_i32_1 = arith.constant 0 : i32
    return %c0_i32, %c0_i32_0 : i32, i32
  }
  func.func @transform_8(%arg0: i32) -> (i32, i32, i32) {
    %c0_i32 = arith.constant 0 : i32
    %c0_i32_0 = arith.constant 0 : i32
    %c0_i32_1 = arith.constant 0 : i32
    return %arg0, %c0_i32, %c0_i32_0 : i32, i32, i32
  }
  func.func @transform_9(%arg0: i32) -> (i32, i32, i32) {
    %c0_i32 = arith.constant 0 : i32
    %c0_i32_0 = arith.constant 0 : i32
    %c0_i32_1 = arith.constant 0 : i32
    return %arg0, %c0_i32, %c0_i32_0 : i32, i32, i32
  }
}

</mosaic_0001>

<bundles_post_ra>
// kernel: zutis_forward.1
= control target key start
LH: loop header
LB: loop body
LE: loop exit
PB: predicated region body
PF: predicated region fallthrough
CT: control target
= control target key end

     0   :  { %s9884_s30 = smov 0   ;;  %s12345_s0 = inlined_call_operand.vmem [shape: f32[2,16,768], index: 0, kind: input, shape index: {}]   ;;  %s12346_s1 = inlined_call_operand.vmem [shape: f32[64,16], index: 1, kind: input, shape index: {}]   ;;  %s12347_s2 = inlined_call_operand.vmem [shape: f32[64,32], index: 2, kind: input, shape index: {}]   ;;  %s12348_s3 = inlined_call_operand.vmem [shape: f32[32,16], index: 3, kind: input, shape index: {}]   ;;  %s12349_s4 = inlined_call_operand.vmem [shape: f32[1728,32], index: 4, kind: input, shape index: {}]   ;;  %s12350_s5 = inlined_call_operand.vmem [shape: f32[80,64], index: 5, kind: input, shape index: {}]   ;;  %s12351_s6 = inlined_call_operand.vmem [shape: f32[160,96], index: 6, kind: input, shape index: {}]   ;;  %s12352_s7 = inlined_call_operand.vmem [shape: f32[608,256], index: 7, kind: input, shape index: {}]   ;;  %s12353_s8 = inlined_call_operand.vmem [shape: f32[2,8,128], index: 8, kind: output, shape index: {0}]   ;;  %s12354_s9 = inlined_call_operand.vmem [shape: f32[2,8,128], index: 9, kind: output, shape index: {1}]  }
   0x1 LB: > { %s7208_s10 = sadd.s32 4294967295, %s9816_s30   ;;  %p7212_p0 = scmp.ge.s32.totalorder %s9816_s30, 1  ;;  %s9816_s30 = sphi %s9884_s30, %s20_s30  }
   0x2   : > { %p290_p1 = scmp.lt.s32.totalorder %s9816_s30, 3 }
   0x4   : > { %p291_p2 = pnand %p7212_p0, %p290_p1 }
   0x5   : > { %v386_v0 = vld [vmem:[%s12349_s4 + $0x438] sm:$0xff] (!%p291_p2)  ;;  %v387_v1 = vld [vmem:[%s12349_s4 + $0x440] sm:$0xff] (!%p291_p2)  ;;  %v388_v11 = vld [vmem:[%s12349_s4 + $0x448] sm:$0xff] (!%p291_p2)  ;;  %p9948_p3 = scmp.lt.s32.totalorder (!%p291_p2), %s7208_s10, 1  ;;  %vm696_vm0 = vcmask (!%p291_p2), 130048   ;;  %vm846_vm1 = vcmask (!%p291_p2), 261120  }
   0x6   : > { %294 = sbr.rel (%p291_p2) target bundleno = 14641 (0x3931), region = 52  ;;  %v370_v2 = vld [vmem:[%s12349_s4 + $0x3b8] sm:$0xff] (!%p291_p2)  ;;  %v8666_v3 = vpack.c.bf16 (!%p291_p2), %v387_v1, %v386_v0  ;;  %v371_v4 = vld [vmem:[%s12349_s4 + $0x3c0] sm:$0xff] (!%p291_p2)  ;;  %v389_v13 = vld [vmem:[%s12349_s4 + $0x450] sm:$0xff] (!%p291_p2)  ;;  %vm9820_vm2 = vmmov (!%p291_p2), 0   ;;  %s9821_s18 = smov (!%p291_p2), 64  }
   0x7   : > { %v418_v5 = vld [vmem:[%s12349_s4 + $0x538] sm:$0xff] (!%p291_p2)  ;;  %v419_v6 = vld [vmem:[%s12349_s4 + $0x540] sm:$0xff] (!%p291_p2)  ;;  %v8668_v7 = vpack.c.bf16 (!%p291_p2), %v371_v4, %v370_v2  ;;  %v372_v14 = vld [vmem:[%s12349_s4 + $0x3c8] sm:$0xff] (!%p291_p2)  ;;  %v8670_v16 = vpack.c.bf16 (!%p291_p2), %v389_v13, %v388_v11  ;;  %s9822_s21 = smov (!%p291_p2), 96   ;;  %vm1544_vm3 = vcmask (!%p291_p2), 64512   ;;  %s9823_s22 = smov (!%p291_p2), 88  }
   0x8   : > { %v8698_v8 = vpack.c.bf16 (!%p291_p2), %v419_v6, %v418_v5  ;;  %v402_v9 = vld [vmem:[%s12349_s4 + $0x4b8] sm:$0xff] (!%p291_p2)  ;;  %v403_v10 = vld [vmem:[%s12349_s4 + $0x4c0] sm:$0xff] (!%p291_p2)  ;;  %8667 = vmatprep.subr.bf16.mxu0 (!%p291_p2), %v8666_v3  ;;  %v373_v15 = vld [vmem:[%s12349_s4 + $0x3d0] sm:$0xff] (!%p291_p2)  ;;  %s9824_s23 = smov (!%p291_p2), 120   ;;  %s9825_s28 = smov (!%p291_p2), 112   ;;  %vm2214_vm4 = vcmask (!%p291_p2), 195584  }
   0x9   : > { %v8700_v12 = vpack.c.bf16 (!%p291_p2), %v403_v10, %v402_v9  ;;  %8669 = vmatpush3.bf16.msra.mxu0 (!%p291_p2), %v8668_v7  ;;  %v8672_v17 = vpack.c.bf16 (!%p291_p2), %v373_v15, %v372_v14  ;;  %v420_v18 = vld [vmem:[%s12349_s4 + $0x548] sm:$0xff] (!%p291_p2)  ;;  %v421_v19 = vld [vmem:[%s12349_s4 + $0x550] sm:$0xff] (!%p291_p2)  ;;  %v390_v23 = vld [vmem:[%s12349_s4 + $0x458] sm:$0xff] (!%p291_p2)  ;;  %s9827_s24 = smov (!%p291_p2), 80   ;;  %s9828_s25 = smov (!%p291_p2), 72   ;;  %vm2799_vm6 = vcmask (!%p291_p2), 523264  }
   0xa   : > { %8699 = vmatprep.subr.bf16.mxu1 (!%p291_p2), %v8698_v8  ;;  %v404_v20 = vld [vmem:[%s12349_s4 + $0x4c8] sm:$0xff] (!%p291_p2)  ;;  %v8702_v21 = vpack.c.bf16 (!%p291_p2), %v421_v19, %v420_v18  ;;  %v405_v22 = vld [vmem:[%s12349_s4 + $0x4d0] sm:$0xff] (!%p291_p2)  ;;  %v391_v24 = vld [vmem:[%s12349_s4 + $0x460] sm:$0xff] (!%p291_p2)  ;;  %8671 = vmatprep.subr.bf16.mxu0 (!%p291_p2), %v8670_v16  ;;  %s9829_s17 = smov (!%p291_p2), 8   ;;  %s9830_s19 = smov (!%p291_p2), 16   ;;  %vm7114_vm8 = vcmask (!%p291_p2), 392192  }
   0xb   : > { %8701 = vmatpush3.bf16.msra.mxu1 (!%p291_p2), %v8700_v12  ;;  %v8704_v25 = vpack.c.bf16 (!%p291_p2), %v405_v22, %v404_v20  ;;  %v8674_v26 = vpack.c.bf16 (!%p291_p2), %v391_v24, %v390_v23  ;;  %v374_v27 = vld [vmem:[%s12349_s4 + $0x3d8] sm:$0xff] (!%p291_p2)  ;;  %v375_v28 = vld [vmem:[%s12349_s4 + $0x3e0] sm:$0xff] (!%p291_p2)  ;;  %v392_v35 = vld [vmem:[%s12349_s4 + $0x468] sm:$0xff] (!%p291_p2)  ;;  %s12355_s29 = smov (!%p291_p2), 24   ;;  %s9832_s11 = smov (!%p291_p2), 32   ;;  %vm7117_vm9 = vcmask (!%p291_p2), 654336  }
   0xc   : > { %v422_v29 = vld [vmem:[%s12349_s4 + $0x558] sm:$0xff] (!%p291_p2)  ;;  %8703 = vmatprep.subr.bf16.mxu1 (!%p291_p2), %v8702_v21  ;;  %v423_v30 = vld [vmem:[%s12349_s4 + $0x560] sm:$0xff] (!%p291_p2)  ;;  %v8676_v33 = vpack.c.bf16 (!%p291_p2), %v375_v28, %v374_v27  ;;  %v393_v36 = vld [vmem:[%s12349_s4 + $0x470] sm:$0xff] (!%p291_p2)  ;;  %s9833_s12 = smov (!%p291_p2), 48   ;;  %vm7119_vm10 = vcmask (!%p291_p2), 785408   ;;  %vm7121_vm11 = vcmask (!%p291_p2), 916480  }
   0xd   : > { %v406_v31 = vld [vmem:[%s12349_s4 + $0x4d8] sm:$0xff]  ;;  %v407_v32 = vld [vmem:[%s12349_s4 + $0x4e0] sm:$0xff]  ;;  %8673 = vmatpush3.bf16.msra.mxu0 %v8672_v17  ;;  %v8706_v34 = vpack.c.bf16 %v423_v30, %v422_v29  ;;  %v376_v37 = vld [vmem:[%s12349_s4 + $0x3e8] sm:$0xff]  ;;  %v8678_v39 = vpack.c.bf16 %v393_v36, %v392_v35  ;;  %s12364_s10 = smov (!%p9948_p3, %s7208_s10), 1 }
   0xe   : > { %8675 = vmatprep.subr.bf16.mxu0 %v8674_v26  ;;  %v8708_v38 = vpack.c.bf16 %v407_v32, %v406_v31  ;;  %v377_v40 = vld [vmem:[%s12349_s4 + $0x3f0] sm:$0xff]  ;;  %v424_v41 = vld [vmem:[%s12349_s4 + $0x568] sm:$0xff]  ;;  %v394_v46 = vld [vmem:[%s12349_s4 + $0x478] sm:$0xff]  ;;  %s9374_s15 = smul.u32 96, %s12364_s10 }
   0xf   : > { %8705 = vmatpush3.bf16.msra.mxu1 %v8704_v25  ;;  %v425_v42 = vld [vmem:[%s12349_s4 + $0x570] sm:$0xff]  ;;  %v408_v44 = vld [vmem:[%s12349_s4 + $0x4e8] sm:$0xff]  ;;  %v395_v47 = vld [vmem:[%s12349_s4 + $0x480] sm:$0xff]  ;;  %v8680_v48 = vpack.c.bf16 %v377_v40, %v376_v37 }
  0x10   : > { %8707 = vmatprep.subr.bf16.mxu1 %v8706_v34  ;;  %v8710_v43 = vpack.c.bf16 %v425_v42, %v424_v41  ;;  %v409_v45 = vld [vmem:[%s12349_s4 + $0x4f0] sm:$0xff]  ;;  %v426_v49 = vld [vmem:[%s12349_s4 + $0x578] sm:$0xff]  ;;  %v427_v50 = vld [vmem:[%s12349_s4 + $0x580] sm:$0xff]  ;;  %v8682_v52 = vpack.c.bf16 %v395_v47, %v394_v46  ;;  %s10049_s16 = scalar_lea.vmem %s12345_s0, %s9374_s15  ;;  %s9826_s15 = smov 104  }
  0x11   : > { %8677 = vmatpush3.bf16.msra.mxu0 %v8676_v33  ;;  %v8712_v51 = vpack.c.bf16 %v409_v45, %v408_v44  ;;  %v378_v53 = vld [vmem:[%s12349_s4 + $0x3f8] sm:$0xff]  ;;  %v379_v54 = vld [vmem:[%s12349_s4 + $0x400] sm:$0xff]  ;;  %v8714_v56 = vpack.c.bf16 %v427_v50, %v426_v49  ;;  %v396_v58 = vld [vmem:[%s12349_s4 + $0x488] sm:$0xff] }
  0x12   : > { %8679 = vmatprep.subr.bf16.mxu0 %v8678_v39  ;;  %v410_v55 = vld [vmem:[%s12349_s4 + $0x4f8] sm:$0xff]  ;;  %v411_v57 = vld [vmem:[%s12349_s4 + $0x500] sm:$0xff]  ;;  %v397_v59 = vld [vmem:[%s12349_s4 + $0x490] sm:$0xff]  ;;  %v8684_v62 = vpack.c.bf16 %v379_v54, %v378_v53 }
  0x13   : > { %8709 = vmatpush3.bf16.msra.mxu1 %v8708_v38  ;;  %v428_v60 = vld [vmem:[%s12349_s4 + $0x588] sm:$0xff]  ;;  %v429_v61 = vld [vmem:[%s12349_s4 + $0x590] sm:$0xff]  ;;  %v8716_v63 = vpack.c.bf16 %v411_v57, %v410_v55  ;;  %v8686_v0 = vpack.c.bf16 %v397_v59, %v396_v58  ;;  %v398_v6 = vld [vmem:[%s12349_s4 + $0x498] sm:$0xff] }
  0x14   : > { %8711 = vmatprep.subr.bf16.mxu1 %v8710_v43  ;;  %v380_v1 = vld [vmem:[%s12349_s4 + $0x408] sm:$0xff]  ;;  %v381_v2 = vld [vmem:[%s12349_s4 + $0x410] sm:$0xff]  ;;  %v8718_v4 = vpack.c.bf16 %v429_v61, %v428_v60  ;;  %v399_v7 = vld [vmem:[%s12349_s4 + $0x4a0] sm:$0xff] }
  0x15   : > { %8681 = vmatpush3.bf16.msra.mxu0 %v8680_v48  ;;  %v412_v3 = vld [vmem:[%s12349_s4 + $0x508] sm:$0xff]  ;;  %v413_v5 = vld [vmem:[%s12349_s4 + $0x510] sm:$0xff]  ;;  %v430_v8 = vld [vmem:[%s12349_s4 + $0x598] sm:$0xff]  ;;  %v8688_v10 = vpack.c.bf16 %v381_v2, %v380_v1  ;;  %v8690_v14 = vpack.c.bf16 %v399_v7, %v398_v6 }
  0x16   : > { %8683 = vmatprep.subr.bf16.mxu0 %v8682_v52  ;;  %v431_v9 = vld [vmem:[%s12349_s4 + $0x5a0] sm:$0xff]  ;;  %v382_v11 = vld [vmem:[%s12349_s4 + $0x418] sm:$0xff]  ;;  %v343_v12 = vld [vmem:[%s10049_s16 + $0x8] sm:$0xff]  ;;  %v8720_v13 = vpack.c.bf16 %v413_v5, %v412_v3 }
  0x17   : > { %8713 = vmatpush3.bf16.msra.mxu1 %v8712_v51  ;;  %v383_v15 = vld [vmem:[%s12349_s4 + $0x420] sm:$0xff]  ;;  %v414_v16 = vld [vmem:[%s12349_s4 + $0x518] sm:$0xff]  ;;  %v8722_v18 = vpack.c.bf16 %v431_v9, %v430_v8  ;;  %v400_v19 = vld [vmem:[%s12349_s4 + $0x4a8] sm:$0xff]  ;;  %535 = vmatprep.mubr.f32.mxu0 %v343_v12 }
  0x18   : > { %8715 = vmatprep.subr.bf16.mxu1 %v8714_v56  ;;  %v415_v17 = vld [vmem:[%s12349_s4 + $0x520] sm:$0xff]  ;;  %v401_v20 = vld [vmem:[%s12349_s4 + $0x4b0] sm:$0xff]  ;;  %v345_v21 = vld [vmem:[%s10049_s16 + $0x18] sm:$0xff]  ;;  %v8692_v24 = vpack.c.bf16 %v383_v15, %v382_v11 }
  0x19   : > { %8685 = vmatpush3.bf16.msra.mxu0 %v8684_v62  ;;  %v432_v22 = vld [vmem:[%s12349_s4 + $0x5a8] sm:$0xff]  ;;  %v433_v23 = vld [vmem:[%s12349_s4 + $0x5b0] sm:$0xff]  ;;  %610 = vmatprep.mubr.f32.mxu1 %v345_v21  ;;  %v8724_v25 = vpack.c.bf16 %v415_v17, %v414_v16  ;;  %v8694_v26 = vpack.c.bf16 %v401_v20, %v400_v19  ;;  %v450_v32 = vld [vmem:[%s12349_s4 + $0x638] sm:$0xff] }
  0x1a   : > { %8687 = vmatprep.subr.bf16.mxu0 %v8686_v0  ;;  %v384_v27 = vld [vmem:[%s12349_s4 + $0x428] sm:$0xff]  ;;  %v385_v28 = vld [vmem:[%s12349_s4 + $0x430] sm:$0xff]  ;;  %v8726_v30 = vpack.c.bf16 %v433_v23, %v432_v22  ;;  %v451_v33 = vld [vmem:[%s12349_s4 + $0x640] sm:$0xff] }
  0x1b   : > { %8717 = vmatpush3.bf16.msra.mxu1 %v8716_v63  ;;  %v416_v29 = vld [vmem:[%s12349_s4 + $0x528] sm:$0xff]  ;;  %v417_v31 = vld [vmem:[%s12349_s4 + $0x530] sm:$0xff]  ;;  %v8696_v34 = vpack.c.bf16 %v385_v28, %v384_v27  ;;  %v8730_v36 = vpack.c.bf16 %v451_v33, %v450_v32  ;;  %v434_v37 = vld [vmem:[%s12349_s4 + $0x5b8] sm:$0xff] }
  0x1c   : > { %8719 = vmatprep.subr.bf16.mxu1 %v8718_v4  ;;  %v8728_v35 = vpack.c.bf16 %v417_v31, %v416_v29  ;;  %v435_v38 = vld [vmem:[%s12349_s4 + $0x5c0] sm:$0xff]  ;;  %v452_v39 = vld [vmem:[%s12349_s4 + $0x648] sm:$0xff]  ;;  %v453_v40 = vld [vmem:[%s12349_s4 + $0x650] sm:$0xff] }
  0x1d   : > { %8689 = vmatpush3.bf16.msra.mxu0 %v8688_v10  ;;  %v342_v41 = vld [vmem:[%s10049_s16] sm:$0xff]  ;;  %v8732_v42 = vpack.c.bf16 %v435_v38, %v434_v37  ;;  %v344_v43 = vld [vmem:[%s10049_s16 + $0x10] sm:$0xff]  ;;  %v8734_v44 = vpack.c.bf16 %v453_v40, %v452_v39  ;;  %v436_v45 = vld [vmem:[%s12349_s4 + $0x5c8] sm:$0xff] }
  0x1e   : > { %8691 = vmatprep.subr.bf16.mxu0 %v8690_v14  ;;  %v437_v46 = vld [vmem:[%s12349_s4 + $0x5d0] sm:$0xff]  ;;  %v454_v47 = vld [vmem:[%s12349_s4 + $0x658] sm:$0xff]  ;;  %v455_v48 = vld [vmem:[%s12349_s4 + $0x660] sm:$0xff] }
  0x1f   : > { %8721 = vmatpush3.bf16.msra.mxu1 %v8720_v13  ;;  %v349_v49 = vld [vmem:[%s10049_s16 + $0x38] sm:$0xff]  ;;  %v351_v50 = vld [vmem:[%s10049_s16 + $0x48] sm:$0xff]  ;;  %v8736_v51 = vpack.c.bf16 %v437_v46, %v436_v45  ;;  %v348_v52 = vld [vmem:[%s10049_s16 + $0x30] sm:$0xff]  ;;  %v8738_v53 = vpack.c.bf16 %v455_v48, %v454_v47 }
  0x20   : > { %8723 = vmatprep.subr.bf16.mxu1 %v8722_v18  ;;  %v438_v54 = vld [vmem:[%s12349_s4 + $0x5d8] sm:$0xff]  ;;  %v439_v55 = vld [vmem:[%s12349_s4 + $0x5e0] sm:$0xff]  ;;  %v456_v57 = vld [vmem:[%s12349_s4 + $0x668] sm:$0xff] }
  0x21   : > { %8693 = vmatpush3.bf16.msra.mxu0 %v8692_v24  ;;  %v350_v56 = vld [vmem:[%s10049_s16 + $0x40] sm:$0xff]  ;;  %v457_v58 = vld [vmem:[%s12349_s4 + $0x670] sm:$0xff]  ;;  %v347_v59 = vld [vmem:[%s10049_s16 + $0x28] sm:$0xff]  ;;  %v8740_v60 = vpack.c.bf16 %v439_v55, %v438_v54 }
  0x22   : > { %8695 = vmatprep.subr.bf16.mxu0 %v8694_v26  ;;  %v8742_v61 = vpack.c.bf16 %v457_v58, %v456_v57  ;;  %v440_v62 = vld [vmem:[%s12349_s4 + $0x5e8] sm:$0xff]  ;;  %v441_v63 = vld [vmem:[%s12349_s4 + $0x5f0] sm:$0xff]  ;;  %v458_v0 = vld [vmem:[%s12349_s4 + $0x678] sm:$0xff] }
  0x23   : > { %8725 = vmatpush3.bf16.msra.mxu1 %v8724_v25  ;;  %v459_v1 = vld [vmem:[%s12349_s4 + $0x680] sm:$0xff]  ;;  %v8744_v2 = vpack.c.bf16 %v441_v63, %v440_v62  ;;  %v442_v4 = vld [vmem:[%s12349_s4 + $0x5f8] sm:$0xff]  ;;  %v460_v6 = vld [vmem:[%s12349_s4 + $0x688] sm:$0xff] }
  0x24   : > { %8727 = vmatprep.subr.bf16.mxu1 %v8726_v30  ;;  %v8746_v3 = vpack.c.bf16 %v459_v1, %v458_v0  ;;  %v443_v5 = vld [vmem:[%s12349_s4 + $0x600] sm:$0xff]  ;;  %v461_v7 = vld [vmem:[%s12349_s4 + $0x690] sm:$0xff]  ;;  %v444_v10 = vld [vmem:[%s12349_s4 + $0x608] sm:$0xff] }
  0x25   : > { %8697 = vmatpush3.bf16.msra.mxu0 %v8696_v34  ;;  %v8748_v8 = vpack.c.bf16 %v443_v5, %v442_v4  ;;  %v8750_v9 = vpack.c.bf16 %v461_v7, %v460_v6  ;;  %v445_v11 = vld [vmem:[%s12349_s4 + $0x610] sm:$0xff]  ;;  %v462_v12 = vld [vmem:[%s12349_s4 + $0x698] sm:$0xff]  ;;  %v463_v13 = vld [vmem:[%s12349_s4 + $0x6a0] sm:$0xff] }
  0x26   : > { %8731 = vmatprep.subr.bf16.mxu0 %v8730_v36  ;;  %v8752_v14 = vpack.c.bf16 %v445_v11, %v444_v10  ;;  %v8754_v15 = vpack.c.bf16 %v463_v13, %v462_v12  ;;  %v446_v16 = vld [vmem:[%s12349_s4 + $0x618] sm:$0xff]  ;;  %v447_v17 = vld [vmem:[%s12349_s4 + $0x620] sm:$0xff]  ;;  %v464_v18 = vld [vmem:[%s12349_s4 + $0x6a8] sm:$0xff]  ;;  %v9818_v10 = vmov 0.0  }
  0x27   : > { %8729 = vmatpush3.bf16.msra.mxu1 %v8728_v35  ;;  %v465_v19 = vld [vmem:[%s12349_s4 + $0x6b0] sm:$0xff]  ;;  %v8756_v20 = vpack.c.bf16 %v447_v17, %v446_v16  ;;  %v448_v22 = vld [vmem:[%s12349_s4 + $0x628] sm:$0xff]  ;;  %v346_v25 = vld [vmem:[%s10049_s16 + $0x20] sm:$0xff] }
  0x28   : > { %536 = vmatmul.mubr.f32.vlgmr.msra.gmra.mrb[0].mxu0 %v342_v41  ;;  %v8758_v21 = vpack.c.bf16 %v465_v19, %v464_v18  ;;  %v449_v23 = vld [vmem:[%s12349_s4 + $0x630] sm:$0xff]  ;;  %v353_v26 = vld [vmem:[%s10049_s16 + $0x58] sm:$0xff]  ;;  %v354_v28 = vld [vmem:[%s12346_s1] sm:$0xff] }
  0x29   : > { %8733 = vmatpush3.bf16.msra.mxu0 %v8732_v42  ;;  %540 = vmatprep.mubr.f32.mxu0 %v349_v49  ;;  %v8760_v24 = vpack.c.bf16 %v449_v23, %v448_v22  ;;  %v352_v27 = vld [vmem:[%s10049_s16 + $0x50] sm:$0xff]  ;;  %v829_v54 = vld [vmem:[%s12352_s7 + $0x38] sm:$0xff]  ;;  %v826_v58 = vld [vmem:[%s12352_s7 + $0x20] sm:$0xff] }
  0x2a   : > { %611 = vmatmul.mubr.f32.vlgmr.msra.gmra.mrb[0].mxu1 %v344_v43  ;;  %8735 = vmatprep.subr.bf16.mxu0 %v8734_v44  ;;  %v7216_v30 = vld [vmem:[%s12349_s4 + $0x3b0] ss:$0 sm:$0xff]  ;;  %v355_v62 = vld [vmem:[%s12346_s1 + $0x8] sm:$0xff]  ;;  %v357_v4 = vld [vmem:[%s12346_s1 + $0x18] sm:$0xff] }
  0x2b   : > { %615 = vmatprep.mubr.f32.mxu1 %v351_v50  ;;  %v356_v0 = vld [vmem:[%s12346_s1 + $0x10] sm:$0xff]  ;;  %v358_v6 = vld [vmem:[%s12346_s1 + $0x20] sm:$0xff]  ;;  %v359_v7 = vld [vmem:[%s12346_s1 + $0x28] sm:$0xff] }
  0x2c   : > { %541 = vmatmul.mubr.f32.gmra.mrb[2].mxu0 %v348_v52  ;;  %v1001_v11 = vld [vmem:[%s12352_s7 + $0x68] sm:$0xff]  ;;  %v1003_v12 = vld [vmem:[%s12352_s7 + $0x78] sm:$0xff]  ;;  %v1006_v22 = vld [vmem:[%s12352_s7 + $0x90] sm:$0xff] }
  0x2d   : > { %8737 = vmatpush3.bf16.msra.mxu0 %v8736_v51  ;;  %685 = vmatprep.mubr.f32.mxu0 %v347_v59  ;;  %v828_v59 = vld [vmem:[%s12352_s7 + $0x30] sm:$0xff]  ;;  %v8774_v13 = vpack.c.bf16 %v1003_v12, %v1001_v11  ;;  %v1005_v16 = vld [vmem:[%s12352_s7 + $0x88] sm:$0xff]  ;;  %v1007_v17 = vld [vmem:[%s12352_s7 + $0x98] sm:$0xff] }
  0x2e   : > { %616 = vmatmul.mubr.f32.gmra.mrb[2].mxu1 %v350_v56  ;;  %8739 = vmatprep.subr.bf16.mxu0 %v8738_v53  ;;  %v827_v53 = vld [vmem:[%s12352_s7 + $0x28] sm:$0xff]  ;;  %v8768_v63 = vpack.c.bf16 %v828_v59, %v826_v58  ;;  %v1024_v58 = vld [vmem:[%s12352_s7 + $0x120] sm:$0xff]  ;;  %v1026_v59 = vld [vmem:[%s12352_s7 + $0x130] sm:$0xff] }
  0x2f   : > { %7981 = vmatprep.mubr.msk.f32.mxu1 %vm696_vm0, %v354_v28  ;;  %v8766_v57 = vpack.c.bf16 %v829_v54, %v827_v53  ;;  %v1022_v53 = vld [vmem:[%s12352_s7 + $0x110] sm:$0xff]  ;;  %v1025_v54 = vld [vmem:[%s12352_s7 + $0x128] sm:$0xff]  ;;  %vm10989_vm5 = vmpackc.low %vm1544_vm3, %vm1544_vm3 }
  0x30   : > { %vm11924_vm7 = vmpackc.low %vm846_vm1, %vm846_vm1 }
  0x31   : > { %8741 = vmatpush3.bf16.msra.mxu0 %v8740_v60  ;;  %v831_v60 = vld [vmem:[%s12352_s7 + $0x48] sm:$0xff] }
  0x32   : > { %8743 = vmatprep.subr.bf16.mxu0 %v8742_v61  ;;  %v833_v61 = vld [vmem:[%s12352_s7 + $0x58] sm:$0xff] }
  0x33   : > { %v8770_v1 = vpack.c.bf16 %v833_v61, %v831_v60  ;;  %v1029_v60 = vld [vmem:[%s12352_s7 + $0x148] sm:$0xff]  ;;  %v1031_v61 = vld [vmem:[%s12352_s7 + $0x158] sm:$0xff] }
  0x35   : > { %8745 = vmatpush3.bf16.msra.mxu0 %v8744_v2  ;;  %v830_v2 = vld [vmem:[%s12352_s7 + $0x40] sm:$0xff] }
  0x36   : > { %8747 = vmatprep.subr.bf16.mxu0 %v8746_v3  ;;  %v832_v3 = vld [vmem:[%s12352_s7 + $0x50] sm:$0xff] }
  0x37   : > { %v8772_v5 = vpack.c.bf16 %v832_v3, %v830_v2  ;;  %v1033_v2 = vld [vmem:[%s12352_s7 + $0x168] sm:$0xff]  ;;  %v1035_v3 = vld [vmem:[%s12352_s7 + $0x178] sm:$0xff] }
  0x39   : > { %8749 = vmatpush3.bf16.msra.mxu0 %v8748_v8  ;;  %v360_v8 = vld [vmem:[%s12346_s1 + $0x30] sm:$0xff] }
  0x3a   : > { %8751 = vmatprep.subr.bf16.mxu0 %v8750_v9  ;;  %v361_v9 = vld [vmem:[%s12346_s1 + $0x38] sm:$0xff] }
  0x3d   : > { %8753 = vmatpush3.bf16.msra.mxu0 %v8752_v14  ;;  %v1000_v14 = vld [vmem:[%s12352_s7 + $0x60] sm:$0xff] }
  0x3e   : > { %8755 = vmatprep.subr.bf16.mxu0 %v8754_v15  ;;  %v1002_v15 = vld [vmem:[%s12352_s7 + $0x70] sm:$0xff] }
  0x3f   : > { %v8776_v18 = vpack.c.bf16 %v1002_v15, %v1000_v14  ;;  %v1038_v14 = vld [vmem:[%s12352_s7 + $0x190] sm:$0xff]  ;;  %v1041_v15 = vld [vmem:[%s12352_s7 + $0x1a8] sm:$0xff] }
  0x41   : > { %8757 = vmatpush3.bf16.msra.mxu0 %v8756_v20  ;;  %v8778_v20 = vpack.c.bf16 %v1007_v17, %v1005_v16  ;;  %v1043_v16 = vld [vmem:[%s12352_s7 + $0x1b8] sm:$0xff] }
  0x42   : > { %8759 = vmatprep.subr.bf16.mxu0 %v8758_v21  ;;  %v1004_v21 = vld [vmem:[%s12352_s7 + $0x80] sm:$0xff] }
  0x45   : > { %8761 = vmatpush3.bf16.msra.mxu0 %v8760_v24  ;;  %v1009_v24 = vld [vmem:[%s12352_s7 + $0xa8] sm:$0xff] }
  0x48   : > { %686 = vmatmul.mubr.f32.vlgmr.msra.gmra.mrb[4].mxu0 %v346_v25  ;;  %v1011_v25 = vld [vmem:[%s12352_s7 + $0xb8] sm:$0xff] }
  0x49   : > { %690 = vmatprep.mubr.f32.mxu0 %v353_v26  ;;  %v8780_v26 = vpack.c.bf16 %v1006_v22, %v1004_v21  ;;  %v8782_v28 = vpack.c.bf16 %v1011_v25, %v1009_v24  ;;  %v1042_v21 = vld [vmem:[%s12352_s7 + $0x1b0] sm:$0xff]  ;;  %v1045_v22 = vld [vmem:[%s12352_s7 + $0x1c8] sm:$0xff]  ;;  %v1047_v24 = vld [vmem:[%s12352_s7 + $0x1d8] sm:$0xff] }
  0x4c   : > { %691 = vmatmul.mubr.f32.gmra.mrb[6].mxu0 %v352_v27 }
  0xfb   : > { %v7467_v29 = vpop.f32.mrb[0].mxu0 }
  0xfc   : > { %v7468_v31 = vpop.f32.mrb[1].mxu0 }
  0xfd   : > { %v7505_v32 = vpop.f32.mrb[0].mxu1  ;;  %v7469_v33 = vadd.f32 %v7468_v31, %v7467_v29  ;;  %v1008_v29 = vld [vmem:[%s12352_s7 + $0xa0] sm:$0xff] }
  0xfe   : > { %v7506_v34 = vpop.f32.mrb[1].mxu1 }
  0xff   : > { %v7507_v35 = vadd.f32 %v7506_v34, %v7505_v32  ;;  %v538_v36 = vadd.f32 %v7469_v33, %v7216_v30  ;;  %v7470_v37 = vpop.f32.mrb[2].mxu0  ;;  %v1013_v32 = vld [vmem:[%s12352_s7 + $0xc8] sm:$0xff]  ;;  %v1015_v33 = vld [vmem:[%s12352_s7 + $0xd8] sm:$0xff] }
 0x100   : > { %v7471_v38 = vpop.f32.mrb[3].mxu0 }
 0x101   : > { %v7508_v39 = vpop.f32.mrb[2].mxu1  ;;  %v613_v40 = vadd.f32 %v7507_v35, %v538_v36  ;;  %v7472_v41 = vadd.f32 %v7471_v38, %v7470_v37  ;;  %v8786_v36 = vpack.c.bf16 %v1015_v33, %v1013_v32  ;;  %v1012_v37 = vld [vmem:[%s12352_s7 + $0xc0] sm:$0xff]  ;;  %v1014_v38 = vld [vmem:[%s12352_s7 + $0xd0] sm:$0xff]  ;;  %v1051_v32 = vld [vmem:[%s12352_s7 + $0x1f8] sm:$0xff] }
 0x102   : > { %v7509_v42 = vpop.f32.mrb[3].mxu1 }
 0x103   : > { %v7510_v43 = vadd.f32 %v7509_v42, %v7508_v39  ;;  %v543_v44 = vadd.f32 %v7472_v41, %v7216_v30  ;;  %v1010_v30 = vld [vmem:[%s12352_s7 + $0xb0] sm:$0xff]  ;;  %v1019_v41 = vld [vmem:[%s12352_s7 + $0xf8] sm:$0xff]  ;;  %v8788_v42 = vpack.c.bf16 %v1014_v38, %v1012_v37  ;;  %v1053_v38 = vld [vmem:[%s12352_s7 + $0x208] sm:$0xff] }
 0x104   : > { %v8784_v34 = vpack.c.bf16 %v1010_v30, %v1008_v29  ;;  %v1046_v29 = vld [vmem:[%s12352_s7 + $0x1d0] sm:$0xff]  ;;  %v1049_v30 = vld [vmem:[%s12352_s7 + $0x1e8] sm:$0xff] }
 0x105   : > { %v618_v45 = vadd.f32 %v7510_v43, %v543_v44  ;;  %v1016_v44 = vld [vmem:[%s12352_s7 + $0xe0] sm:$0xff]  ;;  %v1050_v37 = vld [vmem:[%s12352_s7 + $0x1f0] sm:$0xff] }
 0x11b   : > { %v7543_v46 = vpop.f32.mrb[4].mxu0 }
 0x11c   : > { %v7544_v47 = vpop.f32.mrb[5].mxu0 }
 0x11d   : > { %v7545_v48 = vadd.f32 %v7544_v47, %v7543_v46  ;;  %v1021_v47 = vld [vmem:[%s12352_s7 + $0x108] sm:$0xff] }
 0x11f   : > { %v688_v49 = vadd.f32 %v7545_v48, %v613_v40  ;;  %v7546_v50 = vpop.f32.mrb[6].mxu0  ;;  %v1017_v40 = vld [vmem:[%s12352_s7 + $0xe8] sm:$0xff]  ;;  %v1023_v48 = vld [vmem:[%s12352_s7 + $0x118] sm:$0xff] }
 0x120   : > { %v7547_v51 = vpop.f32.mrb[7].mxu0  ;;  %v8790_v43 = vpack.c.bf16 %v1019_v41, %v1017_v40  ;;  %v1055_v40 = vld [vmem:[%s12352_s7 + $0x218] sm:$0xff] }
 0x121   : > { %v7548_v52 = vadd.f32 %v7547_v51, %v7546_v50  ;;  %v8794_v51 = vpack.c.bf16 %v1023_v48, %v1021_v47  ;;  %v1059_v47 = vld [vmem:[%s12352_s7 + $0x238] sm:$0xff] }
 0x123   : > { %v693_v55 = vadd.f32 %v7548_v52, %v618_v45  ;;  %v1018_v45 = vld [vmem:[%s12352_s7 + $0xf0] sm:$0xff]  ;;  %v1020_v52 = vld [vmem:[%s12352_s7 + $0x100] sm:$0xff] }
 0x124   : > { %v8792_v50 = vpack.c.bf16 %v1018_v45, %v1016_v44  ;;  %v1054_v44 = vld [vmem:[%s12352_s7 + $0x210] sm:$0xff]  ;;  %v1057_v45 = vld [vmem:[%s12352_s7 + $0x228] sm:$0xff] }
 0x125   : > { %v8762_v56 = vpack.c.bf16 %v693_v55, %v688_v49  ;;  %v1027_v55 = vld [vmem:[%s12352_s7 + $0x138] sm:$0xff] }
 0x127   : > { %8763 = vmatprep.subr.bf16.mxu1 %v8762_v56 }
 0x128   : > { %8765 = vmatpush3.bf16.msra.mxu1 %v8762_v56  ;;  %v8796_v56 = vpack.c.bf16 %v1022_v53, %v1020_v52  ;;  %v1058_v52 = vld [vmem:[%s12352_s7 + $0x230] sm:$0xff] }
 0x129   : > { %8767 = vmatprep.subr.bf16.mxu1 %v8766_v57  ;;  %v8798_v57 = vpack.c.bf16 %v1027_v55, %v1025_v54  ;;  %v1061_v54 = vld [vmem:[%s12352_s7 + $0x248] sm:$0xff]  ;;  %v1063_v55 = vld [vmem:[%s12352_s7 + $0x258] sm:$0xff] }
 0x12b   : > { %7982 = vmatmul.mubr.msk.f32.vlgmr.msra.gmra.mrb[4].mxu1 %vm696_vm0, %v355_v62  ;;  %v8800_v62 = vpack.c.bf16 %v1026_v59, %v1024_v58  ;;  %v1062_v58 = vld [vmem:[%s12352_s7 + $0x250] sm:$0xff] }
 0x12c   : > { %7984 = vmatprep.mubr.msk.f32.mxu1 %vm696_vm0, %v356_v0  ;;  %8769 = vmatpush1.bf16.msra.mxu1 %v8768_v63  ;;  %v8802_v63 = vpack.c.bf16 %v1031_v61, %v1029_v60  ;;  %v1028_v0 = vld [vmem:[%s12352_s7 + $0x140] sm:$0xff]  ;;  %v1222_v60 = vld [vmem:[%s12349_s4 + $0x228] sm:$0xff]  ;;  %v1223_v61 = vld [vmem:[%s12349_s4 + $0x230] sm:$0xff] }
 0x12d   : > { %8771 = vmatprep.subr.bf16.mxu1 %v8770_v1  ;;  %v1030_v1 = vld [vmem:[%s12352_s7 + $0x150] sm:$0xff] }
 0x12f   : > { %7985 = vmatmul.mubr.msk.f32.gmra.mrb[6].mxu1 %vm696_vm0, %v357_v4  ;;  %v8804_v4 = vpack.c.bf16 %v1030_v1, %v1028_v0  ;;  %v1207_v0 = vld [vmem:[%s12349_s4 + $0x1b0] sm:$0xff]  ;;  %v1224_v1 = vld [vmem:[%s12349_s4 + $0x238] sm:$0xff] }
 0x130   : > { %7987 = vmatprep.mubr.msk.f32.mxu1 %vm696_vm0, %v358_v6  ;;  %8773 = vmatpush1.bf16.msra.mxu1 %v8772_v5  ;;  %v8806_v5 = vpack.c.bf16 %v1035_v3, %v1033_v2  ;;  %v1032_v6 = vld [vmem:[%s12352_s7 + $0x160] sm:$0xff] }
 0x131   : > { %8775 = vmatprep.subr.bf16.mxu1 %v8774_v13  ;;  %v1036_v13 = vld [vmem:[%s12352_s7 + $0x180] sm:$0xff] }
 0x132   : > { %v8812_v17 = vpack.c.bf16 %v1038_v14, %v1036_v13  ;;  %v1225_v2 = vld [vmem:[%s12349_s4 + $0x240] sm:$0xff]  ;;  %v1211_v13 = vld [vmem:[%s12349_s4 + $0x1d0] sm:$0xff]  ;;  %v1228_v14 = vld [vmem:[%s12349_s4 + $0x258] sm:$0xff] }
 0x133   : > { %7988 = vmatmul.mubr.msk.f32.gmra.mrb[8].mxu1 %vm696_vm0, %v359_v7  ;;  %v1034_v7 = vld [vmem:[%s12352_s7 + $0x170] sm:$0xff] }
 0x134   : > { %7990 = vmatprep.mubr.msk.f32.mxu1 %vm696_vm0, %v360_v8  ;;  %v1037_v8 = vld [vmem:[%s12352_s7 + $0x188] sm:$0xff]  ;;  %v8808_v11 = vpack.c.bf16 %v1034_v7, %v1032_v6  ;;  %v1209_v6 = vld [vmem:[%s12349_s4 + $0x1c0] sm:$0xff] }
 0x135   : > { %v1226_v7 = vld [vmem:[%s12349_s4 + $0x248] sm:$0xff] }
 0x137   : > { %7991 = vmatmul.mubr.msk.f32.gmra.mrb[10].mxu1 %vm696_vm0, %v361_v9  ;;  %v1039_v9 = vld [vmem:[%s12352_s7 + $0x198] sm:$0xff] }
 0x138   : > { %935 = vmatprep.mubr.f32.mxu1 %v9818_v10  ;;  %v8810_v12 = vpack.c.bf16 %v1039_v9, %v1037_v8  ;;  %v1227_v8 = vld [vmem:[%s12349_s4 + $0x250] sm:$0xff] }
 0x1fe   : > { %v10288_v19 = vpop.f32.mrb[4].mxu1 }
 0x1ff   : > { %v10296_v23 = vpop.f32.mrb[5].mxu1 }
 0x200   : > { %7225 = vmatmul.mubr.msk.f32.vlgmr.msra.gmra.mrb[12].mxu1 %vm846_vm1, %v10296_v23 }
 0x201   : > { %941 = vmatprep.mubr.f32.mxu1 %v9818_v10  ;;  %8777 = vmatpush1.bf16.msra.mxu1 %v8776_v18  ;;  %v8814_v18 = vpack.c.bf16 %v1043_v16, %v1041_v15  ;;  %v1229_v15 = vld [vmem:[%s12349_s4 + $0x260] sm:$0xff] }
 0x202   : > { %v10307_v27 = vpop.f32.mrb[6].mxu1  ;;  %8779 = vmatprep.subr.bf16.mxu1 %v8778_v20  ;;  %v1040_v20 = vld [vmem:[%s12352_s7 + $0x1a0] sm:$0xff] }
 0x203   : > { %v10315_v31 = vpop.f32.mrb[7].mxu1  ;;  %v8816_v25 = vpack.c.bf16 %v1042_v21, %v1040_v20  ;;  %v1213_v20 = vld [vmem:[%s12349_s4 + $0x1e0] sm:$0xff]  ;;  %v1230_v21 = vld [vmem:[%s12349_s4 + $0x268] sm:$0xff] }
 0x204   : > { %7226 = vmatmul.mubr.msk.f32.gmra.mrb[14].mxu1 %vm846_vm1, %v10288_v19 }
 0x205   : > { %947 = vmatprep.mubr.f32.mxu1 %v9818_v10  ;;  %8781 = vmatpush1.bf16.msra.mxu1 %v8780_v26  ;;  %v8818_v26 = vpack.c.bf16 %v1047_v24, %v1045_v22  ;;  %v1231_v22 = vld [vmem:[%s12349_s4 + $0x270] sm:$0xff] }
 0x206   : > { %v10326_v35 = vpop.f32.mrb[8].mxu1  ;;  %8783 = vmatprep.subr.bf16.mxu1 %v8782_v28  ;;  %v1044_v28 = vld [vmem:[%s12352_s7 + $0x1c0] sm:$0xff] }
 0x207   : > { %v10334_v39 = vpop.f32.mrb[9].mxu1  ;;  %v8820_v33 = vpack.c.bf16 %v1046_v29, %v1044_v28  ;;  %v1215_v28 = vld [vmem:[%s12349_s4 + $0x1f0] sm:$0xff]  ;;  %v1232_v29 = vld [vmem:[%s12349_s4 + $0x278] sm:$0xff] }
 0x208   : > { %7227 = vmatmul.mubr.msk.f32.gmra.mrb[16].mxu1 %vm846_vm1, %v10315_v31 }
 0x209   : > { %953 = vmatprep.mubr.f32.mxu1 %v9818_v10  ;;  %8785 = vmatpush1.bf16.msra.mxu1 %v8784_v34  ;;  %v8822_v34 = vpack.c.bf16 %v1051_v32, %v1049_v30  ;;  %v1233_v30 = vld [vmem:[%s12349_s4 + $0x280] sm:$0xff] }
 0x20a   : > { %8787 = vmatprep.subr.bf16.mxu1 %v8786_v36  ;;  %v10351_v46 = vpop.f32.mrb[10].mxu1  ;;  %v1048_v36 = vld [vmem:[%s12352_s7 + $0x1e0] sm:$0xff] }
 0x20b   : > { %v10359_v49 = vpop.f32.mrb[11].mxu1  ;;  %v8824_v41 = vpack.c.bf16 %v1050_v37, %v1048_v36  ;;  %v1217_v36 = vld [vmem:[%s12349_s4 + $0x200] sm:$0xff]  ;;  %v1234_v37 = vld [vmem:[%s12349_s4 + $0x288] sm:$0xff] }
 0x20c   : > { %7228 = vmatmul.mubr.msk.f32.gmra.mrb[18].mxu1 %vm846_vm1, %v10307_v27 }
 0x20d   : > { %959 = vmatprep.mubr.f32.mxu1 %v9818_v10  ;;  %8789 = vmatpush1.bf16.msra.mxu1 %v8788_v42  ;;  %v8826_v42 = vpack.c.bf16 %v1055_v40, %v1053_v38  ;;  %v1235_v38 = vld [vmem:[%s12349_s4 + $0x290] sm:$0xff] }
 0x20e   : > { %8791 = vmatprep.subr.bf16.mxu1 %v8790_v43  ;;  %v1052_v43 = vld [vmem:[%s12352_s7 + $0x200] sm:$0xff] }
 0x20f   : > { %v8828_v48 = vpack.c.bf16 %v1054_v44, %v1052_v43 }
 0x210   : > { %7229 = vmatmul.mubr.msk.f32.gmra.mrb[20].mxu1 %vm846_vm1, %v10334_v39 }
 0x211   : > { %965 = vmatprep.mubr.f32.mxu1 %v9818_v10  ;;  %8793 = vmatpush1.bf16.msra.mxu1 %v8792_v50  ;;  %v8830_v50 = vpack.c.bf16 %v1059_v47, %v1057_v45  ;;  %v834_v45 = vld [vmem:[%s12352_s7] ss:$8 sm:$0x3] }
 0x212   : > { %8795 = vmatprep.subr.bf16.mxu1 %v8794_v51  ;;  %v1056_v51 = vld [vmem:[%s12352_s7 + $0x220] sm:$0xff] }
 0x213   : > { %v8832_v53 = vpack.c.bf16 %v1058_v52, %v1056_v51 }
 0x214   : > { %7230 = vmatmul.mubr.msk.f32.gmra.mrb[22].mxu1 %vm846_vm1, %v10326_v35 }
 0x215   : > { %8797 = vmatpush1.bf16.msra.mxu1 %v8796_v56  ;;  %971 = vmatprep.mubr.f32.mxu1 %v9818_v10  ;;  %v8834_v56 = vpack.c.bf16 %v1063_v55, %v1061_v54 }
 0x216   : > { %8799 = vmatprep.subr.bf16.mxu1 %v8798_v57  ;;  %v1060_v57 = vld [vmem:[%s12352_s7 + $0x240] sm:$0xff] }
 0x217   : > { %v8836_v59 = vpack.c.bf16 %v1062_v58, %v1060_v57 }
 0x218   : > { %7231 = vmatmul.mubr.msk.f32.gmra.mrb[24].mxu1 %vm846_vm1, %v10359_v49 }
 0x219   : > { %8801 = vmatpush1.bf16.msra.mxu1 %v8800_v62  ;;  %977 = vmatprep.mubr.f32.mxu1 %v9818_v10  ;;  %v1206_v62 = vld [vmem:[%s12349_s4 + $0x1a8] sm:$0xff] }
 0x21a   : > { %8803 = vmatprep.subr.bf16.mxu1 %v8802_v63  ;;  %v8838_v63 = vpack.c.bf16 %v1223_v61, %v1222_v60  ;;  %v10519_v3 = vpack.c.bf16 %v1207_v0, %v1206_v62 }
 0x21c   : > { %7232 = vmatmul.mubr.msk.f32.gmra.mrb[26].mxu1 %vm846_vm1, %v10351_v46  ;;  %8839 = vmatprep.subr.bf16.mxu0 %v8838_v63 }
 0x21d   : > { %8805 = vmatpush1.bf16.msra.mxu1 %v8804_v4  ;;  %v10521_v4 = vpack.c.bf16 %v1225_v2, %v1224_v1  ;;  %8841 = vmatpush3.bf16.msra.mxu0 %v10519_v3 }
 0x21e   : > { %8807 = vmatprep.subr.bf16.mxu1 %v8806_v5  ;;  %v1208_v5 = vld [vmem:[%s12349_s4 + $0x1b8] sm:$0xff] }
 0x21f   : > { %v10536_v9 = vpack.c.bf16 %v1209_v6, %v1208_v5  ;;  %8843 = vmatprep.subr.bf16.mxu0 %v10521_v4 }
 0x221   : > { %8809 = vmatpush1.bf16.msra.mxu1 %v8808_v11  ;;  %v10539_v11 = vpack.c.bf16 %v1227_v8, %v1226_v7  ;;  %8845 = vmatpush3.bf16.msra.mxu0 %v10536_v9 }
 0x222   : > { %8811 = vmatprep.subr.bf16.mxu1 %v8810_v12  ;;  %v1210_v12 = vld [vmem:[%s12349_s4 + $0x1c8] sm:$0xff] }
 0x223   : > { %v10554_v16 = vpack.c.bf16 %v1211_v13, %v1210_v12  ;;  %8847 = vmatprep.subr.bf16.mxu0 %v10539_v11 }
 0x225   : > { %8813 = vmatpush1.bf16.msra.mxu1 %v8812_v17  ;;  %v10557_v17 = vpack.c.bf16 %v1229_v15, %v1228_v14  ;;  %8849 = vmatpush3.bf16.msra.mxu0 %v10554_v16 }
 0x226   : > { %8815 = vmatprep.subr.bf16.mxu1 %v8814_v18  ;;  %v1212_v18 = vld [vmem:[%s12349_s4 + $0x1d8] sm:$0xff] }
 0x227   : > { %v10572_v24 = vpack.c.bf16 %v1213_v20, %v1212_v18  ;;  %8851 = vmatprep.subr.bf16.mxu0 %v10557_v17 }
 0x229   : > { %8817 = vmatpush1.bf16.msra.mxu1 %v8816_v25  ;;  %v10575_v25 = vpack.c.bf16 %v1231_v22, %v1230_v21  ;;  %8853 = vmatpush3.bf16.msra.mxu0 %v10572_v24 }
 0x22a   : > { %8819 = vmatprep.subr.bf16.mxu1 %v8818_v26  ;;  %v1214_v26 = vld [vmem:[%s12349_s4 + $0x1e8] sm:$0xff] }
 0x22b   : > { %v10590_v32 = vpack.c.bf16 %v1215_v28, %v1214_v26  ;;  %8855 = vmatprep.subr.bf16.mxu0 %v10575_v25 }
 0x22d   : > { %8821 = vmatpush1.bf16.msra.mxu1 %v8820_v33  ;;  %v10593_v33 = vpack.c.bf16 %v1233_v30, %v1232_v29  ;;  %8857 = vmatpush3.bf16.msra.mxu0 %v10590_v32 }
 0x22e   : > { %8823 = vmatprep.subr.bf16.mxu1 %v8822_v34  ;;  %v1216_v34 = vld [vmem:[%s12349_s4 + $0x1f8] sm:$0xff] }
 0x22f   : > { %v10608_v40 = vpack.c.bf16 %v1217_v36, %v1216_v34  ;;  %8859 = vmatprep.subr.bf16.mxu0 %v10593_v33 }
 0x231   : > { %8825 = vmatpush1.bf16.msra.mxu1 %v8824_v41  ;;  %v10611_v41 = vpack.c.bf16 %v1235_v38, %v1234_v37  ;;  %8861 = vmatpush3.bf16.msra.mxu0 %v10608_v40 }
 0x232   : > { %8827 = vmatprep.subr.bf16.mxu1 %v8826_v42  ;;  %v836_v42 = vlaneseq }
 0x233   : > { %8863 = vmatprep.subr.bf16.mxu0 %v10611_v41 }
 0x234   : > { %v837_v43 = vshrl.u32 %v836_v42, 7 }
 0x235   : > { %8829 = vmatpush1.bf16.msra.mxu1 %v8828_v48 }
 0x236   : > { %8831 = vmatprep.subr.bf16.mxu1 %v8830_v50  ;;  %v10615_v44 = vsub.s32 0, %v837_v43  ;;  %v10620_v47 = vsub.s32 1, %v837_v43 }
 0x238   : > { %v10623_v48 = vrot.slane %v834_v45, %v10615_v44  ;;  %v10626_v50 = vrot.slane %v834_v45, %v10620_v47  ;;  %v1218_v45 = vld [vmem:[%s12349_s4 + $0x208] sm:$0xff] }
 0x239   : > { %8833 = vmatpush1.bf16.msra.mxu1 %v8832_v53 }
 0x23a   : > { %8835 = vmatprep.subr.bf16.mxu1 %v8834_v56 }
 0x23d   : > { %8837 = vmatpush1.bf16.msra.mxu1 %v8836_v59 }
 0x23e   : > { %9358 = vmatprep.subr.bf16.mxu1 %v8838_v63 }
 0x2d3   : > { %v937_v51 = vpop.f32.mrb[12].mxu1 }
 0x2d4   : > { %v938_v52 = vadd.f32 %v937_v51, %v10623_v48  ;;  %v939_v53 = vpop.f32.mrb[13].mxu1 }
 0x2d5   : > { %v940_v54 = vadd.f32 %v939_v53, %v10626_v50  ;;  %v1221_v53 = vld [vmem:[%s12349_s4 + $0x220] sm:$0xff] }
 0x2d6   : > { %v984_v57 = vmax.f32 %v938_v52, 0.0  ;;  %v1220_v52 = vld [vmem:[%s12349_s4 + $0x218] sm:$0xff] }
 0x2d7   : > { %v985_v55 = vmax.f32 %v940_v54, 0.0  ;;  %v943_v56 = vpop.f32.mrb[14].mxu1  ;;  %v8868_v54 = vpack.c.bf16 %v1221_v53, %v1220_v52  ;;  %v10730_v53 = vld [vmem:[%s12349_s4 + $0x6b8] sm:$0xff] }
 0x2d8   : > { %v944_v58 = vadd.f32 %v943_v56, %v10623_v48  ;;  %v945_v59 = vpop.f32.mrb[15].mxu1  ;;  %v7233_v56 = vld [vmem:[%s12352_s7 + $0x10] ss:$8 sm:$0x3] }
 0x2d9   : > { %v946_v60 = vadd.f32 %v945_v59, %v10626_v50  ;;  %1141 = vmatprep.mubr.f32.mxu1 %v985_v55  ;;  %v9819_v55 = vmov 0.0|0.0  }
 0x2da   : > { %1142 = vmatmul.mubr.f32.vlgmr.msra.gmra.mrb[28].mxu1 %v984_v57  ;;  %v986_v63 = vmax.f32 %v944_v58, 0.0  ;;  %v10680_v57 = vrot.slane %v7233_v56, %v10615_v44  ;;  %v10683_v58 = vrot.slane %v7233_v56, %v10620_v47 }
 0x2db   : > { %v987_v61 = vmax.f32 %v946_v60, 0.0  ;;  %v949_v62 = vpop.f32.mrb[16].mxu1  ;;  %9366 = vmatpush3.bf16.msra.mxu1 %v10519_v3 }
 0x2dc   : > { %v950_v0 = vadd.f32 %v949_v62, %v10623_v48  ;;  %v951_v1 = vpop.f32.mrb[17].mxu1  ;;  %9359 = vmatprep.subr.bf16.mxu1 %v10521_v4  ;;  %v10689_v62 = vld [vmem:[%s12351_s6 + $0x30] sm:$0xff] }
 0x2dd   : > { %v952_v2 = vadd.f32 %v951_v1, %v10626_v50  ;;  %1147 = vmatprep.mubr.f32.mxu1 %v987_v61 }
 0x2de   : > { %1148 = vmatmul.mubr.f32.gmra.mrb[30].mxu1 %v986_v63  ;;  %v988_v7 = vmax.f32 %v950_v0, 0.0  ;;  %v10694_v63 = vld [vmem:[%s12351_s6 + $0x38] sm:$0xff] }
 0x2df   : > { %v989_v5 = vmax.f32 %v952_v2, 0.0  ;;  %v955_v6 = vpop.f32.mrb[18].mxu1  ;;  %9367 = vmatpush3.bf16.msra.mxu1 %v10536_v9 }
 0x2e0   : > { %v956_v8 = vadd.f32 %v955_v6, %v10623_v48  ;;  %v957_v12 = vpop.f32.mrb[19].mxu1  ;;  %9360 = vmatprep.subr.bf16.mxu1 %v10539_v11 }
 0x2e1   : > { %v958_v3 = vadd.f32 %v957_v12, %v10626_v50  ;;  %1153 = vmatprep.mubr.f32.mxu1 %v989_v5  ;;  %v8871_v5 = vpack.c.bf16 %v10694_v63, %v10689_v62  ;;  %v10703_v12 = vld [vmem:[%s12351_s6 + $0x40] sm:$0xff] }
 0x2e2   : > { %1154 = vmatmul.mubr.f32.gmra.mrb[32].mxu1 %v988_v7  ;;  %v990_v14 = vmax.f32 %v956_v8, 0.0 }
 0x2e3   : > { %v991_v13 = vmax.f32 %v958_v3, 0.0  ;;  %v961_v4 = vpop.f32.mrb[20].mxu1  ;;  %9368 = vmatpush3.bf16.msra.mxu1 %v10554_v16  ;;  %v10708_v3 = vld [vmem:[%s12351_s6 + $0x48] sm:$0xff] }
 0x2e4   : > { %v962_v15 = vadd.f32 %v961_v4, %v10623_v48  ;;  %v963_v18 = vpop.f32.mrb[21].mxu1  ;;  %9361 = vmatprep.subr.bf16.mxu1 %v10557_v17 }
 0x2e5   : > { %v964_v9 = vadd.f32 %v963_v18, %v10626_v50  ;;  %1159 = vmatprep.mubr.f32.mxu1 %v991_v13 }
 0x2e6   : > { %1160 = vmatmul.mubr.f32.gmra.mrb[34].mxu1 %v990_v14  ;;  %v992_v21 = vmax.f32 %v962_v15, 0.0  ;;  %v8874_v15 = vpack.c.bf16 %v10708_v3, %v10703_v12 }
 0x2e7   : > { %v993_v20 = vmax.f32 %v964_v9, 0.0  ;;  %v967_v11 = vpop.f32.mrb[22].mxu1  ;;  %9369 = vmatpush3.bf16.msra.mxu1 %v10572_v24 }
 0x2e8   : > { %v968_v22 = vadd.f32 %v967_v11, %v10623_v48  ;;  %v969_v26 = vpop.f32.mrb[23].mxu1  ;;  %9362 = vmatprep.subr.bf16.mxu1 %v10575_v25 }
 0x2e9   : > { %v970_v16 = vadd.f32 %v969_v26, %v10626_v50  ;;  %1165 = vmatprep.mubr.f32.mxu1 %v993_v20 }
 0x2ea   : > { %1166 = vmatmul.mubr.f32.gmra.mrb[36].mxu1 %v992_v21  ;;  %v994_v29 = vmax.f32 %v968_v22, 0.0 }
 0x2eb   : > { %v995_v28 = vmax.f32 %v970_v16, 0.0  ;;  %v973_v17 = vpop.f32.mrb[24].mxu1  ;;  %9370 = vmatpush3.bf16.msra.mxu1 %v10590_v32 }
 0x2ec   : > { %v974_v30 = vadd.f32 %v973_v17, %v10623_v48  ;;  %v975_v34 = vpop.f32.mrb[25].mxu1  ;;  %9363 = vmatprep.subr.bf16.mxu1 %v10593_v33 }
 0x2ed   : > { %1171 = vmatprep.mubr.f32.mxu1 %v995_v28  ;;  %v976_v24 = vadd.f32 %v975_v34, %v10626_v50 }
 0x2ee   : > { %1172 = vmatmul.mubr.f32.gmra.mrb[38].mxu1 %v994_v29  ;;  %v996_v36 = vmax.f32 %v974_v30, 0.0 }
 0x2ef   : > { %v997_v25 = vmax.f32 %v976_v24, 0.0  ;;  %v979_v37 = vpop.f32.mrb[26].mxu1  ;;  %9371 = vmatpush3.bf16.msra.mxu1 %v10608_v40  ;;  %v1219_v40 = vld [vmem:[%s12349_s4 + $0x210] sm:$0xff] }
 0x2f0   : > { %v980_v38 = vadd.f32 %v979_v37, %v10623_v48  ;;  %v981_v42 = vpop.f32.mrb[27].mxu1  ;;  %9364 = vmatprep.subr.bf16.mxu1 %v10611_v41  ;;  %v8864_v48 = vpack.c.bf16 %v1219_v40, %v1218_v45  ;;  %v1236_v41 = vld [vmem:[%s12349_s4 + $0x298] sm:$0xff] }
 0x2f1   : > { %v982_v32 = vadd.f32 %v981_v42, %v10626_v50  ;;  %1177 = vmatprep.mubr.f32.mxu1 %v997_v25  ;;  %v1237_v50 = vld [vmem:[%s12349_s4 + $0x2a0] sm:$0xff] }
 0x2f2   : > { %v998_v43 = vmax.f32 %v980_v38, 0.0  ;;  %1178 = vmatmul.mubr.f32.gmra.mrb[40].mxu1 %v996_v36  ;;  %8865 = vmatpush3.bf16.msra.mxu0 %v8864_v48  ;;  %v8866_v51 = vpack.c.bf16 %v1237_v50, %v1236_v41 }
 0x2f3   : > { %v999_v33 = vmax.f32 %v982_v32, 0.0  ;;  %9372 = vmatpush3.bf16.msra.mxu1 %v8864_v48 }
 0x2f4   : > { %8867 = vmatprep.subr.bf16.mxu0 %v8866_v51  ;;  %9365 = vmatprep.subr.bf16.mxu1 %v8866_v51 }
 0x2f5   : > { %1183 = vmatprep.mubr.f32.mxu1 %v999_v33 }
 0x2f6   : > { %1184 = vmatmul.mubr.f32.gmra.mrb[42].mxu1 %v998_v43  ;;  %8869 = vmatpush3.bf16.msra.mxu0 %v8868_v54 }
 0x2f7   : > { %9373 = vmatpush3.bf16.msra.mxu1 %v8868_v54  ;;  %8870 = vmatprep.subr.bf16.mxu0 %v9819_v55 }
 0x2f8   : > { %8035 = vmatprep.subr.mxu1 %v9818_v10 }
 0x3ad   : > { %v1143_v59 = vpop.f32.mrb[28].mxu1 }
 0x3ae   : > { %v1144_v60 = vadd.f32 %v1143_v59, %v10680_v57  ;;  %v1145_v61 = vpop.f32.mrb[29].mxu1 }
 0x3af   : > { %v1146_v0 = vadd.f32 %v1145_v61, %v10683_v58 }
 0x3b0   : > { %v1190_v6 = vmax.f32 %v1144_v60, 0.0 }
 0x3b1   : > { %v1191_v1 = vmax.f32 %v1146_v0, 0.0  ;;  %v1149_v2 = vpop.f32.mrb[30].mxu1 }
 0x3b2   : > { %v1150_v7 = vadd.f32 %v1149_v2, %v10680_v57  ;;  %v1151_v8 = vpop.f32.mrb[31].mxu1 }
 0x3b3   : > { %v1152_v13 = vadd.f32 %v1151_v8, %v10683_v58  ;;  %1307 = vmatprep.mubr.f32.mxu0 %v1191_v1 }
 0x3b4   : > { %1308 = vmatmul.mubr.f32.vlgmr.msra.gmra.mrb[8].mxu0 %v1190_v6  ;;  %v1192_v18 = vmax.f32 %v1150_v7, 0.0 }
 0x3b5   : > { %v1193_v4 = vmax.f32 %v1152_v13, 0.0  ;;  %v1155_v14 = vpop.f32.mrb[32].mxu1  ;;  %8872 = vmatpush3.bf16.msra.mxu0 %v8871_v5 }
 0x3b6   : > { %v1156_v9 = vadd.f32 %v1155_v14, %v10680_v57  ;;  %v1157_v20 = vpop.f32.mrb[33].mxu1  ;;  %8873 = vmatprep.subr.bf16.mxu0 %v9819_v55 }
 0x3b7   : > { %v1158_v11 = vadd.f32 %v1157_v20, %v10683_v58  ;;  %1312 = vmatprep.mubr.f32.mxu0 %v1193_v4 }
 0x3b8   : > { %1313 = vmatmul.mubr.f32.gmra.mrb[10].mxu0 %v1192_v18  ;;  %v1194_v26 = vmax.f32 %v1156_v9, 0.0 }
 0x3b9   : > { %v1195_v21 = vmax.f32 %v1158_v11, 0.0  ;;  %v1161_v22 = vpop.f32.mrb[34].mxu1  ;;  %8875 = vmatpush3.bf16.msra.mxu0 %v8874_v15 }
 0x3ba   : > { %v1162_v16 = vadd.f32 %v1161_v22, %v10680_v57  ;;  %v1163_v28 = vpop.f32.mrb[35].mxu1  ;;  %8876 = vmatprep.subr.bf16.mxu0 %v9819_v55 }
 0x3bb   : > { %v1164_v17 = vadd.f32 %v1163_v28, %v10683_v58  ;;  %1317 = vmatprep.mubr.f32.mxu0 %v1195_v21 }
 0x3bc   : > { %1318 = vmatmul.mubr.f32.gmra.mrb[12].mxu0 %v1194_v26  ;;  %v1196_v34 = vmax.f32 %v1162_v16, 0.0 }
 0x3bd   : > { %v1197_v29 = vmax.f32 %v1164_v17, 0.0  ;;  %v1167_v30 = vpop.f32.mrb[36].mxu1 }
 0x3be   : > { %v1168_v24 = vadd.f32 %v1167_v30, %v10680_v57  ;;  %v1169_v36 = vpop.f32.mrb[37].mxu1 }
 0x3bf   : > { %v1170_v25 = vadd.f32 %v1169_v36, %v10683_v58  ;;  %1322 = vmatprep.mubr.f32.mxu0 %v1197_v29 }
 0x3c0   : > { %1323 = vmatmul.mubr.f32.gmra.mrb[14].mxu0 %v1196_v34  ;;  %v1198_v42 = vmax.f32 %v1168_v24, 0.0  ;;  %v7235_v24 = vld [vmem:[%s12351_s6 + $0x28] ss:$0 sm:$0xff] }
 0x3c1   : > { %v1199_v37 = vmax.f32 %v1170_v25, 0.0  ;;  %v1173_v38 = vpop.f32.mrb[38].mxu1 }
 0x3c2   : > { %v1174_v32 = vadd.f32 %v1173_v38, %v10680_v57  ;;  %v1175_v43 = vpop.f32.mrb[39].mxu1 }
 0x3c3   : > { %v1176_v33 = vadd.f32 %v1175_v43, %v10683_v58  ;;  %1327 = vmatprep.mubr.f32.mxu0 %v1199_v37 }
 0x3c4   : > { %1328 = vmatmul.mubr.f32.gmra.mrb[16].mxu0 %v1198_v42  ;;  %v1200_v48 = vmax.f32 %v1174_v32, 0.0 }
 0x3c5   : > { %v1201_v45 = vmax.f32 %v1176_v33, 0.0  ;;  %v1179_v40 = vpop.f32.mrb[40].mxu1 }
 0x3c6   : > { %v1180_v41 = vadd.f32 %v1179_v40, %v10680_v57  ;;  %v1181_v50 = vpop.f32.mrb[41].mxu1 }
 0x3c7   : > { %1332 = vmatprep.mubr.f32.mxu0 %v1201_v45  ;;  %v1182_v51 = vadd.f32 %v1181_v50, %v10683_v58 }
 0x3c8   : > { %1333 = vmatmul.mubr.f32.gmra.mrb[18].mxu0 %v1200_v48  ;;  %v1202_v52 = vmax.f32 %v1180_v41, 0.0 }
 0x3c9   : > { %8001 = vmatprep.mubr.msk.f32.mxu0 %vm9820_vm2, %v9818_v10  ;;  %v1203_v54 = vmax.f32 %v1182_v51, 0.0  ;;  %v1185_v56 = vpop.f32.mrb[42].mxu1 }
 0x3ca   : > { %v1186_v59 = vadd.f32 %v1185_v56, %v10680_v57  ;;  %v1187_v60 = vpop.f32.mrb[43].mxu1  ;;  %v9399_v57 = vpack.i.bf16 %v10694_v63, %v10689_v62 }
 0x3cb   : > { %v1188_v61 = vadd.f32 %v1187_v60, %v10683_v58  ;;  %1337 = vmatprep.mubr.f32.mxu1 %v1203_v54  ;;  %v9404_v58 = vpack.i.bf16 %v10708_v3, %v10703_v12 }
 0x3cc   : > { %8002 = vmatmul.mubr.msk.f32.vlgmr.msra.gmra.mrb[20].mxu0 %vm846_vm1, %v10730_v53  ;;  %v1204_v0 = vmax.f32 %v1186_v59, 0.0  ;;  %1338 = vmatmul.mubr.f32.vlgmr.msra.gmra.mrb[44].mxu1 %v1202_v52 }
 0x3cd   : > { %v1205_v1 = vmax.f32 %v1188_v61, 0.0  ;;  %8012 = vmatprep.mubr.msk.f32.mxu0 %vm9820_vm2, %v9818_v10  ;;  %9400 = vrot.lane.b32.xlu0 %v9399_v57, %s9821_s18 }
 0x3cf   : > { %1342 = vmatprep.mubr.f32.mxu1 %v1205_v1 }
 0x3d0   : > { %1343 = vmatmul.mubr.f32.gmra.mrb[46].mxu1 %v1204_v0 }
 0x3d1   : > { %8037 = vmatprep.mubr.msk.f32.mxu1 %vm9820_vm2, %v9818_v10  ;;  %9405 = vrot.lane.b32.xlu0 %v9404_v58, %s9821_s18 }
 0x43f   : > { %v9401_v2 = vpop.permute.xlu0 %9400 }
 0x440   : > { %v9403_v5 = vunpack.i.h.bf16 %v9401_v2  ;;  %v9402_v6 = vunpack.i.l.bf16 %v9401_v2 }
 0x442   : > { %v8877_v7 = vpack.c.bf16 %v9403_v5, %v9402_v6 }
 0x443   : > { %v9406_v13 = vpop.permute.xlu0 %9405 }
 0x444   : > { %v9408_v14 = vunpack.i.h.bf16 %v9406_v13  ;;  %v9407_v15 = vunpack.i.l.bf16 %v9406_v13  ;;  %8878 = vmatpush3.bf16.msra.mxu0 %v8877_v7 }
 0x445   : > { %8879 = vmatprep.subr.bf16.mxu0 %v9819_v55 }
 0x446   : > { %v8880_v62 = vpack.c.bf16 %v9408_v14, %v9407_v15 }
 0x448   : > { %8881 = vmatpush3.bf16.msra.mxu0 %v8880_v62 }
 0x449   : > { %8015 = vmatprep.subr.mxu0 %v9818_v10 }
 0x44b   : > { %8013 = vmatmul.mubr.f32.vlgmr.msra.gmra.mrb[22].mxu0 %v9818_v10 }
 0x44c   : > { %8017 = vmatprep.mubr.msk.f32.mxu0 %vm9820_vm2, %v9818_v10 }
 0x487   : > { %v7591_v8 = vpop.f32.mrb[8].mxu0 }
 0x488   : > { %v7592_v4 = vpop.f32.mrb[9].mxu0 }
 0x489   : > { %v10746_v18 = vadd.f32 %v7592_v4, %v7591_v8 }
 0x48b   : > { %v7594_v63 = vpop.f32.mrb[10].mxu0 }
 0x48c   : > { %v7595_v9 = vpop.f32.mrb[11].mxu0 }
 0x48d   : > { %v10749_v12 = vadd.f32 %v7595_v9, %v7594_v63 }
 0x48f   : > { %v7597_v3 = vpop.f32.mrb[12].mxu0 }
 0x490   : > { %v7598_v20 = vpop.f32.mrb[13].mxu0 }
 0x491   : > { %v10755_v11 = vadd.f32 %v7598_v20, %v7597_v3 }
 0x493   : > { %v7600_v21 = vpop.f32.mrb[14].mxu0 }
 0x494   : > { %v7601_v22 = vpop.f32.mrb[15].mxu0 }
 0x495   : > { %v10757_v26 = vadd.f32 %v7601_v22, %v7600_v21 }
 0x497   : > { %v7603_v16 = vpop.f32.mrb[16].mxu0 }
 0x498   : > { %v7604_v28 = vpop.f32.mrb[17].mxu0 }
 0x499   : > { %v10759_v17 = vadd.f32 %v7604_v28, %v7603_v16 }
 0x49b   : > { %v7606_v29 = vpop.f32.mrb[18].mxu0 }
 0x49c   : > { %v7607_v30 = vpop.f32.mrb[19].mxu0 }
 0x49d   : > { %v10761_v34 = vadd.f32 %v7607_v30, %v7606_v29 }
 0x49f   : > { %v1443_v36 = vpop.f32.mrb[20].mxu0  ;;  %v7609_v25 = vpop.f32.mrb[44].mxu1 }
 0x4a0   : > { %v1444_v37 = vadd.f32 %v7235_v24, %v1443_v36  ;;  %v8003_v38 = vpop.f32.mrb[21].mxu0  ;;  %v7610_v42 = vpop.f32.mrb[45].mxu1 }
 0x4a1   : > { %v10766_v32 = vadd.f32 %v7610_v42, %v7609_v25 }
 0x4a2   : > { %1542 = vrot.lane.b32.xlu1 %v1444_v37, %s9822_s21  ;;  %v1540_v48 = vmul.f32 0.35355338, %v1444_v37 }
 0x4a3   : > { %v7612_v43 = vpop.f32.mrb[46].mxu1 }
 0x4a4   : > { %v7613_v33 = vpop.f32.mrb[47].mxu1 }
 0x4a5   : > { %v10769_v45 = vadd.f32 %v7613_v33, %v7612_v43 }
 0x514   : > { %v1543_v40 = vpop.permute.xlu1 %1542 }
 0x515   : > { %8016 = vmatpush3.xpose.msk.msra.mxu0 %vm1544_vm3, %v1543_v40 }
 0x516   : > { %8020 = vmatprep.subr.mxu0 %v9818_v10 }
 0x518   : > { %8018 = vmatmul.mubr.msk.f32.vlgmr.msra.gmra.mrb[24].mxu0 %vm1544_vm3, %v1540_v48 }
 0x519   : > { %8022 = vmatprep.mubr.msk.f32.mxu0 %vm9820_vm2, %v9818_v10 }
 0x51e   : > { %v1536_v41 = vpop.f32.mrb[22].mxu0 }
 0x51f   : > { %v8014_v50 = vpop.f32.mrb[23].mxu0 }
 0x5eb   : > { %v1616_v51 = vpop.f32.mrb[24].mxu0 }
 0x5ec   : > { %v8019_v52 = vpop.f32.mrb[25].mxu0  ;;  %v1620_v54 = vsel %vm1544_vm3, %v1616_v51, -inf }
 0x5ed   : > { %1621 = vmax.xlane.f32.xlu1 %v1620_v54 }
 0x5fe   : > { %1706 = vrot.lane.b32.xlu1 %v1444_v37, %s9823_s22 }
 0x602   : > { %1704 = vrot.lane.b32.xlu1 %v1540_v48, %s9824_s23 }
 0x606   : > { %1870 = vrot.lane.b32.xlu1 %v1540_v48, %s9825_s28 }
 0x60a   : > { %2035 = vrot.lane.b32.xlu1 %v1540_v48, %s9826_s15 }
 0x67a   : > { %v1622_v56 = vpop.xlane.xlu1 %1621 }
 0x67b   : > { %v1623_v59 = vsub.f32 %v1616_v51, %v1622_v56 }
 0x67d   : > { %v1624_v60 = vmul.f32 1.442695, %v1623_v59 }
 0x67e   : > { %v1707_v1 = vpop.permute.xlu1 %1706 }
 0x67f   : > { %9699 = vpow2.f32 %v1624_v60 }
 0x682   : > { %v1705_v58 = vpop.permute.xlu1 %1704 }
 0x686   : > { %v1871_v7 = vpop.permute.xlu1 %1870 }
 0x689   : > { %v9700_v61 = vpop.eup %9699 }
 0x68a   : > { %v1626_v0 = vsel %vm1544_vm3, %v9700_v61, 0.0  ;;  %v2036_v14 = vpop.permute.xlu1 %2035 }
 0x68b   : > { %1627 = vadd.xlane.f32.xlu0 %v1626_v0 }
 0x6a1   : > { %1464 = vrot.lane.b32.xlu0 %v7235_v24, %s9821_s18 }
 0x6a5   : > { %1872 = vrot.lane.b32.xlu0 %v1444_v37, %s9827_s24 }
 0x6a9   : > { %2037 = vrot.lane.b32.xlu0 %v1444_v37, %s9828_s25 }
 0x718   : > { %v1628_v57 = vpop.xlane.xlu0 %1627 }
 0x719   : > { %9701 = vrcp.f32 %v1628_v57 }
 0x71c   : > { %v1465_v2 = vpop.permute.xlu0 %1464 }
 0x71d   : > { %v1537_v5 = vadd.f32 %v1536_v41, %v1465_v2 }
 0x71f   : > { %8021 = vmatpush3.msra.mxu0 %v1537_v5 }
 0x720   : > { %v1873_v6 = vpop.permute.xlu0 %1872  ;;  %8025 = vmatprep.subr.mxu0 %v9818_v10 }
 0x721   : > { %8036 = vmatpush3.xpose.msk.msra.mxu1 %vm1544_vm3, %v1873_v6 }
 0x722   : > { %8045 = vmatprep.subr.mxu1 %v9818_v10 }
 0x723   : > { %v9702_v8 = vpop.eup %9701 }
 0x724   : > { %v2038_v13 = vpop.permute.xlu0 %2037  ;;  %8038 = vmatmul.mubr.msk.f32.vlgmr.msra.gmra.mrb[48].mxu1 %vm1544_vm3, %v1871_v7  ;;  %v1630_v4 = vmul.f32 %v9702_v8, %v9700_v61  ;;  %v1365_v7 = vld [vmem:[%s12349_s4 + $0xa8] sm:$0xff]  ;;  %v1366_v8 = vld [vmem:[%s12349_s4 + $0xb0] sm:$0xff] }
 0x725   : > { %8046 = vmatpush3.xpose.msk.msra.mxu1 %vm1544_vm3, %v2038_v13  ;;  %8047 = vmatprep.mubr.msk.f32.mxu1 %vm9820_vm2, %v9818_v10  ;;  %v8883_v13 = vpack.c.bf16 %v1366_v8, %v1365_v7 }
 0x726   : > { %8023 = vmatmul.mubr.msk.f32.vlgmr.msra.gmra.mrb[26].mxu0 %vm1544_vm3, %v1630_v4  ;;  %8882 = vmatprep.subr.bf16.mxu1 %v9819_v55  ;;  %v1367_v4 = vld [vmem:[%s12349_s4 + $0xb8] sm:$0xff] }
 0x727   : > { %8026 = vmatpush3.xpose.msk.msra.mxu0 %vm1544_vm3, %v1707_v1  ;;  %8027 = vmatprep.mubr.msk.f32.mxu0 %vm9820_vm2, %v9818_v10 }
 0x728   : > { %8048 = vmatmul.mubr.msk.f32.vlgmr.msra.gmra.mrb[50].mxu1 %vm1544_vm3, %v2036_v14  ;;  %8030 = vmatprep.subr.mxu0 %v9818_v10  ;;  %v1368_v14 = vld [vmem:[%s12349_s4 + $0xc0] sm:$0xff] }
 0x729   : > { %8063 = vmatprep.mubr.msk.f32.mxu1 %vm9820_vm2, %v9818_v10  ;;  %8884 = vmatpush3.bf16.msra.mxu1 %v8883_v13  ;;  %v367_v13 = vld [vmem:[%s12347_s2 + $0x28] sm:$0xff] }
 0x72a   : > { %8028 = vmatmul.mubr.msk.f32.vlgmr.msra.gmra.mrb[28].mxu0 %vm1544_vm3, %v1705_v58  ;;  %8885 = vmatprep.subr.bf16.mxu1 %v9819_v55 }
 0x72b   : > { %8032 = vmatprep.mubr.msk.f32.mxu0 %vm9820_vm2, %v9818_v10 }
 0x7f7   : > { %v1944_v15 = vpop.f32.mrb[48].mxu1 }
 0x7f8   : > { %v8039_v62 = vpop.f32.mrb[49].mxu1  ;;  %v1948_v63 = vsel %vm1544_vm3, %v1944_v15, -inf }
 0x7f9   : > { %1949 = vmax.xlane.f32.xlu1 %v1948_v63  ;;  %v10805_v9 = vpop.f32.mrb[26].mxu0 }
 0x7fa   : > { %v8024_v3 = vpop.f32.mrb[27].mxu0 }
 0x7fb   : > { %v2109_v20 = vpop.f32.mrb[50].mxu1 }
 0x7fc   : > { %v8049_v21 = vpop.f32.mrb[51].mxu1  ;;  %v2113_v29 = vsel %vm1544_vm3, %v2109_v20, -inf }
 0x7fd   : > { %v1778_v22 = vpop.f32.mrb[28].mxu0  ;;  %v10845_v21 = vld [vmem:[%s12351_s6 + $0x8] sm:$0xff] }
 0x7fe   : > { %v8029_v16 = vpop.f32.mrb[29].mxu0  ;;  %v1782_v28 = vsel %vm1544_vm3, %v1778_v22, -inf }
 0x7ff   : > { %1783 = vmax.xlane.f32.xlu0 %v1782_v28 }
 0x803   : > { %2114 = vmax.xlane.f32.xlu0 %v2113_v29 }
 0x886   : > { %v1950_v30 = vpop.xlane.xlu1 %1949 }
 0x887   : > { %v1951_v24 = vsub.f32 %v1944_v15, %v1950_v30  ;;  %v8886_v15 = vpack.c.bf16 %v1368_v14, %v1367_v4  ;;  %v10860_v30 = vld [vmem:[%s12351_s6 + $0x18] sm:$0xff] }
 0x889   : > { %v1952_v36 = vmul.f32 1.442695, %v1951_v24  ;;  %8887 = vmatpush3.bf16.msra.mxu1 %v8886_v15  ;;  %v10865_v24 = vld [vmem:[%s12351_s6 + $0x20] sm:$0xff]  ;;  %v369_v15 = vld [vmem:[%s12347_s2 + $0x38] sm:$0xff] }
 0x88b   : > { %9703 = vpow2.f32 %v1952_v36  ;;  %v10871_v36 = vpack.i.bf16 %v10865_v24, %v10860_v30 }
 0x88c   : > { %v1784_v25 = vpop.xlane.xlu0 %1783 }
 0x88d   : > { %v1785_v37 = vsub.f32 %v1778_v22, %v1784_v25  ;;  %v10850_v22 = vld [vmem:[%s12351_s6 + $0x10] sm:$0xff]  ;;  %v7234_v25 = vld [vmem:[%s12349_s4 + $0x1a0] ss:$0 sm:$0xff] }
 0x88e   : > { %v10855_v29 = vpack.i.bf16 %v10850_v22, %v10845_v21  ;;  %v10936_v7 = vadd.f32 %v10766_v32, %v7234_v25  ;;  %v10952_v32 = vadd.f32 %v10769_v45, %v7234_v25  ;;  %v7249_v45 = vld [vmem:[%s12349_s4 + $0xa0] ss:$0 sm:$0xff] }
 0x88f   : > { %v1786_v43 = vmul.f32 1.442695, %v1785_v37 }
 0x890   : > { %v2115_v38 = vpop.xlane.xlu0 %2114 }
 0x891   : > { %v2116_v42 = vsub.f32 %v2109_v20, %v2115_v38  ;;  %v10879_v38 = vadd.f32 %v10746_v18, %v7234_v25 }
 0x893   : > { %v2117_v33 = vmul.f32 1.442695, %v2116_v42 }
 0x895   : > { %v9704_v40 = vpop.eup %9703  ;;  %9705 = vpow2.f32 %v2117_v33 }
 0x896   : > { %v1954_v48 = vsel %vm1544_vm3, %v9704_v40, 0.0  ;;  %9707 = vpow2.f32 %v1786_v43  ;;  %v362_v43 = vld [vmem:[%s12347_s2] sm:$0xff] }
 0x897   : > { %1955 = vadd.xlane.f32.xlu1 %v1954_v48 }
 0x89f   : > { %v9706_v41 = vpop.eup %9705 }
 0x8a0   : > { %v2119_v50 = vsel %vm1544_vm3, %v9706_v41, 0.0  ;;  %v9708_v51 = vpop.eup %9707 }
 0x8a1   : > { %2120 = vadd.xlane.f32.xlu0 %v2119_v50  ;;  %v1788_v52 = vsel %vm1544_vm3, %v9708_v51, 0.0  ;;  %v10889_v50 = vadd.f32 %v10879_v38, %v362_v43 }
 0x8a5   : > { %1789 = vadd.xlane.f32.xlu0 %v1788_v52 }
 0x8a8   : > { %1794 = vrot.lane.b32.xlu1 %v1537_v5, %s9824_s23 }
 0x8ac   : > { %2124 = vrot.lane.b32.xlu1 %v1537_v5, %s9826_s15 }
 0x8bb   : > { %1959 = vrot.lane.b32.xlu0 %v1537_v5, %s9825_s28 }
 0x924   : > { %v1956_v54 = vpop.xlane.xlu1 %1955 }
 0x928   : > { %v1795_v56 = vpop.permute.xlu1 %1794 }
 0x929   : > { %8031 = vmatpush3.msra.mxu0 %v1795_v56 }
 0x92a   : > { %8040 = vmatprep.subr.mxu0 %v9818_v10 }
 0x92c   : > { %v2125_v5 = vpop.permute.xlu1 %2124 }
 0x92e   : > { %v2121_v59 = vpop.xlane.xlu0 %2120 }
 0x932   : > { %v1790_v60 = vpop.xlane.xlu0 %1789 }
 0x933   : > { %9709 = vrcp.f32 %v1790_v60  ;;  %v10895_v60 = vadd.f32 %v10749_v12, %v7234_v25  ;;  %v10910_v12 = vadd.f32 %v10757_v26, %v7234_v25  ;;  %v366_v26 = vld [vmem:[%s12347_s2 + $0x20] sm:$0xff] }
 0x934   : > { %9711 = vrcp.f32 %v1956_v54 }
 0x935   : > { %9713 = vrcp.f32 %v2121_v59 }
 0x936   : > { %v1960_v57 = vpop.permute.xlu0 %1959 }
 0x93d   : > { %v9710_v61 = vpop.eup %9709 }
 0x93e   : > { %v1792_v0 = vmul.f32 %v9710_v61, %v9708_v51  ;;  %v9712_v1 = vpop.eup %9711 }
 0x93f   : > { %v1958_v58 = vmul.f32 %v9712_v1, %v9704_v40  ;;  %v9714_v2 = vpop.eup %9713  ;;  %v10901_v1 = vadd.f32 %v10755_v11, %v7234_v25 }
 0x940   : > { %8033 = vmatmul.mubr.msk.f32.vlgmr.msra.gmra.mrb[30].mxu0 %vm1544_vm3, %v1792_v0  ;;  %v2123_v6 = vmul.f32 %v9714_v2, %v9706_v41  ;;  %v363_v0 = vld [vmem:[%s12347_s2 + $0x8] sm:$0xff]  ;;  %v10914_v2 = vadd.f32 %v10759_v17, %v7234_v25  ;;  %v10930_v17 = vadd.f32 %v10761_v34, %v7234_v25  ;;  %v368_v34 = vld [vmem:[%s12347_s2 + $0x30] sm:$0xff] }
 0x941   : > { %8041 = vmatpush3.msra.mxu0 %v1960_v57  ;;  %8042 = vmatprep.mubr.msk.f32.mxu0 %vm9820_vm2, %v9818_v10  ;;  %v364_v57 = vld [vmem:[%s12347_s2 + $0x10] sm:$0xff]  ;;  %v10958_v14 = vadd.f32 %v10936_v7, %v368_v34 }
 0x942   : > { %8050 = vmatprep.subr.mxu0 %v9818_v10  ;;  %v10917_v11 = vadd.f32 %v10901_v1, %v364_v57  ;;  %v10939_v8 = vadd.f32 %v10914_v2, %v366_v26  ;;  %v10955_v4 = vadd.f32 %v10930_v17, %v367_v13 }
 0x944   : > { %8043 = vmatmul.mubr.msk.f32.vlgmr.msra.gmra.mrb[32].mxu0 %vm1544_vm3, %v1958_v58  ;;  %v10907_v58 = vadd.f32 %v10895_v60, %v363_v0 }
 0x945   : > { %8051 = vmatpush3.msra.mxu0 %v2125_v5  ;;  %8052 = vmatprep.mubr.msk.f32.mxu0 %vm9820_vm2, %v9818_v10  ;;  %v365_v5 = vld [vmem:[%s12347_s2 + $0x18] sm:$0xff] }
 0x946   : > { %8888 = vmatprep.subr.bf16.mxu0 %v9819_v55 }
 0x948   : > { %8053 = vmatmul.mubr.msk.f32.vlgmr.msra.gmra.mrb[34].mxu0 %vm1544_vm3, %v2123_v6  ;;  %v10933_v6 = vadd.f32 %v10910_v12, %v365_v5 }
 0x949   : > { %8074 = vmatprep.mubr.msk.f32.mxu0 %vm9820_vm2, %v9818_v10 }
 0xa13   : > { %v1866_v62 = vpop.f32.mrb[30].mxu0 }
 0xa14   : > { %2201 = vrot.lane.b32.xlu1 %v1866_v62, %s9829_s17  ;;  %v8034_v63 = vpop.f32.mrb[31].mxu0  ;;  %v10968_v62 = vadd.f32 %v10952_v32, %v369_v15 }
 0xa17   : > { %v2031_v3 = vpop.f32.mrb[32].mxu0 }
 0xa18   : > { %2205 = vrot.lane.b32.xlu0 %v2031_v3, %s9830_s19  ;;  %v8044_v20 = vpop.f32.mrb[33].mxu0 }
 0xa1b   : > { %v2196_v16 = vpop.f32.mrb[34].mxu0 }
 0xa1c   : > { %2209 = vrot.lane.b32.xlu1 %v2196_v16, %s12355_s29  ;;  %v8054_v28 = vpop.f32.mrb[35].mxu0 }
 0xa20   : > { %9410 = vrot.lane.b32.xlu1 %v10855_v29, %s9822_s21 }
 0xa24   : > { %9415 = vrot.lane.b32.xlu1 %v10871_v36, %s9822_s21 }
 0xa86   : > { %v2202_v37 = vpop.permute.xlu1 %2201 }
 0xa87   : > { %v2212_v33 = vsel %vm1544_vm3, %v10805_v9, %v2202_v37 }
 0xa8a   : > { %v2206_v42 = vpop.permute.xlu0 %2205 }
 0xa8b   : > { %v2213_v40 = vsel %vm696_vm0, %v2212_v33, %v2206_v42  ;;  %v10981_v33 = vld [vmem:[%s12351_s6] ss:$0 sm:$0xff] }
 0xa8e   : > { %v2210_v48 = vpop.permute.xlu1 %2209 }
 0xa8f   : > { %v2215_v41 = vsel %vm2214_vm4, %v2213_v40, %v2210_v48 }
 0xa90   : > { %8064 = vmatmul.mubr.msk.f32.vlgmr.msra.gmra.mrb[52].mxu1 %vm846_vm1, %v2215_v41 }
 0xa91   : > { %8085 = vmatprep.mubr.msk.f32.mxu1 %vm846_vm1, %v10889_v50 }
 0xa92   : > { %v9411_v18 = vpop.permute.xlu1 %9410 }
 0xa93   : > { %v9413_v51 = vunpack.i.h.bf16 %v9411_v18  ;;  %v9412_v52 = vunpack.i.l.bf16 %v9411_v18 }
 0xa95   : > { %v8894_v54 = vpack.c.bf16 %v9413_v51, %v9412_v52 }
 0xa96   : > { %v9416_v56 = vpop.permute.xlu1 %9415 }
 0xa97   : > { %v9418_v59 = vunpack.i.h.bf16 %v9416_v56  ;;  %v9417_v9 = vunpack.i.l.bf16 %v9416_v56  ;;  %8895 = vmatprep.subr.bf16.mxu1 %v8894_v54 }
 0xa98   : > { %8897 = vmatpush3.bf16.msra.mxu1 %v8894_v54 }
 0xa99   : > { %v8898_v61 = vpack.c.bf16 %v9418_v59, %v9417_v9 }
 0xa9b   : > { %8899 = vmatprep.subr.bf16.mxu1 %v8898_v61 }
 0xa9c   : > { %8901 = vmatpush3.bf16.msra.mxu1 %v8898_v61 }
 0xa9d   : > { %8910 = vmatprep.subr.bf16.mxu1 %v9819_v55 }
 0xa9f   : > { %8086 = vmatmul.mubr.msk.f32.vlgmr.msra.gmra.mrb[54].mxu1 %vm846_vm1, %v10907_v58 }
 0xaa0   : > { %8088 = vmatprep.mubr.msk.f32.mxu1 %vm846_vm1, %v10917_v11 }
 0xaa3   : > { %8089 = vmatmul.mubr.msk.f32.gmra.mrb[56].mxu1 %vm846_vm1, %v10933_v6 }
 0xaa4   : > { %8091 = vmatprep.mubr.msk.f32.mxu1 %vm846_vm1, %v10939_v8 }
 0xaa7   : > { %8092 = vmatmul.mubr.msk.f32.gmra.mrb[58].mxu1 %vm846_vm1, %v10955_v4 }
 0xaa8   : > { %8094 = vmatprep.mubr.msk.f32.mxu1 %vm846_vm1, %v10958_v14 }
 0xaab   : > { %8095 = vmatmul.mubr.msk.f32.gmra.mrb[60].mxu1 %vm846_vm1, %v10968_v62 }
 0xaac   : > { %8133 = vmatprep.mubr.msk.f32.mxu1 %vm9820_vm2, %v9818_v10 }
 0xb63   : > { %v2289_v63 = vpop.f32.mrb[52].mxu1 }
 0xb64   : > { %v2290_v3 = vadd.f32 %v7249_v45, %v2289_v63  ;;  %v8065_v20 = vpop.f32.mrb[53].mxu1 }
 0xb66   : > { %v2296_v16 = vsel %vm846_vm1, %v2290_v3, 0.0 }
 0xb67   : > { %2297 = vadd.xlane.f32.xlu0 %v2296_v16 }
 0xb72   : > { %v8087_v28 = vpop.f32.mrb[54].mxu1 }
 0xb73   : > { %v2518_v25 = vpop.f32.mrb[55].mxu1 }
 0xb76   : > { %v8090_v37 = vpop.f32.mrb[56].mxu1 }
 0xb77   : > { %v2528_v42 = vpop.f32.mrb[57].mxu1 }
 0xb7a   : > { %v8093_v43 = vpop.f32.mrb[58].mxu1 }
 0xb7b   : > { %v2538_v40 = vpop.f32.mrb[59].mxu1 }
 0xb7d   : > { %2425 = vrot.lane.b32.xlu0 %v10981_v33, %s9822_s21 }
 0xb7e   : > { %v8096_v48 = vpop.f32.mrb[60].mxu1 }
 0xb7f   : > { %v2548_v41 = vpop.f32.mrb[61].mxu1 }
 0xb81   : > { %9425 = vrot.lane.b32.xlu0 %v10871_v36, %s9821_s18 }
 0xbf4   : > { %v2298_v18 = vpop.xlane.xlu0 %2297 }
 0xbf5   : > { %v2300_v51 = vmul.f32 0.03125, %v2298_v18 }
 0xbf7   : > { %v2301_v52 = vsub.f32 %v2290_v3, %v2300_v51 }
 0xbf8   : > { %v2426_v54 = vpop.permute.xlu0 %2425 }
 0xbf9   : > { %v2302_v56 = vmul.f32 %v2301_v52, %v2301_v52  ;;  %v2519_v59 = vadd.f32 %v2518_v25, %v2426_v54  ;;  %v2524_v9 = vadd.f32 %v8087_v28, %v2426_v54  ;;  %v2529_v61 = vadd.f32 %v2528_v42, %v2426_v54 }
 0xbfa   : > { %v2534_v57 = vadd.f32 %v8090_v37, %v2426_v54  ;;  %v2539_v5 = vadd.f32 %v2538_v40, %v2426_v54  ;;  %v2544_v26 = vadd.f32 %v8093_v43, %v2426_v54  ;;  %v2549_v13 = vadd.f32 %v2548_v41, %v2426_v54 }
 0xbfb   : > { %v2303_v36 = vsel %vm846_vm1, %v2302_v56, 0.0  ;;  %v8911_v34 = vpack.c.bf16 %v2524_v9, %v2519_v59  ;;  %v2554_v15 = vadd.f32 %v8096_v48, %v2426_v54  ;;  %v10994_v45 = vpack.i.bf16 %v2524_v9, %v2519_v59 }
 0xbfc   : > { %2304 = vadd.xlane.f32.xlu1 %v2303_v36  ;;  %v8915_v63 = vpack.c.bf16 %v2534_v57, %v2529_v61  ;;  %v8919_v3 = vpack.c.bf16 %v2544_v26, %v2539_v5  ;;  %v10996_v20 = vpack.i.bf16 %v2534_v57, %v2529_v61  ;;  %v10998_v16 = vpack.i.bf16 %v2544_v26, %v2539_v5 }
 0xbfd   : > { %8913 = vmatpush3.bf16.xpose.msk.msra.mxu1 %vm10989_vm5, %v8911_v34  ;;  %v8923_v28 = vpack.c.bf16 %v2554_v15, %v2549_v13  ;;  %v11002_v25 = vpack.i.bf16 %v2554_v15, %v2549_v13  ;;  %v8889_v37 = vpack.c.bf16 %v10850_v22, %v10845_v21  ;;  %v8892_v42 = vpack.c.bf16 %v10865_v24, %v10860_v30  ;;  %v7251_v21 = vld [vmem:[%s12349_s4 + $0x78] ss:$0 sm:$0xff]  ;;  %v9426_v22 = vpop.permute.xlu0 %9425  ;;  %v7252_v30 = vld [vmem:[%s12349_s4 + $0x70] ss:$0 sm:$0xff] }
 0xbfe   : > { %8914 = vmatprep.subr.bf16.mxu1 %v9819_v55  ;;  %v9428_v59 = vunpack.i.h.bf16 %v9426_v22  ;;  %v9427_v9 = vunpack.i.l.bf16 %v9426_v22 }
 0xbff   : > { %8890 = vmatpush3.bf16.msra.mxu0 %v8889_v37 }
 0xc00   : > { %8891 = vmatprep.subr.bf16.mxu0 %v9819_v55  ;;  %v8906_v5 = vpack.c.bf16 %v9428_v59, %v9427_v9 }
 0xc03   : > { %8893 = vmatpush3.bf16.msra.mxu0 %v8892_v42 }
 0xc05   : > { %8917 = vmatpush3.bf16.xpose.msk.msra.mxu1 %vm10989_vm5, %v8915_v63 }
 0xc06   : > { %8918 = vmatprep.subr.bf16.mxu1 %v9819_v55 }
 0xc0d   : > { %8921 = vmatpush3.bf16.xpose.msk.msra.mxu1 %vm10989_vm5, %v8919_v3  ;;  %9420 = vrot.lane.b32.xlu1 %v10855_v29, %s9821_s18 }
 0xc0e   : > { %8922 = vmatprep.subr.bf16.mxu1 %v9819_v55 }
 0xc15   : > { %8925 = vmatpush3.bf16.xpose.msk.msra.mxu1 %vm10989_vm5, %v8923_v28 }
 0xc16   : > { %8954 = vmatprep.subr.bf16.mxu1 %v9819_v55 }
 0xc89   : > { %v2305_v43 = vpop.xlane.xlu1 %2304 }
 0xc8a   : > { %v2306_v40 = vmul.f32 0.03125, %v2305_v43 }
 0xc8c   : > { %v2307_v29 = vadd.f32 1e-05, %v2306_v40 }
 0xc8d   : > { %v9421_v48 = vpop.permute.xlu1 %9420 }
 0xc8e   : > { %9715 = vrsqrt.f32 %v2307_v29  ;;  %v9423_v41 = vunpack.i.h.bf16 %v9421_v48  ;;  %v9422_v18 = vunpack.i.l.bf16 %v9421_v48 }
 0xc90   : > { %v8902_v51 = vpack.c.bf16 %v9423_v41, %v9422_v18 }
 0xc92   : > { %8903 = vmatprep.subr.bf16.mxu0 %v8902_v51 }
 0xc98   : > { %v9716_v54 = vpop.eup %9715 }
 0xc99   : > { %v2309_v56 = vmul.f32 %v9716_v54, %v2301_v52 }
 0xc9b   : > { %v2314_v24 = vmul.f32 %v7251_v21, %v2309_v56 }
 0xc9d   : > { %v11027_v61 = vadd.f32 %v7252_v30, %v2314_v24 }
 0xc9f   : > { %v2320_v57 = vadd.f32 %v11027_v61, %v10730_v53 }
 0xca1   : > { %8075 = vmatmul.mubr.msk.f32.vlgmr.msra.gmra.mrb[36].mxu0 %vm846_vm1, %v2320_v57 }
 0xca2   : > { %8905 = vmatpush3.bf16.msra.mxu0 %v8902_v51  ;;  %8105 = vmatprep.mubr.msk.f32.mxu0 %vm846_vm1, %v10879_v38 }
 0xca3   : > { %8907 = vmatprep.subr.bf16.mxu0 %v8906_v5 }
 0xca6   : > { %8909 = vmatpush3.bf16.msra.mxu0 %v8906_v5 }
 0xca7   : > { %8926 = vmatprep.subr.bf16.mxu0 %v9819_v55 }
 0xca9   : > { %8106 = vmatmul.mubr.msk.f32.vlgmr.msra.gmra.mrb[38].mxu0 %vm846_vm1, %v10895_v60 }
 0xcaa   : > { %8108 = vmatprep.mubr.msk.f32.mxu0 %vm846_vm1, %v10901_v1 }
 0xcad   : > { %8109 = vmatmul.mubr.msk.f32.gmra.mrb[40].mxu0 %vm846_vm1, %v10910_v12 }
 0xcae   : > { %8111 = vmatprep.mubr.msk.f32.mxu0 %vm846_vm1, %v10914_v2 }
 0xcb1   : > { %8112 = vmatmul.mubr.msk.f32.gmra.mrb[42].mxu0 %vm846_vm1, %v10930_v17 }
 0xcb2   : > { %8114 = vmatprep.mubr.msk.f32.mxu0 %vm846_vm1, %v10936_v7 }
 0xcb5   : > { %8115 = vmatmul.mubr.msk.f32.gmra.mrb[44].mxu0 %vm846_vm1, %v10952_v32 }
 0xcb6   : > { %8152 = vmatprep.mubr.msk.f32.mxu0 %vm9820_vm2, %v9818_v10 }
 0xd74   : > { %v2404_v53 = vpop.f32.mrb[36].mxu0 }
 0xd75   : > { %v2405_v52 = vadd.f32 %v10981_v33, %v2404_v53  ;;  %v8076_v26 = vpop.f32.mrb[37].mxu0 }
 0xd77   : > { %v11052_v13 = vmul.f32 0.35355338, %v2405_v52 }
 0xd79   : > { %8134 = vmatmul.mubr.msk.f32.vlgmr.msra.gmra.mrb[62].mxu1 %vm1544_vm3, %v11052_v13 }
 0xd7a   : > { %8190 = vmatprep.mubr.msk.f32.mxu1 %vm9820_vm2, %v9818_v10 }
 0xd7c   : > { %v8107_v36 = vpop.f32.mrb[38].mxu0 }
 0xd7d   : > { %v2662_v34 = vpop.f32.mrb[39].mxu0 }
 0xd80   : > { %v8110_v15 = vpop.f32.mrb[40].mxu0 }
 0xd81   : > { %v2672_v63 = vpop.f32.mrb[41].mxu0 }
 0xd84   : > { %v8113_v3 = vpop.f32.mrb[42].mxu0 }
 0xd85   : > { %v2682_v28 = vpop.f32.mrb[43].mxu0 }
 0xd88   : > { %v8116_v37 = vpop.f32.mrb[44].mxu0 }
 0xd89   : > { %v2692_v42 = vpop.f32.mrb[45].mxu0 }
 0xe4c   : > { %v2795_v43 = vpop.f32.mrb[62].mxu1 }
 0xe4d   : > { %v8135_v40 = vpop.f32.mrb[63].mxu1  ;;  %v2800_v29 = vsel %vm2799_vm6, %v2795_v43, -inf }
 0xe4e   : > { %2801 = vmax.xlane.f32.xlu0 %v2800_v29 }
 0xe64   : > { %2569 = vrot.lane.b32.xlu0 %v10981_v33, %s9821_s18 }
 0xe68   : > { %9435 = vrot.lane.b32.xlu0 %v10996_v20, %s9824_s23 }
 0xe6c   : > { %9440 = vrot.lane.b32.xlu0 %v10998_v16, %s9824_s23 }
 0xe70   : > { %2884 = vrot.lane.b32.xlu0 %v11052_v13, %s9824_s23 }
 0xedb   : > { %v2802_v48 = vpop.xlane.xlu0 %2801 }
 0xedc   : > { %v2803_v41 = vsub.f32 %v2795_v43, %v2802_v48 }
 0xede   : > { %v2804_v18 = vmul.f32 1.442695, %v2803_v41 }
 0xedf   : > { %v2570_v51 = vpop.permute.xlu0 %2569 }
 0xee0   : > { %9717 = vpow2.f32 %v2804_v18  ;;  %v2663_v54 = vadd.f32 %v2662_v34, %v2570_v51  ;;  %v2668_v21 = vadd.f32 %v8107_v36, %v2570_v51  ;;  %v2673_v22 = vadd.f32 %v2672_v63, %v2570_v51 }
 0xee1   : > { %v2678_v56 = vadd.f32 %v8110_v15, %v2570_v51  ;;  %v2683_v30 = vadd.f32 %v2682_v28, %v2570_v51  ;;  %v2688_v33 = vadd.f32 %v8113_v3, %v2570_v51  ;;  %v2693_v24 = vadd.f32 %v2692_v42, %v2570_v51 }
 0xee2   : > { %v11067_v59 = vpack.i.bf16 %v2668_v21, %v2663_v54  ;;  %v8927_v9 = vpack.c.bf16 %v2668_v21, %v2663_v54  ;;  %v2698_v57 = vadd.f32 %v8116_v37, %v2570_v51 }
 0xee3   : > { %v8930_v5 = vpack.c.bf16 %v2678_v56, %v2673_v22  ;;  %v8933_v53 = vpack.c.bf16 %v2688_v33, %v2683_v30  ;;  %v11069_v52 = vpack.i.bf16 %v2678_v56, %v2673_v22  ;;  %v11071_v26 = vpack.i.bf16 %v2688_v33, %v2683_v30  ;;  %v9436_v3 = vpop.permute.xlu0 %9435 }
 0xee4   : > { %9450 = vrot.lane.b32.xlu0 %v11067_v59, %s9824_s23  ;;  %8928 = vmatpush3.bf16.msra.mxu0 %v8927_v9  ;;  %v8936_v36 = vpack.c.bf16 %v2698_v57, %v2693_v24  ;;  %v11076_v34 = vpack.i.bf16 %v2698_v57, %v2693_v24  ;;  %v9438_v56 = vunpack.i.h.bf16 %v9436_v3  ;;  %v9437_v30 = vunpack.i.l.bf16 %v9436_v3 }
 0xee5   : > { %8929 = vmatprep.subr.bf16.mxu0 %v9819_v55 }
 0xee6   : > { %v8943_v33 = vpack.c.bf16 %v9438_v56, %v9437_v30 }
 0xee7   : > { %v9441_v28 = vpop.permute.xlu0 %9440 }
 0xee8   : > { %8931 = vmatpush3.bf16.msra.mxu0 %v8930_v5  ;;  %v9443_v24 = vunpack.i.h.bf16 %v9441_v28  ;;  %v9442_v9 = vunpack.i.l.bf16 %v9441_v28 }
 0xee9   : > { %8932 = vmatprep.subr.bf16.mxu0 %v9819_v55 }
 0xeea   : > { %v9718_v15 = vpop.eup %9717  ;;  %v8947_v57 = vpack.c.bf16 %v9443_v24, %v9442_v9 }
 0xeeb   : > { %v2806_v63 = vsel %vm2799_vm6, %v9718_v15, 0.0  ;;  %v2885_v37 = vpop.permute.xlu0 %2884 }
 0xeec   : > { %2807 = vadd.xlane.f32.xlu1 %v2806_v63  ;;  %8934 = vmatpush3.bf16.msra.mxu0 %v8933_v53 }
 0xeed   : > { %8935 = vmatprep.subr.bf16.mxu0 %v9819_v55 }
 0xef0   : > { %8937 = vmatpush3.bf16.msra.mxu0 %v8936_v36 }
 0xef1   : > { %8938 = vmatprep.subr.bf16.mxu0 %v9819_v55 }
 0xefd   : > { %9430 = vrot.lane.b32.xlu1 %v10994_v45, %s9824_s23 }
 0xf01   : > { %9445 = vrot.lane.b32.xlu1 %v11002_v25, %s9824_s23 }
 0xf56   : > { %v9451_v42 = vpop.permute.xlu0 %9450 }
 0xf57   : > { %v9453_v43 = vunpack.i.h.bf16 %v9451_v42  ;;  %v9452_v40 = vunpack.i.l.bf16 %v9451_v42 }
 0xf59   : > { %v8955_v29 = vpack.c.bf16 %v9453_v43, %v9452_v40 }
 0xf5b   : > { %8956 = vmatpush3.bf16.msra.mxu1 %v8955_v29 }
 0xf5c   : > { %8957 = vmatprep.subr.bf16.mxu1 %v9819_v55 }
 0xf79   : > { %v2808_v48 = vpop.xlane.xlu1 %2807 }
 0xf7a   : > { %9719 = vrcp.f32 %v2808_v48 }
 0xf7d   : > { %v9431_v41 = vpop.permute.xlu1 %9430 }
 0xf7e   : > { %v9433_v18 = vunpack.i.h.bf16 %v9431_v41  ;;  %v9432_v51 = vunpack.i.l.bf16 %v9431_v41 }
 0xf80   : > { %v8939_v22 = vpack.c.bf16 %v9433_v18, %v9432_v51 }
 0xf81   : > { %v9446_v5 = vpop.permute.xlu1 %9445 }
 0xf82   : > { %v9448_v53 = vunpack.i.h.bf16 %v9446_v5  ;;  %v9447_v36 = vunpack.i.l.bf16 %v9446_v5 }
 0xf84   : > { %v9720_v54 = vpop.eup %9719 }
 0xf85   : > { %v2810_v21 = vmul.f32 %v9720_v54, %v9718_v15  ;;  %v8951_v15 = vpack.c.bf16 %v9448_v53, %v9447_v36 }
 0xf87   : > { %8153 = vmatmul.mubr.msk.f32.vlgmr.msra.gmra.mrb[46].mxu0 %vm2799_vm6, %v2810_v21 }
 0xf88   : > { %8941 = vmatpush3.bf16.xpose.msk.msra.mxu0 %vm10989_vm5, %v8939_v22  ;;  %8171 = vmatprep.mubr.msk.f32.mxu0 %vm9820_vm2, %v9818_v10 }
 0xf89   : > { %8942 = vmatprep.subr.bf16.mxu0 %v9819_v55 }
 0xf90   : > { %8945 = vmatpush3.bf16.xpose.msk.msra.mxu0 %vm10989_vm5, %v8943_v33 }
 0xf91   : > { %8946 = vmatprep.subr.bf16.mxu0 %v9819_v55 }
 0xf98   : > { %8949 = vmatpush3.bf16.xpose.msk.msra.mxu0 %vm10989_vm5, %v8947_v57 }
 0xf99   : > { %8950 = vmatprep.subr.bf16.mxu0 %v9819_v55 }
 0xfa0   : > { %8953 = vmatpush3.bf16.xpose.msk.msra.mxu0 %vm10989_vm5, %v8951_v15 }
 0xfa1   : > { %8982 = vmatprep.subr.bf16.mxu0 %v9819_v55 }
 0xfa7   : > { %8172 = vmatmul.mubr.msk.f32.vlgmr.msra.gmra.mrb[48].mxu0 %vm1544_vm3, %v2885_v37 }
 0xfa8   : > { %8228 = vmatprep.mubr.msk.f32.mxu0 %vm9820_vm2, %v9818_v10 }
0x105a   : > { %v11105_v63 = vpop.f32.mrb[46].mxu0 }
0x105b   : > { %v8154_v3 = vpop.f32.mrb[47].mxu0 }
0x107a   : > { %v2986_v28 = vpop.f32.mrb[48].mxu0 }
0x107b   : > { %v8173_v42 = vpop.f32.mrb[49].mxu0  ;;  %v2990_v43 = vsel %vm2799_vm6, %v2986_v28, -inf }
0x107c   : > { %2991 = vmax.xlane.f32.xlu1 %v2990_v43 }
0x108d   : > { %9455 = vrot.lane.b32.xlu1 %v11069_v52, %s9824_s23 }
0x1091   : > { %9460 = vrot.lane.b32.xlu1 %v11071_v26, %s9824_s23 }
0x1095   : > { %9470 = vrot.lane.b32.xlu1 %v10994_v45, %s9825_s28 }
0x1099   : > { %9480 = vrot.lane.b32.xlu1 %v10998_v16, %s9825_s28 }
0x109d   : > { %3106 = vrot.lane.b32.xlu1 %v11052_v13, %s9825_s28 }
0x10a1   : > { %9495 = vrot.lane.b32.xlu1 %v11069_v52, %s9825_s28 }
0x10a5   : > { %9505 = vrot.lane.b32.xlu1 %v11076_v34, %s9825_s28 }
0x1109   : > { %v2992_v37 = vpop.xlane.xlu1 %2991 }
0x110a   : > { %v2993_v40 = vsub.f32 %v2986_v28, %v2992_v37 }
0x110c   : > { %v2994_v29 = vmul.f32 1.442695, %v2993_v40 }
0x110d   : > { %v9456_v48 = vpop.permute.xlu1 %9455 }
0x110e   : > { %9721 = vpow2.f32 %v2994_v29  ;;  %v9458_v41 = vunpack.i.h.bf16 %v9456_v48  ;;  %v9457_v18 = vunpack.i.l.bf16 %v9456_v48 }
0x1110   : > { %v8958_v51 = vpack.c.bf16 %v9458_v41, %v9457_v18 }
0x1111   : > { %v9461_v54 = vpop.permute.xlu1 %9460 }
0x1112   : > { %v9463_v21 = vunpack.i.h.bf16 %v9461_v54  ;;  %v9462_v22 = vunpack.i.l.bf16 %v9461_v54  ;;  %8959 = vmatpush3.bf16.msra.mxu1 %v8958_v51 }
0x1113   : > { %8960 = vmatprep.subr.bf16.mxu1 %v9819_v55 }
0x1114   : > { %v8961_v56 = vpack.c.bf16 %v9463_v21, %v9462_v22 }
0x1115   : > { %v9471_v36 = vpop.permute.xlu1 %9470 }
0x1116   : > { %8962 = vmatpush3.bf16.msra.mxu1 %v8961_v56  ;;  %v9473_v3 = vunpack.i.h.bf16 %v9471_v36  ;;  %v9472_v28 = vunpack.i.l.bf16 %v9471_v36 }
0x1117   : > { %8963 = vmatprep.subr.bf16.mxu1 %v9819_v55 }
0x1118   : > { %v9722_v30 = vpop.eup %9721  ;;  %v8967_v43 = vpack.c.bf16 %v9473_v3, %v9472_v28 }
0x1119   : > { %v2996_v33 = vsel %vm2799_vm6, %v9722_v30, 0.0  ;;  %v9481_v41 = vpop.permute.xlu1 %9480 }
0x111a   : > { %2997 = vadd.xlane.f32.xlu0 %v2996_v33  ;;  %v9483_v18 = vunpack.i.h.bf16 %v9481_v41  ;;  %v9482_v51 = vunpack.i.l.bf16 %v9481_v41 }
0x111c   : > { %v8975_v54 = vpack.c.bf16 %v9483_v18, %v9482_v51 }
0x111d   : > { %v3107_v33 = vpop.permute.xlu1 %3106 }
0x1121   : > { %v9496_v28 = vpop.permute.xlu1 %9495 }
0x1125   : > { %v9506_v18 = vpop.permute.xlu1 %9505 }
0x1130   : > { %9465 = vrot.lane.b32.xlu0 %v11076_v34, %s9824_s23 }
0x1134   : > { %9475 = vrot.lane.b32.xlu0 %v10996_v20, %s9825_s28 }
0x1138   : > { %9485 = vrot.lane.b32.xlu0 %v11002_v25, %s9825_s28 }
0x11a7   : > { %v2998_v24 = vpop.xlane.xlu0 %2997 }
0x11a8   : > { %9723 = vrcp.f32 %v2998_v24 }
0x11ab   : > { %v9466_v9 = vpop.permute.xlu0 %9465 }
0x11ac   : > { %v9468_v57 = vunpack.i.h.bf16 %v9466_v9  ;;  %v9467_v5 = vunpack.i.l.bf16 %v9466_v9 }
0x11ae   : > { %v8964_v53 = vpack.c.bf16 %v9468_v57, %v9467_v5 }
0x11af   : > { %v9476_v37 = vpop.permute.xlu0 %9475 }
0x11b0   : > { %8965 = vmatpush3.bf16.msra.mxu1 %v8964_v53  ;;  %v9478_v40 = vunpack.i.h.bf16 %v9476_v37  ;;  %v9477_v29 = vunpack.i.l.bf16 %v9476_v37 }
0x11b1   : > { %8966 = vmatprep.subr.bf16.mxu1 %v9819_v55 }
0x11b2   : > { %v9724_v15 = vpop.eup %9723  ;;  %v8971_v48 = vpack.c.bf16 %v9478_v40, %v9477_v29  ;;  %v9498_v40 = vunpack.i.h.bf16 %v9496_v28  ;;  %v9497_v29 = vunpack.i.l.bf16 %v9496_v28 }
0x11b3   : > { %v3000_v42 = vmul.f32 %v9724_v15, %v9722_v30  ;;  %v9486_v21 = vpop.permute.xlu0 %9485 }
0x11b4   : > { %v9488_v22 = vunpack.i.h.bf16 %v9486_v21  ;;  %v9487_v56 = vunpack.i.l.bf16 %v9486_v21  ;;  %v9507_v21 = vunpack.i.l.bf16 %v9506_v18 }
0x11b5   : > { %8191 = vmatmul.mubr.msk.f32.vlgmr.msra.gmra.mrb[64].mxu1 %vm2799_vm6, %v3000_v42 }
0x11b6   : > { %8209 = vmatprep.mubr.msk.f32.mxu1 %vm9820_vm2, %v9818_v10  ;;  %v8979_v30 = vpack.c.bf16 %v9488_v22, %v9487_v56 }
0x11b9   : > { %8969 = vmatpush3.bf16.xpose.msk.msra.mxu1 %vm10989_vm5, %v8967_v43 }
0x11ba   : > { %8970 = vmatprep.subr.bf16.mxu1 %v9819_v55 }
0x11c1   : > { %8973 = vmatpush3.bf16.xpose.msk.msra.mxu1 %vm10989_vm5, %v8971_v48 }
0x11c2   : > { %8974 = vmatprep.subr.bf16.mxu1 %v9819_v55 }
0x11c9   : > { %8977 = vmatpush3.bf16.xpose.msk.msra.mxu1 %vm10989_vm5, %v8975_v54  ;;  %v9508_v54 = vunpack.i.h.bf16 %v9506_v18 }
0x11ca   : > { %8978 = vmatprep.subr.bf16.mxu1 %v9819_v55 }
0x11d1   : > { %8981 = vmatpush3.bf16.xpose.msk.msra.mxu1 %vm10989_vm5, %v8979_v30 }
0x11d2   : > { %9010 = vmatprep.subr.bf16.mxu1 %v9819_v55 }
0x11d8   : > { %8210 = vmatmul.mubr.msk.f32.vlgmr.msra.gmra.mrb[66].mxu1 %vm1544_vm3, %v3107_v33  ;;  %v8992_v33 = vpack.c.bf16 %v9508_v54, %v9507_v21 }
0x11d9   : > { %8266 = vmatprep.mubr.msk.f32.mxu1 %vm9820_vm2, %v9818_v10 }
0x1288   : > { %v11150_v24 = vpop.f32.mrb[64].mxu1 }
0x1289   : > { %v8192_v9 = vpop.f32.mrb[65].mxu1 }
0x12ab   : > { %v3208_v57 = vpop.f32.mrb[66].mxu1 }
0x12ac   : > { %v8211_v5 = vpop.f32.mrb[67].mxu1  ;;  %v3212_v53 = vsel %vm2799_vm6, %v3208_v57, -inf }
0x12ad   : > { %3213 = vmax.xlane.f32.xlu0 %v3212_v53 }
0x12c3   : > { %9490 = vrot.lane.b32.xlu0 %v11067_v59, %s9825_s28 }
0x12c7   : > { %9500 = vrot.lane.b32.xlu0 %v11071_v26, %s9825_s28 }
0x12cb   : > { %9510 = vrot.lane.b32.xlu0 %v10994_v45, %s9826_s15 }
0x12cf   : > { %9520 = vrot.lane.b32.xlu0 %v10998_v16, %s9826_s15  ;;  %v8986_v16 = vpack.c.bf16 %v9498_v40, %v9497_v29 }
0x12d3   : > { %3320 = vrot.lane.b32.xlu0 %v11052_v13, %s9826_s15 }
0x12d7   : > { %9530 = vrot.lane.b32.xlu0 %v11067_v59, %s9826_s15 }
0x133a   : > { %v3214_v36 = vpop.xlane.xlu0 %3213 }
0x133b   : > { %v3215_v15 = vsub.f32 %v3208_v57, %v3214_v36 }
0x133d   : > { %v3216_v3 = vmul.f32 1.442695, %v3215_v15 }
0x133e   : > { %v9491_v42 = vpop.permute.xlu0 %9490 }
0x133f   : > { %9725 = vpow2.f32 %v3216_v3  ;;  %v9493_v43 = vunpack.i.h.bf16 %v9491_v42  ;;  %v9492_v37 = vunpack.i.l.bf16 %v9491_v42 }
0x1341   : > { %v8983_v45 = vpack.c.bf16 %v9493_v43, %v9492_v37 }
0x1342   : > { %v9501_v48 = vpop.permute.xlu0 %9500 }
0x1343   : > { %8984 = vmatpush3.bf16.msra.mxu0 %v8983_v45  ;;  %v9503_v13 = vunpack.i.h.bf16 %v9501_v48  ;;  %v9502_v41 = vunpack.i.l.bf16 %v9501_v48 }
0x1344   : > { %8985 = vmatprep.subr.bf16.mxu0 %v9819_v55 }
0x1345   : > { %v8989_v22 = vpack.c.bf16 %v9503_v13, %v9502_v41 }
0x1346   : > { %v9511_v59 = vpop.permute.xlu0 %9510 }
0x1347   : > { %8987 = vmatpush3.bf16.msra.mxu0 %v8986_v16  ;;  %v9513_v3 = vunpack.i.h.bf16 %v9511_v59  ;;  %v9512_v28 = vunpack.i.l.bf16 %v9511_v59 }
0x1348   : > { %8988 = vmatprep.subr.bf16.mxu0 %v9819_v55 }
0x1349   : > { %v9726_v51 = vpop.eup %9725  ;;  %v8995_v37 = vpack.c.bf16 %v9513_v3, %v9512_v28 }
0x134a   : > { %v9521_v56 = vpop.permute.xlu0 %9520  ;;  %v3218_v30 = vsel %vm2799_vm6, %v9726_v51, 0.0 }
0x134b   : > { %3219 = vadd.xlane.f32.xlu1 %v3218_v30  ;;  %8990 = vmatpush3.bf16.msra.mxu0 %v8989_v22  ;;  %v9523_v45 = vunpack.i.h.bf16 %v9521_v56  ;;  %v9522_v48 = vunpack.i.l.bf16 %v9521_v56 }
0x134c   : > { %8991 = vmatprep.subr.bf16.mxu0 %v9819_v55 }
0x134d   : > { %v9003_v16 = vpack.c.bf16 %v9523_v45, %v9522_v48  ;;  %v2327_v45 = vld [vmem:[%s12349_s4 + $0x10] sm:$0xff]  ;;  %v2328_v48 = vld [vmem:[%s12349_s4 + $0x18] sm:$0xff] }
0x134e   : > { %v3321_v9 = vpop.permute.xlu0 %3320 }
0x134f   : > { %8993 = vmatpush3.bf16.msra.mxu0 %v8992_v33 }
0x1350   : > { %8994 = vmatprep.subr.bf16.mxu0 %v9819_v55 }
0x1352   : > { %v9531_v57 = vpop.permute.xlu0 %9530 }
0x1353   : > { %v9533_v5 = vunpack.i.h.bf16 %v9531_v57  ;;  %v9532_v53 = vunpack.i.l.bf16 %v9531_v57 }
0x1355   : > { %v9011_v36 = vpack.c.bf16 %v9533_v5, %v9532_v53 }
0x1357   : > { %9012 = vmatpush3.bf16.msra.mxu1 %v9011_v36 }
0x1358   : > { %9013 = vmatprep.subr.bf16.mxu1 %v9819_v55 }
0x135c   : > { %9515 = vrot.lane.b32.xlu1 %v10996_v20, %s9826_s15 }
0x1360   : > { %9525 = vrot.lane.b32.xlu1 %v11002_v25, %s9826_s15 }
0x13d8   : > { %v3220_v15 = vpop.xlane.xlu1 %3219 }
0x13d9   : > { %9727 = vrcp.f32 %v3220_v15 }
0x13dc   : > { %v9516_v40 = vpop.permute.xlu1 %9515 }
0x13dd   : > { %v9518_v20 = vunpack.i.h.bf16 %v9516_v40  ;;  %v9517_v25 = vunpack.i.l.bf16 %v9516_v40 }
0x13df   : > { %v8999_v29 = vpack.c.bf16 %v9518_v20, %v9517_v25 }
0x13e0   : > { %v9526_v13 = vpop.permute.xlu1 %9525 }
0x13e1   : > { %v9528_v41 = vunpack.i.h.bf16 %v9526_v13  ;;  %v9527_v18 = vunpack.i.l.bf16 %v9526_v13  ;;  %v2329_v13 = vld [vmem:[%s12349_s4 + $0x20] sm:$0xff] }
0x13e3   : > { %v9728_v42 = vpop.eup %9727  ;;  %v9007_v59 = vpack.c.bf16 %v9528_v41, %v9527_v18  ;;  %v9026_v41 = vpack.c.bf16 %v2329_v13, %v2328_v48  ;;  %v3739_v48 = vld [vmem:[%s12349_s4 + $0x50] sm:$0xff] }
0x13e4   : > { %v3222_v43 = vmul.f32 %v9728_v42, %v9726_v51 }
0x13e6   : > { %8229 = vmatmul.mubr.msk.f32.vlgmr.msra.gmra.mrb[50].mxu0 %vm2799_vm6, %v3222_v43 }
0x13e7   : > { %8997 = vmatpush3.bf16.xpose.msk.msra.mxu0 %vm10989_vm5, %v8995_v37  ;;  %8247 = vmatprep.mubr.msk.f32.mxu0 %vm9820_vm2, %v9818_v10 }
0x13e8   : > { %8998 = vmatprep.subr.bf16.mxu0 %v9819_v55 }
0x13ef   : > { %9001 = vmatpush3.bf16.xpose.msk.msra.mxu0 %vm10989_vm5, %v8999_v29 }
0x13f0   : > { %9002 = vmatprep.subr.bf16.mxu0 %v9819_v55 }
0x13f7   : > { %9005 = vmatpush3.bf16.xpose.msk.msra.mxu0 %vm10989_vm5, %v9003_v16 }
0x13f8   : > { %9006 = vmatprep.subr.bf16.mxu0 %v9819_v55 }
0x13ff   : > { %9009 = vmatpush3.bf16.xpose.msk.msra.mxu0 %vm10989_vm5, %v9007_v59 }
0x1400   : > { %9028 = vmatprep.subr.bf16.mxu0 %v9819_v55 }
0x1406   : > { %8248 = vmatmul.mubr.msk.f32.vlgmr.msra.gmra.mrb[52].mxu0 %vm1544_vm3, %v3321_v9 }
0x1407   : > { %8288 = vmatprep.mubr.msk.f32.mxu0 %vm9820_vm2, %v9818_v10 }
0x14b9   : > { %v3316_v51 = vpop.f32.mrb[50].mxu0 }
0x14ba   : > { %v8230_v54 = vpop.f32.mrb[51].mxu0 }
0x14d9   : > { %v3422_v21 = vpop.f32.mrb[52].mxu0 }
0x14da   : > { %v8249_v22 = vpop.f32.mrb[53].mxu0  ;;  %v3426_v56 = vsel %vm2799_vm6, %v3422_v21, -inf }
0x14db   : > { %3427 = vmax.xlane.f32.xlu1 %v3426_v56 }
0x14ec   : > { %9535 = vrot.lane.b32.xlu1 %v11069_v52, %s9826_s15 }
0x14f0   : > { %9540 = vrot.lane.b32.xlu1 %v11071_v26, %s9826_s15 }
0x14f4   : > { %3535 = vrot.lane.b32.xlu1 %v11150_v24, %s9829_s17 }
0x1568   : > { %v3428_v30 = vpop.xlane.xlu1 %3427 }
0x1569   : > { %v3429_v33 = vsub.f32 %v3422_v21, %v3428_v30 }
0x156b   : > { %v3430_v9 = vmul.f32 1.442695, %v3429_v33  ;;  %v7311_v33 = vld [vmem:[%s12349_s4] ss:$0 sm:$0xff] }
0x156c   : > { %v9536_v57 = vpop.permute.xlu1 %9535 }
0x156d   : > { %9729 = vpow2.f32 %v3430_v9  ;;  %v9538_v5 = vunpack.i.h.bf16 %v9536_v57  ;;  %v9537_v53 = vunpack.i.l.bf16 %v9536_v57 }
0x156f   : > { %v9014_v36 = vpack.c.bf16 %v9538_v5, %v9537_v53 }
0x1570   : > { %v9541_v15 = vpop.permute.xlu1 %9540 }
0x1571   : > { %v9543_v3 = vunpack.i.h.bf16 %v9541_v15  ;;  %v9542_v28 = vunpack.i.l.bf16 %v9541_v15  ;;  %9015 = vmatpush3.bf16.msra.mxu1 %v9014_v36 }
0x1572   : > { %9016 = vmatprep.subr.bf16.mxu1 %v9819_v55 }
0x1573   : > { %v9017_v52 = vpack.c.bf16 %v9543_v3, %v9542_v28 }
0x1575   : > { %9018 = vmatpush3.bf16.msra.mxu1 %v9017_v52 }
0x1576   : > { %9019 = vmatprep.subr.bf16.mxu1 %v9819_v55 }
0x1577   : > { %v9730_v26 = vpop.eup %9729 }
0x1578   : > { %v3432_v24 = vsel %vm2799_vm6, %v9730_v26, 0.0 }
0x1579   : > { %3433 = vadd.xlane.f32.xlu0 %v3432_v24  ;;  %v3653_v24 = vld [vmem:[%s12350_s5 + $0x10] sm:$0xff] }
0x158f   : > { %9545 = vrot.lane.b32.xlu0 %v11076_v34, %s9826_s15  ;;  %v2326_v34 = vld [vmem:[%s12349_s4 + $0x8] sm:$0xff] }
0x1590   : > { %v9023_v16 = vpack.c.bf16 %v2327_v45, %v2326_v34  ;;  %v3738_v34 = vld [vmem:[%s12349_s4 + $0x48] sm:$0xff] }
0x1593   : > { %3539 = vrot.lane.b32.xlu0 %v3316_v51, %s9830_s19  ;;  %v3536_v51 = vpop.permute.xlu1 %3535 }
0x1594   : > { %v3546_v21 = vsel %vm1544_vm3, %v11105_v63, %v3536_v51 }
0x1606   : > { %v3434_v42 = vpop.xlane.xlu0 %3433 }
0x1607   : > { %9731 = vrcp.f32 %v3434_v42 }
0x160a   : > { %v9546_v43 = vpop.permute.xlu0 %9545 }
0x160b   : > { %v9548_v37 = vunpack.i.h.bf16 %v9546_v43  ;;  %v9547_v40 = vunpack.i.l.bf16 %v9546_v43  ;;  %v3655_v43 = vld [vmem:[%s12350_s5 + $0x20] sm:$0xff] }
0x160d   : > { %v9020_v20 = vpack.c.bf16 %v9548_v37, %v9547_v40  ;;  %v3735_v40 = vld [vmem:[%s12349_s4 + $0x30] sm:$0xff] }
0x160e   : > { %v3540_v54 = vpop.permute.xlu0 %3539 }
0x160f   : > { %9021 = vmatpush3.bf16.msra.mxu1 %v9020_v20  ;;  %v3547_v22 = vsel %vm696_vm0, %v3546_v21, %v3540_v54  ;;  %v3736_v20 = vld [vmem:[%s12349_s4 + $0x38] sm:$0xff]  ;;  %v7313_v54 = vld [vmem:[%s12349_s4 + $0x88] ss:$0 sm:$0xff] }
0x1610   : > { %9022 = vmatprep.subr.bf16.mxu1 %v9819_v55 }
0x1611   : > { %v9732_v25 = vpop.eup %9731 }
0x1612   : > { %v3436_v29 = vmul.f32 %v9732_v25, %v9730_v26  ;;  %v3652_v26 = vld [vmem:[%s12350_s5 + $0x8] sm:$0xff]  ;;  %v3737_v25 = vld [vmem:[%s12349_s4 + $0x40] sm:$0xff] }
0x1613   : > { %v9029_v42 = vpack.c.bf16 %v3653_v24, %v3652_v26  ;;  %v9038_v45 = vpack.c.bf16 %v3738_v34, %v3737_v25  ;;  %v3872_v25 = vld [vmem:[%s12351_s6 + $0x80] sm:$0xff] }
0x1614   : > { %8267 = vmatmul.mubr.msk.f32.vlgmr.msra.gmra.mrb[68].mxu1 %vm2799_vm6, %v3436_v29  ;;  %v9035_v29 = vpack.c.bf16 %v3736_v20, %v3735_v40 }
0x1615   : > { %8277 = vmatprep.mubr.msk.f32.mxu1 %vm9820_vm2, %v9818_v10  ;;  %9024 = vmatpush3.bf16.msra.mxu1 %v9023_v16  ;;  %v3740_v16 = vld [vmem:[%s12349_s4 + $0x58] sm:$0xff] }
0x1616   : > { %9025 = vmatprep.subr.bf16.mxu1 %v9819_v55  ;;  %9030 = vmatpush3.bf16.msra.mxu0 %v9029_v42  ;;  %v9041_v13 = vpack.c.bf16 %v3740_v16, %v3739_v48  ;;  %v3875_v48 = vld [vmem:[%s12351_s6 + $0x98] sm:$0xff] }
0x1617   : > { %9031 = vmatprep.subr.bf16.mxu0 %v9819_v55 }
0x1619   : > { %9027 = vmatpush3.bf16.msra.mxu1 %v9026_v41 }
0x161a   : > { %9034 = vmatprep.subr.bf16.mxu1 %v9819_v55 }
0x16e7   : > { %v3530_v18 = vpop.f32.mrb[68].mxu1 }
0x16e8   : > { %3543 = vrot.lane.b32.xlu1 %v3530_v18, %s12355_s29  ;;  %v8268_v59 = vpop.f32.mrb[69].mxu1 }
0x175a   : > { %v3544_v56 = vpop.permute.xlu1 %3543 }
0x175b   : > { %v3548_v30 = vsel %vm2214_vm4, %v3547_v22, %v3544_v56  ;;  %v7314_v22 = vld [vmem:[%s12349_s4 + $0x80] ss:$0 sm:$0xff] }
0x175c   : > { %8278 = vmatmul.mubr.msk.f32.vlgmr.msra.gmra.mrb[70].mxu1 %vm846_vm1, %v3548_v30 }
0x175d   : > { %8307 = vmatprep.mubr.msk.f32.mxu1 %vm9820_vm2, %v9818_v10  ;;  %9036 = vmatpush3.bf16.msra.mxu1 %v9035_v29  ;;  %v3873_v29 = vld [vmem:[%s12351_s6 + $0x88] sm:$0xff] }
0x175e   : > { %9037 = vmatprep.subr.bf16.mxu1 %v9819_v55  ;;  %v9047_v34 = vpack.c.bf16 %v3873_v29, %v3872_v25 }
0x1761   : > { %9039 = vmatpush3.bf16.msra.mxu1 %v9038_v45  ;;  %v3874_v45 = vld [vmem:[%s12351_s6 + $0x90] sm:$0xff] }
0x1762   : > { %9040 = vmatprep.subr.bf16.mxu1 %v9819_v55  ;;  %v9050_v16 = vpack.c.bf16 %v3875_v48, %v3874_v45 }
0x1765   : > { %9042 = vmatpush3.bf16.msra.mxu1 %v9041_v13 }
0x1766   : > { %9043 = vmatprep.subr.bf16.mxu1 %v9819_v55 }
0x182f   : > { %v3622_v9 = vpop.f32.mrb[70].mxu1 }
0x1830   : > { %v3623_v57 = vadd.f32 %v7311_v33, %v3622_v9  ;;  %v8279_v5 = vpop.f32.mrb[71].mxu1  ;;  %v3741_v33 = vld [vmem:[%s12349_s4 + $0x60] sm:$0xff]  ;;  %v3742_v9 = vld [vmem:[%s12349_s4 + $0x68] sm:$0xff] }
0x1831   : > { %v7315_v5 = vld [vmem:[%s12350_s5] ss:$0 sm:$0xff] }
0x1832   : > { %v3626_v53 = vadd.f32 %v3623_v57, %v11027_v61  ;;  %v3654_v61 = vld [vmem:[%s12350_s5 + $0x18] sm:$0xff]  ;;  %v9044_v57 = vpack.c.bf16 %v3742_v9, %v3741_v33 }
0x1833   : > { %v9032_v37 = vpack.c.bf16 %v3655_v43, %v3654_v61  ;;  %v11335_v9 = vld [vmem:[%s12351_s6 + $0x78] ss:$0 sm:$0xff] }
0x1834   : > { %v3629_v63 = vsel %vm846_vm1, %v3626_v53, 0.0  ;;  %9045 = vmatpush3.bf16.msra.mxu1 %v9044_v57 }
0x1835   : > { %3630 = vadd.xlane.f32.xlu0 %v3629_v63  ;;  %9033 = vmatpush3.bf16.msra.mxu0 %v9032_v37 }
0x1836   : > { %9046 = vmatprep.subr.bf16.mxu0 %v9819_v55  ;;  %8332 = vmatprep.subr.mxu1 %v9818_v10 }
0x18c2   : > { %v3631_v36 = vpop.xlane.xlu0 %3630 }
0x18c3   : > { %v3632_v15 = vmul.f32 0.03125, %v3631_v36 }
0x18c5   : > { %v3633_v3 = vsub.f32 %v3626_v53, %v3632_v15 }
0x18c7   : > { %v3634_v28 = vmul.f32 %v3633_v3, %v3633_v3 }
0x18c9   : > { %v3635_v52 = vsel %vm846_vm1, %v3634_v28, 0.0 }
0x18ca   : > { %3636 = vadd.xlane.f32.xlu1 %v3635_v52 }
0x1957   : > { %v3637_v41 = vpop.xlane.xlu1 %3636 }
0x1958   : > { %v3638_v18 = vmul.f32 0.03125, %v3637_v41 }
0x195a   : > { %v3639_v59 = vadd.f32 1e-05, %v3638_v18 }
0x195c   : > { %9733 = vrsqrt.f32 %v3639_v59 }
0x1966   : > { %v9734_v51 = vpop.eup %9733 }
0x1967   : > { %v3641_v21 = vmul.f32 %v9734_v51, %v3633_v3  ;;  %v7317_v3 = vld [vmem:[%s12349_s4 + $0x28] ss:$0 sm:$0xff]  ;;  %v7319_v51 = vld [vmem:[%s12349_s4 + $0x98] ss:$0 sm:$0xff] }
0x1969   : > { %v3646_v56 = vmul.f32 %v7313_v54, %v3641_v21  ;;  %v7320_v21 = vld [vmem:[%s12349_s4 + $0x90] ss:$0 sm:$0xff] }
0x196b   : > { %v3651_v30 = vadd.f32 %v7314_v22, %v3646_v56 }
0x196d   : > { %8289 = vmatmul.mubr.msk.f32.vlgmr.msra.gmra.mrb[54].mxu0 %vm846_vm1, %v3651_v30 }
0x196e   : > { %8318 = vmatprep.mubr.msk.f32.mxu0 %vm9820_vm2, %v9818_v10  ;;  %9048 = vmatpush3.bf16.msra.mxu0 %v9047_v34 }
0x196f   : > { %9049 = vmatprep.subr.bf16.mxu0 %v9819_v55 }
0x1972   : > { %9051 = vmatpush3.bf16.msra.mxu0 %v9050_v16 }
0x1973   : > { %9052 = vmatprep.subr.bf16.mxu0 %v9819_v55 }
0x1a40   : > { %v3730_v53 = vpop.f32.mrb[54].mxu0 }
0x1a41   : > { %v3731_v63 = vadd.f32 %v7315_v5, %v3730_v53  ;;  %v8290_v36 = vpop.f32.mrb[55].mxu0 }
0x1a42   : > { %v9554_v36 = vpack.i.bf16 %v3875_v48, %v3874_v45 }
0x1a43   : > { %v3734_v15 = vmax.f32 %v3731_v63, 0.0 }
0x1a45   : > { %8308 = vmatmul.mubr.msk.f32.vlgmr.msra.gmra.mrb[72].mxu1 %vm2799_vm6, %v3734_v15  ;;  %v9549_v15 = vpack.i.bf16 %v3873_v29, %v3872_v25 }
0x1a46   : > { %8334 = vmatprep.mubr.msk.f32.mxu1 %vm9820_vm2, %v9818_v10 }
0x1b18   : > { %v3817_v28 = vpop.f32.mrb[72].mxu1 }
0x1b19   : > { %v3818_v52 = vadd.f32 %v7317_v3, %v3817_v28  ;;  %v8309_v26 = vpop.f32.mrb[73].mxu1 }
0x1b1b   : > { %v3821_v24 = vadd.f32 %v3818_v52, %v3651_v30  ;;  %v11325_v30 = vld [vmem:[%s12349_s4 + $0x6b8] sm:$0xff] }
0x1b1d   : > { %v3824_v42 = vsel %vm846_vm1, %v3821_v24, 0.0 }
0x1b1e   : > { %3825 = vadd.xlane.f32.xlu0 %v3824_v42 }
0x1bab   : > { %v3826_v61 = vpop.xlane.xlu0 %3825 }
0x1bac   : > { %v3827_v43 = vmul.f32 0.03125, %v3826_v61 }
0x1bae   : > { %v3828_v37 = vsub.f32 %v3821_v24, %v3827_v43 }
0x1bb0   : > { %v3829_v40 = vmul.f32 %v3828_v37, %v3828_v37 }
0x1bb2   : > { %v3830_v20 = vsel %vm846_vm1, %v3829_v40, 0.0 }
0x1bb3   : > { %3831 = vadd.xlane.f32.xlu0 %v3830_v20 }
0x1c40   : > { %v3832_v13 = vpop.xlane.xlu0 %3831 }
0x1c41   : > { %v3833_v41 = vmul.f32 0.03125, %v3832_v13 }
0x1c43   : > { %v3834_v18 = vadd.f32 1e-05, %v3833_v41 }
0x1c45   : > { %9735 = vrsqrt.f32 %v3834_v18 }
0x1c4f   : > { %v9736_v59 = vpop.eup %9735 }
0x1c50   : > { %v3836_v54 = vmul.f32 %v9736_v59, %v3828_v37 }
0x1c52   : > { %v3841_v22 = vmul.f32 %v7319_v51, %v3836_v54 }
0x1c54   : > { %v11320_v56 = vadd.f32 %v7320_v21, %v3841_v22 }
0x1c56   : > { %v3871_v33 = vadd.f32 %v11325_v30, %v11320_v56 }
0x1c58   : > { %8319 = vmatmul.mubr.msk.f32.vlgmr.msra.gmra.mrb[56].mxu0 %vm846_vm1, %v3871_v33 }
0x1c59   : > { %8329 = vmatprep.mubr.msk.f32.mxu0 %vm9820_vm2, %v9818_v10 }
0x1d2b   : > { %v3955_v57 = vpop.f32.mrb[56].mxu0 }
0x1d2c   : > { %v3956_v5 = vadd.f32 %v11335_v9, %v3955_v57  ;;  %v8320_v53 = vpop.f32.mrb[57].mxu0 }
0x1d2e   : > { %4217 = vrot.lane.b32.xlu0 %v3956_v5, %s9823_s22  ;;  %4054 = vrot.lane.b32.xlu1 %v3956_v5, %s9822_s21  ;;  %v4052_v63 = vmul.f32 0.35355338, %v3956_v5 }
0x1d32   : > { %4381 = vrot.lane.b32.xlu0 %v4052_v63, %s9825_s28  ;;  %4215 = vrot.lane.b32.xlu1 %v4052_v63, %s9824_s23 }
0x1d36   : > { %4546 = vrot.lane.b32.xlu0 %v4052_v63, %s9826_s15  ;;  %4383 = vrot.lane.b32.xlu1 %v3956_v5, %s9827_s24 }
0x1d3a   : > { %4548 = vrot.lane.b32.xlu1 %v3956_v5, %s9828_s25  ;;  %9555 = vrot.lane.b32.xlu0 %v9554_v36, %s9821_s18  ;;  %s12360_s25 = smov 24  }
0x1d3e   : > { %9550 = vrot.lane.b32.xlu1 %v9549_v15, %s9821_s18 }
0x1da0   : > { %v4218_v3 = vpop.permute.xlu0 %4217  ;;  %v4055_v28 = vpop.permute.xlu1 %4054 }
0x1da1   : > { %8333 = vmatpush3.xpose.msk.msra.mxu1 %vm1544_vm3, %v4055_v28 }
0x1da2   : > { %8342 = vmatprep.subr.mxu1 %v9818_v10 }
0x1da4   : > { %v4382_v52 = vpop.permute.xlu0 %4381  ;;  %v4216_v26 = vpop.permute.xlu1 %4215  ;;  %8335 = vmatmul.mubr.msk.f32.vlgmr.msra.gmra.mrb[74].mxu1 %vm1544_vm3, %v4052_v63 }
0x1da5   : > { %8343 = vmatpush3.xpose.msk.msra.mxu1 %vm1544_vm3, %v4218_v3  ;;  %8344 = vmatprep.mubr.msk.f32.mxu1 %vm9820_vm2, %v9818_v10 }
0x1da6   : > { %8352 = vmatprep.subr.mxu1 %v9818_v10 }
0x1da8   : > { %v4384_v24 = vpop.permute.xlu1 %4383  ;;  %8345 = vmatmul.mubr.msk.f32.vlgmr.msra.gmra.mrb[76].mxu1 %vm1544_vm3, %v4216_v26  ;;  %v4547_v42 = vpop.permute.xlu0 %4546 }
0x1da9   : > { %8353 = vmatpush3.xpose.msk.msra.mxu1 %vm1544_vm3, %v4384_v24  ;;  %8354 = vmatprep.mubr.msk.f32.mxu1 %vm9820_vm2, %v9818_v10 }
0x1daa   : > { %8362 = vmatprep.subr.mxu1 %v9818_v10 }
0x1dac   : > { %v4549_v61 = vpop.permute.xlu1 %4548  ;;  %8355 = vmatmul.mubr.msk.f32.vlgmr.msra.gmra.mrb[78].mxu1 %vm1544_vm3, %v4382_v52  ;;  %v9556_v43 = vpop.permute.xlu0 %9555 }
0x1dad   : > { %8363 = vmatpush3.xpose.msk.msra.mxu1 %vm1544_vm3, %v4549_v61  ;;  %8364 = vmatprep.mubr.msk.f32.mxu1 %vm9820_vm2, %v9818_v10  ;;  %v9558_v25 = vunpack.i.h.bf16 %v9556_v43  ;;  %v9557_v29 = vunpack.i.l.bf16 %v9556_v43 }
0x1dae   : > { %9058 = vmatprep.subr.bf16.mxu1 %v9819_v55 }
0x1daf   : > { %v9056_v45 = vpack.c.bf16 %v9558_v25, %v9557_v29 }
0x1db0   : > { %v9551_v37 = vpop.permute.xlu1 %9550  ;;  %8365 = vmatmul.mubr.msk.f32.vlgmr.msra.gmra.mrb[80].mxu1 %vm1544_vm3, %v4547_v42 }
0x1db1   : > { %v9553_v40 = vunpack.i.h.bf16 %v9551_v37  ;;  %v9552_v20 = vunpack.i.l.bf16 %v9551_v37  ;;  %8380 = vmatprep.mubr.msk.f32.mxu1 %vm9820_vm2, %v9818_v10 }
0x1db3   : > { %v9053_v34 = vpack.c.bf16 %v9553_v40, %v9552_v20 }
0x1db5   : > { %9054 = vmatpush3.bf16.msra.mxu0 %v9053_v34 }
0x1db6   : > { %9055 = vmatprep.subr.bf16.mxu0 %v9819_v55 }
0x1db9   : > { %9057 = vmatpush3.bf16.msra.mxu0 %v9056_v45 }
0x1dba   : > { %8337 = vmatprep.subr.mxu0 %v9818_v10 }
0x1dbc   : > { %8330 = vmatmul.mubr.msk.f32.vlgmr.msra.gmra.mrb[58].mxu0 %vm846_vm1, %v11320_v56 }
0x1dbd   : > { %8339 = vmatprep.mubr.msk.f32.mxu0 %vm9820_vm2, %v9818_v10 }
0x1e77   : > { %v4127_v48 = vpop.f32.mrb[74].mxu1 }
0x1e78   : > { %v8336_v16 = vpop.f32.mrb[75].mxu1  ;;  %v4131_v13 = vsel %vm1544_vm3, %v4127_v48, -inf }
0x1e79   : > { %4132 = vmax.xlane.f32.xlu1 %v4131_v13 }
0x1e7b   : > { %v4289_v41 = vpop.f32.mrb[76].mxu1 }
0x1e7c   : > { %v8346_v18 = vpop.f32.mrb[77].mxu1  ;;  %v4293_v59 = vsel %vm1544_vm3, %v4289_v41, -inf }
0x1e7d   : > { %4294 = vmax.xlane.f32.xlu0 %v4293_v59 }
0x1e7f   : > { %v4455_v51 = vpop.f32.mrb[78].mxu1 }
0x1e80   : > { %v8356_v54 = vpop.f32.mrb[79].mxu1  ;;  %v4459_v21 = vsel %vm1544_vm3, %v4455_v51, -inf }
0x1e81   : > { %4460 = vmax.xlane.f32.xlu0 %v4459_v21 }
0x1e83   : > { %v4620_v22 = vpop.f32.mrb[80].mxu1 }
0x1e84   : > { %v8366_v33 = vpop.f32.mrb[81].mxu1  ;;  %v4624_v57 = vsel %vm1544_vm3, %v4620_v22, -inf }
0x1e85   : > { %4625 = vmax.xlane.f32.xlu1 %v4624_v57 }
0x1e8f   : > { %v4048_v5 = vpop.f32.mrb[58].mxu0 }
0x1e90   : > { %v8331_v53 = vpop.f32.mrb[59].mxu0 }
0x1e97   : > { %3976 = vrot.lane.b32.xlu0 %v11335_v9, %s9821_s18 }
0x1f06   : > { %v4133_v63 = vpop.xlane.xlu1 %4132 }
0x1f07   : > { %v4134_v36 = vsub.f32 %v4127_v48, %v4133_v63 }
0x1f09   : > { %v4135_v15 = vmul.f32 1.442695, %v4134_v36 }
0x1f0a   : > { %v4295_v3 = vpop.xlane.xlu0 %4294 }
0x1f0b   : > { %9737 = vpow2.f32 %v4135_v15  ;;  %v4296_v28 = vsub.f32 %v4289_v41, %v4295_v3 }
0x1f0d   : > { %v4297_v52 = vmul.f32 1.442695, %v4296_v28  ;;  %v3877_v28 = vld [vmem:[%s12349_s4 + $0x170] sm:$0xff] }
0x1f0e   : > { %v4461_v26 = vpop.xlane.xlu0 %4460 }
0x1f0f   : > { %9739 = vpow2.f32 %v4297_v52  ;;  %v4462_v24 = vsub.f32 %v4455_v51, %v4461_v26  ;;  %v3878_v52 = vld [vmem:[%s12349_s4 + $0x178] sm:$0xff] }
0x1f10   : > { %v9059_v26 = vpack.c.bf16 %v3878_v52, %v3877_v28 }
0x1f11   : > { %v4463_v42 = vmul.f32 1.442695, %v4462_v24  ;;  %v3879_v24 = vld [vmem:[%s12349_s4 + $0x180] sm:$0xff] }
0x1f12   : > { %v3977_v61 = vpop.permute.xlu0 %3976  ;;  %v4626_v43 = vpop.xlane.xlu1 %4625  ;;  %9060 = vmatpush3.bf16.msra.mxu1 %v9059_v26 }
0x1f13   : > { %9741 = vpow2.f32 %v4463_v42  ;;  %v4049_v37 = vadd.f32 %v4048_v5, %v3977_v61  ;;  %v4627_v40 = vsub.f32 %v4620_v22, %v4626_v43  ;;  %9061 = vmatprep.subr.bf16.mxu1 %v9819_v55  ;;  %v3880_v42 = vld [vmem:[%s12349_s4 + $0x188] sm:$0xff] }
0x1f14   : > { %v9062_v61 = vpack.c.bf16 %v3880_v42, %v3879_v24 }
0x1f15   : > { %v9738_v20 = vpop.eup %9737  ;;  %v4628_v25 = vmul.f32 1.442695, %v4627_v40  ;;  %4470 = vrot.lane.b32.xlu0 %v4049_v37, %s9825_s28  ;;  %8338 = vmatpush3.msra.mxu0 %v4049_v37 }
0x1f16   : > { %v4137_v9 = vsel %vm1544_vm3, %v9738_v20, 0.0  ;;  %8347 = vmatprep.subr.mxu0 %v9818_v10  ;;  %9063 = vmatpush3.bf16.msra.mxu1 %v9062_v61  ;;  %v11478_v61 = vld [vmem:[%s12351_s6 + $0x50] ss:$0 sm:$0xff] }
0x1f17   : > { %9743 = vpow2.f32 %v4628_v25  ;;  %4138 = vadd.xlane.f32.xlu1 %v4137_v9 }
0x1f19   : > { %v9740_v29 = vpop.eup %9739  ;;  %4635 = vrot.lane.b32.xlu0 %v4049_v37, %s9826_s15 }
0x1f1a   : > { %v4299_v34 = vsel %vm1544_vm3, %v9740_v29, 0.0 }
0x1f1b   : > { %4300 = vadd.xlane.f32.xlu1 %v4299_v34  ;;  %v11425_v34 = vld [vmem:[%s12351_s6 + $0x60] sm:$0xff] }
0x1f1d   : > { %v9742_v45 = vpop.eup %9741 }
0x1f1e   : > { %v4465_v48 = vsel %vm1544_vm3, %v9742_v45, 0.0 }
0x1f1f   : > { %4466 = vadd.xlane.f32.xlu1 %v4465_v48 }
0x1f21   : > { %v9744_v16 = vpop.eup %9743 }
0x1f22   : > { %v4630_v13 = vsel %vm1544_vm3, %v9744_v16, 0.0 }
0x1f23   : > { %4631 = vadd.xlane.f32.xlu1 %v4630_v13  ;;  %v11435_v13 = vld [vmem:[%s12351_s6 + $0x68] sm:$0xff] }
0x1f34   : > { %4305 = vrot.lane.b32.xlu1 %v4049_v37, %s9824_s23 }
0x1f87   : > { %v4471_v33 = vpop.permute.xlu0 %4470 }
0x1f8b   : > { %v4636_v36 = vpop.permute.xlu0 %4635 }
0x1fa4   : > { %v4139_v41 = vpop.xlane.xlu1 %4138 }
0x1fa5   : > { %9745 = vrcp.f32 %v4139_v41  ;;  %v11440_v41 = vld [vmem:[%s12351_s6 + $0x70] sm:$0xff] }
0x1fa8   : > { %v4301_v18 = vpop.xlane.xlu1 %4300 }
0x1fa9   : > { %9747 = vrcp.f32 %v4301_v18  ;;  %v9564_v18 = vpack.i.bf16 %v11440_v41, %v11435_v13 }
0x1fac   : > { %v4467_v59 = vpop.xlane.xlu1 %4466 }
0x1fad   : > { %9749 = vrcp.f32 %v4467_v59 }
0x1faf   : > { %v9746_v51 = vpop.eup %9745 }
0x1fb0   : > { %v4632_v54 = vpop.xlane.xlu1 %4631  ;;  %v4141_v21 = vmul.f32 %v9746_v51, %v9738_v20 }
0x1fb1   : > { %9751 = vrcp.f32 %v4632_v54 }
0x1fb2   : > { %8340 = vmatmul.mubr.msk.f32.vlgmr.msra.gmra.mrb[60].mxu0 %vm1544_vm3, %v4141_v21 }
0x1fb3   : > { %v9748_v22 = vpop.eup %9747  ;;  %8349 = vmatprep.mubr.msk.f32.mxu0 %vm9820_vm2, %v9818_v10 }
0x1fb4   : > { %v4303_v57 = vmul.f32 %v9748_v22, %v9740_v29  ;;  %v4306_v5 = vpop.permute.xlu1 %4305  ;;  %v11420_v29 = vld [vmem:[%s12351_s6 + $0x58] sm:$0xff] }
0x1fb5   : > { %8348 = vmatpush3.msra.mxu0 %v4306_v5 }
0x1fb6   : > { %8350 = vmatmul.mubr.msk.f32.vlgmr.msra.gmra.mrb[62].mxu0 %vm1544_vm3, %v4303_v57  ;;  %8357 = vmatprep.subr.mxu0 %v9818_v10 }
0x1fb7   : > { %v9750_v53 = vpop.eup %9749  ;;  %8358 = vmatpush3.msra.mxu0 %v4471_v33  ;;  %8359 = vmatprep.mubr.msk.f32.mxu0 %vm9820_vm2, %v9818_v10 }
0x1fb8   : > { %v4469_v63 = vmul.f32 %v9750_v53, %v9742_v45  ;;  %8367 = vmatprep.subr.mxu0 %v9818_v10 }
0x1fba   : > { %8360 = vmatmul.mubr.msk.f32.vlgmr.msra.gmra.mrb[64].mxu0 %vm1544_vm3, %v4469_v63 }
0x1fbb   : > { %v9752_v15 = vpop.eup %9751  ;;  %8368 = vmatpush3.msra.mxu0 %v4636_v36  ;;  %8369 = vmatprep.mubr.msk.f32.mxu0 %vm9820_vm2, %v9818_v10 }
0x1fbc   : > { %v4634_v3 = vmul.f32 %v9752_v15, %v9744_v16  ;;  %9064 = vmatprep.subr.bf16.mxu0 %v9819_v55  ;;  %v11430_v16 = vpack.i.bf16 %v11425_v34, %v11420_v29 }
0x1fbe   : > { %8370 = vmatmul.mubr.msk.f32.vlgmr.msra.gmra.mrb[66].mxu0 %vm1544_vm3, %v4634_v3 }
0x1fbf   : > { %8391 = vmatprep.mubr.msk.f32.mxu0 %vm9820_vm2, %v9818_v10 }
0x2085   : > { %v4211_v43 = vpop.f32.mrb[60].mxu0 }
0x2086   : > { %v8341_v37 = vpop.f32.mrb[61].mxu0 }
0x2089   : > { %v4377_v40 = vpop.f32.mrb[62].mxu0 }
0x208a   : > { %4712 = vrot.lane.b32.xlu0 %v4377_v40, %s9829_s17  ;;  %v8351_v20 = vpop.f32.mrb[63].mxu0 }
0x208d   : > { %v4542_v25 = vpop.f32.mrb[64].mxu0 }
0x208e   : > { %4716 = vrot.lane.b32.xlu0 %v4542_v25, %s9830_s19  ;;  %v8361_v9 = vpop.f32.mrb[65].mxu0 }
0x2091   : > { %v4707_v45 = vpop.f32.mrb[66].mxu0 }
0x2092   : > { %4720 = vrot.lane.b32.xlu1 %v4707_v45, %s12360_s25  ;;  %v8371_v48 = vpop.f32.mrb[67].mxu0 }
0x2096   : > { %9560 = vrot.lane.b32.xlu1 %v11430_v16, %s9822_s21 }
0x209a   : > { %9565 = vrot.lane.b32.xlu1 %v9564_v18, %s9822_s21 }
0x20fc   : > { %v4713_v59 = vpop.permute.xlu0 %4712 }
0x20fd   : > { %v4723_v54 = vsel %vm1544_vm3, %v4211_v43, %v4713_v59 }
0x2100   : > { %v4717_v51 = vpop.permute.xlu0 %4716 }
0x2101   : > { %v4724_v21 = vsel %vm696_vm0, %v4723_v54, %v4717_v51 }
0x2104   : > { %v4721_v22 = vpop.permute.xlu1 %4720 }
0x2105   : > { %v4725_v33 = vsel %vm2214_vm4, %v4724_v21, %v4721_v22 }
0x2106   : > { %8381 = vmatmul.mubr.msk.f32.vlgmr.msra.gmra.mrb[82].mxu1 %vm846_vm1, %v4725_v33 }
0x2107   : > { %8402 = vmatprep.mubr.msk.f32.mxu1 %vm846_vm1, %v10889_v50  ;;  %v7338_v50 = vld [vmem:[%s12349_s4 + $0x168] ss:$0 sm:$0xff] }
0x2108   : > { %v9561_v57 = vpop.permute.xlu1 %9560 }
0x2109   : > { %v9563_v5 = vunpack.i.h.bf16 %v9561_v57  ;;  %v9562_v53 = vunpack.i.l.bf16 %v9561_v57 }
0x210b   : > { %v9070_v63 = vpack.c.bf16 %v9563_v5, %v9562_v53 }
0x210c   : > { %v9566_v36 = vpop.permute.xlu1 %9565 }
0x210d   : > { %v9568_v15 = vunpack.i.h.bf16 %v9566_v36  ;;  %v9567_v3 = vunpack.i.l.bf16 %v9566_v36  ;;  %9071 = vmatprep.subr.bf16.mxu1 %v9070_v63 }
0x210e   : > { %9073 = vmatpush3.bf16.msra.mxu1 %v9070_v63 }
0x210f   : > { %v9074_v28 = vpack.c.bf16 %v9568_v15, %v9567_v3 }
0x2111   : > { %9075 = vmatprep.subr.bf16.mxu1 %v9074_v28 }
0x2112   : > { %9077 = vmatpush3.bf16.msra.mxu1 %v9074_v28 }
0x2113   : > { %9086 = vmatprep.subr.bf16.mxu1 %v9819_v55 }
0x2115   : > { %8403 = vmatmul.mubr.msk.f32.vlgmr.msra.gmra.mrb[84].mxu1 %vm846_vm1, %v10907_v58 }
0x2116   : > { %8405 = vmatprep.mubr.msk.f32.mxu1 %vm846_vm1, %v10917_v11 }
0x2119   : > { %8406 = vmatmul.mubr.msk.f32.gmra.mrb[86].mxu1 %vm846_vm1, %v10933_v6 }
0x211a   : > { %8408 = vmatprep.mubr.msk.f32.mxu1 %vm846_vm1, %v10939_v8 }
0x211d   : > { %8409 = vmatmul.mubr.msk.f32.gmra.mrb[88].mxu1 %vm846_vm1, %v10955_v4 }
0x211e   : > { %8411 = vmatprep.mubr.msk.f32.mxu1 %vm846_vm1, %v10958_v14 }
0x2121   : > { %8412 = vmatmul.mubr.msk.f32.gmra.mrb[90].mxu1 %vm846_vm1, %v10968_v62 }
0x2122   : > { %8450 = vmatprep.mubr.msk.f32.mxu1 %vm9820_vm2, %v9818_v10 }
0x21d9   : > { %v4799_v58 = vpop.f32.mrb[82].mxu1 }
0x21da   : > { %v4800_v11 = vadd.f32 %v7338_v50, %v4799_v58  ;;  %v8382_v6 = vpop.f32.mrb[83].mxu1  ;;  %v9065_v58 = vpack.c.bf16 %v11425_v34, %v11420_v29  ;;  %v7340_v29 = vld [vmem:[%s12349_s4 + $0x140] ss:$0 sm:$0xff] }
0x21dc   : > { %v4803_v8 = vadd.f32 %v4800_v11, %v11320_v56  ;;  %9066 = vmatpush3.bf16.msra.mxu0 %v9065_v58  ;;  %v9068_v11 = vpack.c.bf16 %v11440_v41, %v11435_v13  ;;  %v7341_v13 = vld [vmem:[%s12349_s4 + $0x138] ss:$0 sm:$0xff] }
0x21dd   : > { %9067 = vmatprep.subr.bf16.mxu0 %v9819_v55 }
0x21de   : > { %v4806_v4 = vsel %vm846_vm1, %v4803_v8, 0.0 }
0x21df   : > { %4807 = vadd.xlane.f32.xlu0 %v4806_v4 }
0x21e0   : > { %9069 = vmatpush3.bf16.msra.mxu0 %v9068_v11 }
0x21e8   : > { %v8404_v52 = vpop.f32.mrb[84].mxu1 }
0x21e9   : > { %v5003_v14 = vpop.f32.mrb[85].mxu1 }
0x21ec   : > { %v8407_v26 = vpop.f32.mrb[86].mxu1 }
0x21ed   : > { %v5013_v24 = vpop.f32.mrb[87].mxu1 }
0x21f0   : > { %v8410_v62 = vpop.f32.mrb[88].mxu1 }
0x21f1   : > { %v5023_v42 = vpop.f32.mrb[89].mxu1 }
0x21f4   : > { %v8413_v43 = vpop.f32.mrb[90].mxu1 }
0x21f5   : > { %v5033_v37 = vpop.f32.mrb[91].mxu1  ;;  %4934 = vrot.lane.b32.xlu0 %v11478_v61, %s9822_s21 }
0x21f9   : > { %9575 = vrot.lane.b32.xlu0 %v9564_v18, %s9821_s18 }
0x226c   : > { %v4808_v40 = vpop.xlane.xlu0 %4807 }
0x226d   : > { %v4809_v20 = vmul.f32 0.03125, %v4808_v40 }
0x226f   : > { %v4810_v25 = vsub.f32 %v4803_v8, %v4809_v20 }
0x2270   : > { %v4935_v9 = vpop.permute.xlu0 %4934 }
0x2271   : > { %v5004_v45 = vadd.f32 %v5003_v14, %v4935_v9  ;;  %v5009_v48 = vadd.f32 %v8404_v52, %v4935_v9  ;;  %v5014_v59 = vadd.f32 %v5013_v24, %v4935_v9  ;;  %v5019_v51 = vadd.f32 %v8407_v26, %v4935_v9 }
0x2272   : > { %v5024_v54 = vadd.f32 %v5023_v42, %v4935_v9  ;;  %v5029_v21 = vadd.f32 %v8410_v62, %v4935_v9  ;;  %v5034_v22 = vadd.f32 %v5033_v37, %v4935_v9  ;;  %v5039_v33 = vadd.f32 %v8413_v43, %v4935_v9 }
0x2273   : > { %v4811_v57 = vmul.f32 %v4810_v25, %v4810_v25  ;;  %v9087_v5 = vpack.c.bf16 %v5009_v48, %v5004_v45  ;;  %v9091_v53 = vpack.c.bf16 %v5019_v51, %v5014_v59  ;;  %v11483_v63 = vpack.i.bf16 %v5019_v51, %v5014_v59 }
0x2274   : > { %v9095_v36 = vpack.c.bf16 %v5029_v21, %v5024_v54  ;;  %v9099_v15 = vpack.c.bf16 %v5039_v33, %v5034_v22  ;;  %v11485_v18 = vpack.i.bf16 %v5029_v21, %v5024_v54  ;;  %v11487_v3 = vpack.i.bf16 %v5009_v48, %v5004_v45  ;;  %v9576_v34 = vpop.permute.xlu0 %9575 }
0x2275   : > { %v4812_v28 = vsel %vm846_vm1, %v4811_v57, 0.0  ;;  %9089 = vmatpush3.bf16.xpose.msk.msra.mxu1 %vm10989_vm5, %v9087_v5  ;;  %v11492_v50 = vpack.i.bf16 %v5039_v33, %v5034_v22  ;;  %v9578_v42 = vunpack.i.h.bf16 %v9576_v34  ;;  %v9577_v43 = vunpack.i.l.bf16 %v9576_v34 }
0x2276   : > { %4813 = vadd.xlane.f32.xlu1 %v4812_v28  ;;  %9090 = vmatprep.subr.bf16.mxu1 %v9819_v55 }
0x2277   : > { %v9082_v40 = vpack.c.bf16 %v9578_v42, %v9577_v43 }
0x227d   : > { %9093 = vmatpush3.bf16.xpose.msk.msra.mxu1 %vm10989_vm5, %v9091_v53 }
0x227e   : > { %9094 = vmatprep.subr.bf16.mxu1 %v9819_v55 }
0x2285   : > { %9097 = vmatpush3.bf16.xpose.msk.msra.mxu1 %vm10989_vm5, %v9095_v36 }
0x2286   : > { %9098 = vmatprep.subr.bf16.mxu1 %v9819_v55 }
0x2287   : > { %9570 = vrot.lane.b32.xlu1 %v11430_v16, %s9821_s18 }
0x228d   : > { %9101 = vmatpush3.bf16.xpose.msk.msra.mxu1 %vm10989_vm5, %v9099_v15 }
0x228e   : > { %9130 = vmatprep.subr.bf16.mxu1 %v9819_v55 }
0x2303   : > { %v4814_v6 = vpop.xlane.xlu1 %4813 }
0x2304   : > { %v4815_v8 = vmul.f32 0.03125, %v4814_v6 }
0x2306   : > { %v4816_v4 = vadd.f32 1e-05, %v4815_v8 }
0x2307   : > { %v9571_v52 = vpop.permute.xlu1 %9570 }
0x2308   : > { %9753 = vrsqrt.f32 %v4816_v4  ;;  %v9573_v16 = vunpack.i.h.bf16 %v9571_v52  ;;  %v9572_v14 = vunpack.i.l.bf16 %v9571_v52 }
0x230a   : > { %v9078_v26 = vpack.c.bf16 %v9573_v16, %v9572_v14 }
0x230c   : > { %9079 = vmatprep.subr.bf16.mxu0 %v9078_v26 }
0x2312   : > { %v9754_v24 = vpop.eup %9753 }
0x2313   : > { %v4818_v62 = vmul.f32 %v9754_v24, %v4810_v25 }
0x2315   : > { %v4823_v41 = vmul.f32 %v7340_v29, %v4818_v62 }
0x2317   : > { %v11517_v37 = vadd.f32 %v7341_v13, %v4823_v41 }
0x2319   : > { %v4829_v20 = vadd.f32 %v11325_v30, %v11517_v37 }
0x231b   : > { %8392 = vmatmul.mubr.msk.f32.vlgmr.msra.gmra.mrb[68].mxu0 %vm846_vm1, %v4829_v20 }
0x231c   : > { %9081 = vmatpush3.bf16.msra.mxu0 %v9078_v26  ;;  %8422 = vmatprep.mubr.msk.f32.mxu0 %vm846_vm1, %v10879_v38 }
0x231d   : > { %9083 = vmatprep.subr.bf16.mxu0 %v9082_v40 }
0x2320   : > { %9085 = vmatpush3.bf16.msra.mxu0 %v9082_v40 }
0x2321   : > { %9102 = vmatprep.subr.bf16.mxu0 %v9819_v55 }
0x2323   : > { %8423 = vmatmul.mubr.msk.f32.vlgmr.msra.gmra.mrb[70].mxu0 %vm846_vm1, %v10895_v60 }
0x2324   : > { %8425 = vmatprep.mubr.msk.f32.mxu0 %vm846_vm1, %v10901_v1 }
0x2327   : > { %8426 = vmatmul.mubr.msk.f32.gmra.mrb[72].mxu0 %vm846_vm1, %v10910_v12 }
0x2328   : > { %8428 = vmatprep.mubr.msk.f32.mxu0 %vm846_vm1, %v10914_v2 }
0x232b   : > { %8429 = vmatmul.mubr.msk.f32.gmra.mrb[74].mxu0 %vm846_vm1, %v10930_v17 }
0x232c   : > { %8431 = vmatprep.mubr.msk.f32.mxu0 %vm846_vm1, %v10936_v7 }
0x232f   : > { %8432 = vmatmul.mubr.msk.f32.gmra.mrb[76].mxu0 %vm846_vm1, %v10952_v32 }
0x2330   : > { %8469 = vmatprep.mubr.msk.f32.mxu0 %vm9820_vm2, %v9818_v10 }
0x23ee   : > { %v4913_v30 = vpop.f32.mrb[68].mxu0 }
0x23ef   : > { %v4914_v25 = vadd.f32 %v11478_v61, %v4913_v30  ;;  %v8393_v9 = vpop.f32.mrb[69].mxu0 }
0x23f1   : > { %v11542_v45 = vmul.f32 0.35355338, %v4914_v25 }
0x23f3   : > { %8451 = vmatmul.mubr.msk.f32.vlgmr.msra.gmra.mrb[92].mxu1 %vm1544_vm3, %v11542_v45 }
0x23f4   : > { %8507 = vmatprep.mubr.msk.f32.mxu1 %vm9820_vm2, %v9818_v10 }
0x23f6   : > { %v8424_v48 = vpop.f32.mrb[70].mxu0 }
0x23f7   : > { %v5123_v59 = vpop.f32.mrb[71].mxu0 }
0x23fa   : > { %v8427_v51 = vpop.f32.mrb[72].mxu0 }
0x23fb   : > { %v5133_v54 = vpop.f32.mrb[73].mxu0 }
0x23fe   : > { %v8430_v21 = vpop.f32.mrb[74].mxu0 }
0x23ff   : > { %v5143_v22 = vpop.f32.mrb[75].mxu0 }
0x2402   : > { %v8433_v33 = vpop.f32.mrb[76].mxu0 }
0x2403   : > { %v5153_v57 = vpop.f32.mrb[77].mxu0 }
0x24c6   : > { %v5256_v5 = vpop.f32.mrb[92].mxu1 }
0x24c7   : > { %v8452_v53 = vpop.f32.mrb[93].mxu1  ;;  %v5260_v36 = vsel %vm2799_vm6, %v5256_v5, -inf }
0x24c8   : > { %5261 = vmax.xlane.f32.xlu0 %v5260_v36 }
0x24de   : > { %5054 = vrot.lane.b32.xlu0 %v11478_v61, %s9821_s18 }
0x24e2   : > { %9585 = vrot.lane.b32.xlu0 %v11483_v63, %s9824_s23 }
0x24e6   : > { %9590 = vrot.lane.b32.xlu0 %v11485_v18, %s9824_s23 }
0x24ea   : > { %5344 = vrot.lane.b32.xlu0 %v11542_v45, %s9824_s23 }
0x2555   : > { %v5262_v15 = vpop.xlane.xlu0 %5261 }
0x2556   : > { %v5263_v28 = vsub.f32 %v5256_v5, %v5262_v15 }
0x2558   : > { %v5264_v58 = vmul.f32 1.442695, %v5263_v28 }
0x2559   : > { %v5055_v11 = vpop.permute.xlu0 %5054 }
0x255a   : > { %9755 = vpow2.f32 %v5264_v58  ;;  %v5124_v6 = vadd.f32 %v5123_v59, %v5055_v11  ;;  %v5129_v8 = vadd.f32 %v8424_v48, %v5055_v11  ;;  %v5134_v4 = vadd.f32 %v5133_v54, %v5055_v11 }
0x255b   : > { %v5139_v52 = vadd.f32 %v8427_v51, %v5055_v11  ;;  %v5144_v16 = vadd.f32 %v5143_v22, %v5055_v11  ;;  %v5149_v61 = vadd.f32 %v8430_v21, %v5055_v11  ;;  %v5154_v14 = vadd.f32 %v5153_v57, %v5055_v11 }
0x255c   : > { %v11557_v26 = vpack.i.bf16 %v5129_v8, %v5124_v6  ;;  %v9103_v24 = vpack.c.bf16 %v5129_v8, %v5124_v6  ;;  %v5159_v29 = vadd.f32 %v8433_v33, %v5055_v11 }
0x255d   : > { %v9106_v34 = vpack.c.bf16 %v5139_v52, %v5134_v4  ;;  %v9109_v62 = vpack.c.bf16 %v5149_v61, %v5144_v16  ;;  %v11559_v13 = vpack.i.bf16 %v5139_v52, %v5134_v4  ;;  %v11561_v41 = vpack.i.bf16 %v5149_v61, %v5144_v16  ;;  %v9586_v30 = vpop.permute.xlu0 %9585 }
0x255e   : > { %9600 = vrot.lane.b32.xlu0 %v11557_v26, %s9824_s23  ;;  %9104 = vmatpush3.bf16.msra.mxu0 %v9103_v24  ;;  %v9112_v42 = vpack.c.bf16 %v5159_v29, %v5154_v14  ;;  %v11566_v43 = vpack.i.bf16 %v5159_v29, %v5154_v14  ;;  %v9588_v15 = vunpack.i.h.bf16 %v9586_v30  ;;  %v9587_v28 = vunpack.i.l.bf16 %v9586_v30 }
0x255f   : > { %9105 = vmatprep.subr.bf16.mxu0 %v9819_v55 }
0x2560   : > { %v9119_v58 = vpack.c.bf16 %v9588_v15, %v9587_v28 }
0x2561   : > { %v9591_v25 = vpop.permute.xlu0 %9590 }
0x2562   : > { %9107 = vmatpush3.bf16.msra.mxu0 %v9106_v34  ;;  %v9593_v11 = vunpack.i.h.bf16 %v9591_v25  ;;  %v9592_v6 = vunpack.i.l.bf16 %v9591_v25 }
0x2563   : > { %9108 = vmatprep.subr.bf16.mxu0 %v9819_v55 }
0x2564   : > { %v9756_v40 = vpop.eup %9755  ;;  %v9123_v8 = vpack.c.bf16 %v9593_v11, %v9592_v6 }
0x2565   : > { %v5266_v20 = vsel %vm2799_vm6, %v9756_v40, 0.0  ;;  %v5345_v9 = vpop.permute.xlu0 %5344 }
0x2566   : > { %5267 = vadd.xlane.f32.xlu1 %v5266_v20  ;;  %9110 = vmatpush3.bf16.msra.mxu0 %v9109_v62 }
0x2567   : > { %9111 = vmatprep.subr.bf16.mxu0 %v9819_v55 }
0x256a   : > { %9113 = vmatpush3.bf16.msra.mxu0 %v9112_v42 }
0x256b   : > { %9114 = vmatprep.subr.bf16.mxu0 %v9819_v55 }
0x2577   : > { %9580 = vrot.lane.b32.xlu1 %v11487_v3, %s9824_s23 }
0x257b   : > { %9595 = vrot.lane.b32.xlu1 %v11492_v50, %s9824_s23 }
0x25d0   : > { %v9601_v48 = vpop.permute.xlu0 %9600 }
0x25d1   : > { %v9603_v59 = vunpack.i.h.bf16 %v9601_v48  ;;  %v9602_v51 = vunpack.i.l.bf16 %v9601_v48 }
0x25d3   : > { %v9131_v54 = vpack.c.bf16 %v9603_v59, %v9602_v51 }
0x25d5   : > { %9132 = vmatpush3.bf16.msra.mxu1 %v9131_v54 }
0x25d6   : > { %9133 = vmatprep.subr.bf16.mxu1 %v9819_v55 }
0x25f3   : > { %v5268_v21 = vpop.xlane.xlu1 %5267 }
0x25f4   : > { %9757 = vrcp.f32 %v5268_v21 }
0x25f7   : > { %v9581_v22 = vpop.permute.xlu1 %9580 }
0x25f8   : > { %v9583_v33 = vunpack.i.h.bf16 %v9581_v22  ;;  %v9582_v57 = vunpack.i.l.bf16 %v9581_v22 }
0x25fa   : > { %v9115_v36 = vpack.c.bf16 %v9583_v33, %v9582_v57 }
0x25fb   : > { %v9596_v4 = vpop.permute.xlu1 %9595 }
0x25fc   : > { %v9598_v52 = vunpack.i.h.bf16 %v9596_v4  ;;  %v9597_v16 = vunpack.i.l.bf16 %v9596_v4 }
0x25fe   : > { %v9758_v5 = vpop.eup %9757  ;;  %v9127_v61 = vpack.c.bf16 %v9598_v52, %v9597_v16 }
0x25ff   : > { %v5270_v53 = vmul.f32 %v9758_v5, %v9756_v40 }
0x2601   : > { %8470 = vmatmul.mubr.msk.f32.vlgmr.msra.gmra.mrb[78].mxu0 %vm2799_vm6, %v5270_v53 }
0x2602   : > { %9117 = vmatpush3.bf16.xpose.msk.msra.mxu0 %vm10989_vm5, %v9115_v36  ;;  %8488 = vmatprep.mubr.msk.f32.mxu0 %vm9820_vm2, %v9818_v10 }
0x2603   : > { %9118 = vmatprep.subr.bf16.mxu0 %v9819_v55 }
0x260a   : > { %9121 = vmatpush3.bf16.xpose.msk.msra.mxu0 %vm10989_vm5, %v9119_v58 }
0x260b   : > { %9122 = vmatprep.subr.bf16.mxu0 %v9819_v55 }
0x2612   : > { %9125 = vmatpush3.bf16.xpose.msk.msra.mxu0 %vm10989_vm5, %v9123_v8 }
0x2613   : > { %9126 = vmatprep.subr.bf16.mxu0 %v9819_v55 }
0x261a   : > { %9129 = vmatpush3.bf16.xpose.msk.msra.mxu0 %vm10989_vm5, %v9127_v61 }
0x261b   : > { %9158 = vmatprep.subr.bf16.mxu0 %v9819_v55 }
0x2621   : > { %8489 = vmatmul.mubr.msk.f32.vlgmr.msra.gmra.mrb[80].mxu0 %vm1544_vm3, %v5345_v9 }
0x2622   : > { %8545 = vmatprep.mubr.msk.f32.mxu0 %vm9820_vm2, %v9818_v10 }
0x26d4   : > { %v11595_v14 = vpop.f32.mrb[78].mxu0 }
0x26d5   : > { %v8471_v24 = vpop.f32.mrb[79].mxu0 }
0x26f4   : > { %v5446_v29 = vpop.f32.mrb[80].mxu0 }
0x26f5   : > { %v8490_v34 = vpop.f32.mrb[81].mxu0  ;;  %v5450_v62 = vsel %vm2799_vm6, %v5446_v29, -inf }
0x26f6   : > { %5451 = vmax.xlane.f32.xlu1 %v5450_v62 }
0x2707   : > { %9605 = vrot.lane.b32.xlu1 %v11559_v13, %s9824_s23 }
0x270b   : > { %9610 = vrot.lane.b32.xlu1 %v11561_v41, %s9824_s23 }
0x270f   : > { %9620 = vrot.lane.b32.xlu1 %v11487_v3, %s9825_s28 }
0x2713   : > { %9630 = vrot.lane.b32.xlu1 %v11485_v18, %s9825_s28 }
0x2717   : > { %5566 = vrot.lane.b32.xlu1 %v11542_v45, %s9825_s28 }
0x271b   : > { %9645 = vrot.lane.b32.xlu1 %v11559_v13, %s9825_s28 }
0x271f   : > { %9655 = vrot.lane.b32.xlu1 %v11566_v43, %s9825_s28 }
0x2783   : > { %v5452_v42 = vpop.xlane.xlu1 %5451 }
0x2784   : > { %v5453_v40 = vsub.f32 %v5446_v29, %v5452_v42 }
0x2786   : > { %v5454_v20 = vmul.f32 1.442695, %v5453_v40 }
0x2787   : > { %v9606_v30 = vpop.permute.xlu1 %9605 }
0x2788   : > { %9759 = vpow2.f32 %v5454_v20  ;;  %v9608_v25 = vunpack.i.h.bf16 %v9606_v30  ;;  %v9607_v9 = vunpack.i.l.bf16 %v9606_v30 }
0x278a   : > { %v9134_v48 = vpack.c.bf16 %v9608_v25, %v9607_v9 }
0x278b   : > { %v9611_v59 = vpop.permute.xlu1 %9610 }
0x278c   : > { %v9613_v51 = vunpack.i.h.bf16 %v9611_v59  ;;  %v9612_v54 = vunpack.i.l.bf16 %v9611_v59  ;;  %9135 = vmatpush3.bf16.msra.mxu1 %v9134_v48 }
0x278d   : > { %9136 = vmatprep.subr.bf16.mxu1 %v9819_v55 }
0x278e   : > { %v9137_v21 = vpack.c.bf16 %v9613_v51, %v9612_v54 }
0x278f   : > { %v9621_v28 = vpop.permute.xlu1 %9620 }
0x2790   : > { %9138 = vmatpush3.bf16.msra.mxu1 %v9137_v21  ;;  %v9623_v11 = vunpack.i.h.bf16 %v9621_v28  ;;  %v9622_v6 = vunpack.i.l.bf16 %v9621_v28 }
0x2791   : > { %9139 = vmatprep.subr.bf16.mxu1 %v9819_v55 }
0x2792   : > { %v9760_v22 = vpop.eup %9759  ;;  %v9143_v4 = vpack.c.bf16 %v9623_v11, %v9622_v6 }
0x2793   : > { %v5456_v33 = vsel %vm2799_vm6, %v9760_v22, 0.0  ;;  %v9631_v29 = vpop.permute.xlu1 %9630 }
0x2794   : > { %5457 = vadd.xlane.f32.xlu0 %v5456_v33  ;;  %v9633_v34 = vunpack.i.h.bf16 %v9631_v29  ;;  %v9632_v62 = vunpack.i.l.bf16 %v9631_v29 }
0x2796   : > { %v9151_v42 = vpack.c.bf16 %v9633_v34, %v9632_v62 }
0x2797   : > { %v5567_v9 = vpop.permute.xlu1 %5566 }
0x27aa   : > { %9615 = vrot.lane.b32.xlu0 %v11566_v43, %s9824_s23 }
0x27ae   : > { %9625 = vrot.lane.b32.xlu0 %v11483_v63, %s9825_s28 }
0x27b2   : > { %9635 = vrot.lane.b32.xlu0 %v11492_v50, %s9825_s28 }
0x2821   : > { %v5458_v57 = vpop.xlane.xlu0 %5457 }
0x2822   : > { %9761 = vrcp.f32 %v5458_v57 }
0x2825   : > { %v9616_v5 = vpop.permute.xlu0 %9615 }
0x2826   : > { %v9618_v53 = vunpack.i.h.bf16 %v9616_v5  ;;  %v9617_v36 = vunpack.i.l.bf16 %v9616_v5  ;;  %v9646_v5 = vpop.permute.xlu1 %9645 }
0x2827   : > { %v9648_v28 = vunpack.i.h.bf16 %v9646_v5 }
0x2828   : > { %v9140_v15 = vpack.c.bf16 %v9618_v53, %v9617_v36 }
0x2829   : > { %v9626_v52 = vpop.permute.xlu0 %9625 }
0x282a   : > { %9141 = vmatpush3.bf16.msra.mxu1 %v9140_v15  ;;  %v9628_v16 = vunpack.i.h.bf16 %v9626_v52  ;;  %v9627_v61 = vunpack.i.l.bf16 %v9626_v52 }
0x282b   : > { %9142 = vmatprep.subr.bf16.mxu1 %v9819_v55 }
0x282c   : > { %v9762_v58 = vpop.eup %9761  ;;  %v9147_v24 = vpack.c.bf16 %v9628_v16, %v9627_v61 }
0x282d   : > { %v5460_v8 = vmul.f32 %v9762_v58, %v9760_v22  ;;  %v9636_v40 = vpop.permute.xlu0 %9635  ;;  %v9647_v58 = vunpack.i.l.bf16 %v9646_v5 }
0x282e   : > { %v9638_v20 = vunpack.i.h.bf16 %v9636_v40  ;;  %v9637_v30 = vunpack.i.l.bf16 %v9636_v40 }
0x282f   : > { %8508 = vmatmul.mubr.msk.f32.vlgmr.msra.gmra.mrb[94].mxu1 %vm2799_vm6, %v5460_v8  ;;  %v9656_v8 = vpop.permute.xlu1 %9655 }
0x2830   : > { %8526 = vmatprep.mubr.msk.f32.mxu1 %vm9820_vm2, %v9818_v10  ;;  %v9155_v25 = vpack.c.bf16 %v9638_v20, %v9637_v30  ;;  %v9658_v52 = vunpack.i.h.bf16 %v9656_v8  ;;  %v9657_v16 = vunpack.i.l.bf16 %v9656_v8 }
0x2832   : > { %v9168_v34 = vpack.c.bf16 %v9658_v52, %v9657_v16 }
0x2833   : > { %9145 = vmatpush3.bf16.xpose.msk.msra.mxu1 %vm10989_vm5, %v9143_v4 }
0x2834   : > { %9146 = vmatprep.subr.bf16.mxu1 %v9819_v55 }
0x283b   : > { %9149 = vmatpush3.bf16.xpose.msk.msra.mxu1 %vm10989_vm5, %v9147_v24 }
0x283c   : > { %9150 = vmatprep.subr.bf16.mxu1 %v9819_v55 }
0x2843   : > { %9153 = vmatpush3.bf16.xpose.msk.msra.mxu1 %vm10989_vm5, %v9151_v42 }
0x2844   : > { %9154 = vmatprep.subr.bf16.mxu1 %v9819_v55 }
0x284b   : > { %9157 = vmatpush3.bf16.xpose.msk.msra.mxu1 %vm10989_vm5, %v9155_v25 }
0x284c   : > { %9186 = vmatprep.subr.bf16.mxu1 %v9819_v55 }
0x2852   : > { %8527 = vmatmul.mubr.msk.f32.vlgmr.msra.gmra.mrb[96].mxu1 %vm1544_vm3, %v5567_v9 }
0x2853   : > { %8583 = vmatprep.mubr.msk.f32.mxu1 %vm9820_vm2, %v9818_v10 }
0x2902   : > { %v11640_v48 = vpop.f32.mrb[94].mxu1 }
0x2903   : > { %v8509_v59 = vpop.f32.mrb[95].mxu1 }
0x2925   : > { %v5668_v51 = vpop.f32.mrb[96].mxu1 }
0x2926   : > { %v8528_v54 = vpop.f32.mrb[97].mxu1  ;;  %v5672_v21 = vsel %vm2799_vm6, %v5668_v51, -inf }
0x2927   : > { %5673 = vmax.xlane.f32.xlu0 %v5672_v21 }
0x293d   : > { %9640 = vrot.lane.b32.xlu0 %v11557_v26, %s9825_s28 }
0x2941   : > { %9650 = vrot.lane.b32.xlu0 %v11561_v41, %s9825_s28 }
0x2945   : > { %9660 = vrot.lane.b32.xlu0 %v11487_v3, %s9826_s15 }
0x2949   : > { %9670 = vrot.lane.b32.xlu0 %v11485_v18, %s9826_s15  ;;  %v9162_v18 = vpack.c.bf16 %v9648_v28, %v9647_v58 }
0x294d   : > { %5780 = vrot.lane.b32.xlu0 %v11542_v45, %s9826_s15 }
0x2951   : > { %9680 = vrot.lane.b32.xlu0 %v11557_v26, %s9826_s15 }
0x29b4   : > { %v5674_v22 = vpop.xlane.xlu0 %5673 }
0x29b5   : > { %v5675_v33 = vsub.f32 %v5668_v51, %v5674_v22 }
0x29b7   : > { %v5676_v57 = vmul.f32 1.442695, %v5675_v33 }
0x29b8   : > { %v9641_v53 = vpop.permute.xlu0 %9640 }
0x29b9   : > { %9763 = vpow2.f32 %v5676_v57  ;;  %v9643_v36 = vunpack.i.h.bf16 %v9641_v53  ;;  %v9642_v15 = vunpack.i.l.bf16 %v9641_v53 }
0x29bb   : > { %v9159_v3 = vpack.c.bf16 %v9643_v36, %v9642_v15 }
0x29bc   : > { %v9651_v11 = vpop.permute.xlu0 %9650 }
0x29bd   : > { %9160 = vmatpush3.bf16.msra.mxu0 %v9159_v3  ;;  %v9653_v45 = vunpack.i.h.bf16 %v9651_v11  ;;  %v9652_v6 = vunpack.i.l.bf16 %v9651_v11 }
0x29be   : > { %9161 = vmatprep.subr.bf16.mxu0 %v9819_v55 }
0x29bf   : > { %v9165_v61 = vpack.c.bf16 %v9653_v45, %v9652_v6 }
0x29c0   : > { %v9661_v26 = vpop.permute.xlu0 %9660 }
0x29c1   : > { %9163 = vmatpush3.bf16.msra.mxu0 %v9162_v18  ;;  %v9663_v9 = vunpack.i.h.bf16 %v9661_v26  ;;  %v9662_v59 = vunpack.i.l.bf16 %v9661_v26 }
0x29c2   : > { %9164 = vmatprep.subr.bf16.mxu0 %v9819_v55 }
0x29c3   : > { %v9764_v4 = vpop.eup %9763  ;;  %v9171_v21 = vpack.c.bf16 %v9663_v9, %v9662_v59  ;;  %v4836_v59 = vld [vmem:[%s12349_s4 + $0xd8] sm:$0xff] }
0x29c4   : > { %v9671_v24 = vpop.permute.xlu0 %9670  ;;  %v5678_v29 = vsel %vm2799_vm6, %v9764_v4, 0.0 }
0x29c5   : > { %5679 = vadd.xlane.f32.xlu1 %v5678_v29  ;;  %9166 = vmatpush3.bf16.msra.mxu0 %v9165_v61  ;;  %v9673_v57 = vunpack.i.h.bf16 %v9671_v24  ;;  %v9672_v5 = vunpack.i.l.bf16 %v9671_v24 }
0x29c6   : > { %9167 = vmatprep.subr.bf16.mxu0 %v9819_v55 }
0x29c7   : > { %v9179_v53 = vpack.c.bf16 %v9673_v57, %v9672_v5 }
0x29c8   : > { %v5781_v62 = vpop.permute.xlu0 %5780 }
0x29c9   : > { %9169 = vmatpush3.bf16.msra.mxu0 %v9168_v34 }
0x29ca   : > { %9170 = vmatprep.subr.bf16.mxu0 %v9819_v55 }
0x29cc   : > { %v9681_v42 = vpop.permute.xlu0 %9680 }
0x29cd   : > { %v9683_v40 = vunpack.i.h.bf16 %v9681_v42  ;;  %v9682_v20 = vunpack.i.l.bf16 %v9681_v42 }
0x29cf   : > { %v9187_v30 = vpack.c.bf16 %v9683_v40, %v9682_v20 }
0x29d1   : > { %9188 = vmatpush3.bf16.msra.mxu1 %v9187_v30 }
0x29d2   : > { %9189 = vmatprep.subr.bf16.mxu1 %v9819_v55 }
0x29d6   : > { %9665 = vrot.lane.b32.xlu1 %v11483_v63, %s9826_s15 }
0x29da   : > { %9675 = vrot.lane.b32.xlu1 %v11492_v50, %s9826_s15 }
0x2a52   : > { %v5680_v25 = vpop.xlane.xlu1 %5679 }
0x2a53   : > { %9765 = vrcp.f32 %v5680_v25 }
0x2a56   : > { %v9666_v22 = vpop.permute.xlu1 %9665 }
0x2a57   : > { %v9668_v63 = vunpack.i.h.bf16 %v9666_v22  ;;  %v9667_v50 = vunpack.i.l.bf16 %v9666_v22 }
0x2a59   : > { %v9175_v33 = vpack.c.bf16 %v9668_v63, %v9667_v50 }
0x2a5a   : > { %v9676_v36 = vpop.permute.xlu1 %9675 }
0x2a5b   : > { %v9678_v15 = vunpack.i.h.bf16 %v9676_v36  ;;  %v9677_v28 = vunpack.i.l.bf16 %v9676_v36 }
0x2a5d   : > { %v9766_v51 = vpop.eup %9765  ;;  %v9183_v58 = vpack.c.bf16 %v9678_v15, %v9677_v28  ;;  %v7400_v28 = vld [vmem:[%s12349_s4 + $0xc8] ss:$0 sm:$0xff] }
0x2a5e   : > { %v5682_v54 = vmul.f32 %v9766_v51, %v9764_v4  ;;  %v4837_v51 = vld [vmem:[%s12349_s4 + $0xe0] sm:$0xff] }
0x2a60   : > { %8546 = vmatmul.mubr.msk.f32.vlgmr.msra.gmra.mrb[82].mxu0 %vm2799_vm6, %v5682_v54 }
0x2a61   : > { %9173 = vmatpush3.bf16.xpose.msk.msra.mxu0 %vm10989_vm5, %v9171_v21  ;;  %8564 = vmatprep.mubr.msk.f32.mxu0 %vm9820_vm2, %v9818_v10  ;;  %v4838_v21 = vld [vmem:[%s12349_s4 + $0xe8] sm:$0xff] }
0x2a62   : > { %9174 = vmatprep.subr.bf16.mxu0 %v9819_v55  ;;  %v9202_v22 = vpack.c.bf16 %v4838_v21, %v4837_v51 }
0x2a69   : > { %9177 = vmatpush3.bf16.xpose.msk.msra.mxu0 %vm10989_vm5, %v9175_v33 }
0x2a6a   : > { %9178 = vmatprep.subr.bf16.mxu0 %v9819_v55 }
0x2a71   : > { %9181 = vmatpush3.bf16.xpose.msk.msra.mxu0 %vm10989_vm5, %v9179_v53 }
0x2a72   : > { %9182 = vmatprep.subr.bf16.mxu0 %v9819_v55 }
0x2a79   : > { %9185 = vmatpush3.bf16.xpose.msk.msra.mxu0 %vm10989_vm5, %v9183_v58 }
0x2a7a   : > { %9204 = vmatprep.subr.bf16.mxu0 %v9819_v55 }
0x2a80   : > { %8565 = vmatmul.mubr.msk.f32.vlgmr.msra.gmra.mrb[84].mxu0 %vm1544_vm3, %v5781_v62 }
0x2a81   : > { %8605 = vmatprep.mubr.msk.f32.mxu0 %vm9820_vm2, %v9818_v10 }
0x2b33   : > { %v5776_v3 = vpop.f32.mrb[82].mxu0 }
0x2b34   : > { %v8547_v11 = vpop.f32.mrb[83].mxu0 }
0x2b53   : > { %v5882_v18 = vpop.f32.mrb[84].mxu0 }
0x2b54   : > { %v8566_v45 = vpop.f32.mrb[85].mxu0  ;;  %v5886_v6 = vsel %vm2799_vm6, %v5882_v18, -inf }
0x2b55   : > { %5887 = vmax.xlane.f32.xlu1 %v5886_v6 }
0x2b66   : > { %9685 = vrot.lane.b32.xlu1 %v11559_v13, %s9826_s15 }
0x2b6a   : > { %9690 = vrot.lane.b32.xlu1 %v11561_v41, %s9826_s15 }
0x2b6e   : > { %5995 = vrot.lane.b32.xlu1 %v11640_v48, %s9829_s17 }
0x2be2   : > { %v5888_v0 = vpop.xlane.xlu1 %5887 }
0x2be3   : > { %v5889_v8 = vsub.f32 %v5882_v18, %v5888_v0 }
0x2be5   : > { %v5890_v26 = vmul.f32 1.442695, %v5889_v8 }
0x2be6   : > { %v9686_v4 = vpop.permute.xlu1 %9685 }
0x2be7   : > { %9767 = vpow2.f32 %v5890_v26  ;;  %v9688_v52 = vunpack.i.h.bf16 %v9686_v4  ;;  %v9687_v16 = vunpack.i.l.bf16 %v9686_v4  ;;  %v3847_v4 = vsel %vm846_vm1, %v11320_v56, 0.0 }
0x2be9   : > { %v9190_v61 = vpack.c.bf16 %v9688_v52, %v9687_v16  ;;  %v6112_v52 = vld [vmem:[%s12350_s5 + $0x30] sm:$0xff] }
0x2bea   : > { %v9691_v24 = vpop.permute.xlu1 %9690 }
0x2beb   : > { %v9693_v29 = vunpack.i.h.bf16 %v9691_v24  ;;  %v9692_v34 = vunpack.i.l.bf16 %v9691_v24  ;;  %9191 = vmatpush3.bf16.msra.mxu1 %v9190_v61  ;;  %v6114_v61 = vld [vmem:[%s12350_s5 + $0x40] sm:$0xff]  ;;  %v6115_v24 = vld [vmem:[%s12350_s5 + $0x48] sm:$0xff] }
0x2bec   : > { %9192 = vmatprep.subr.bf16.mxu1 %v9819_v55 }
0x2bed   : > { %v9193_v13 = vpack.c.bf16 %v9693_v29, %v9692_v34  ;;  %v9208_v29 = vpack.c.bf16 %v6115_v24, %v6114_v61 }
0x2bee   : > { %v5996_v33 = vpop.permute.xlu1 %5995 }
0x2bef   : > { %9194 = vmatpush3.bf16.msra.mxu1 %v9193_v13  ;;  %v6006_v5 = vsel %vm1544_vm3, %v11595_v14, %v5996_v33 }
0x2bf0   : > { %9195 = vmatprep.subr.bf16.mxu1 %v9819_v55 }
0x2bf1   : > { %v9768_v41 = vpop.eup %9767 }
0x2bf2   : > { %v5892_v48 = vsel %vm2799_vm6, %v9768_v41, 0.0 }
0x2bf3   : > { %5893 = vadd.xlane.f32.xlu0 %v5892_v48 }
0x2c09   : > { %9695 = vrot.lane.b32.xlu0 %v11566_v43, %s9826_s15  ;;  %v4835_v43 = vld [vmem:[%s12349_s4 + $0xd0] sm:$0xff] }
0x2c0a   : > { %v9199_v54 = vpack.c.bf16 %v4836_v59, %v4835_v43  ;;  %v7403_v43 = vld [vmem:[%s12349_s4 + $0x148] ss:$0 sm:$0xff] }
0x2c0d   : > { %5999 = vrot.lane.b32.xlu0 %v5776_v3, %s9830_s19 }
0x2c80   : > { %v5894_v62 = vpop.xlane.xlu0 %5893 }
0x2c81   : > { %9769 = vrcp.f32 %v5894_v62 }
0x2c84   : > { %v9696_v42 = vpop.permute.xlu0 %9695 }
0x2c85   : > { %v9698_v40 = vunpack.i.h.bf16 %v9696_v42  ;;  %v9697_v20 = vunpack.i.l.bf16 %v9696_v42 }
0x2c87   : > { %v9196_v30 = vpack.c.bf16 %v9698_v40, %v9697_v20 }
0x2c88   : > { %v6000_v57 = vpop.permute.xlu0 %5999 }
0x2c89   : > { %9197 = vmatpush3.bf16.msra.mxu1 %v9196_v30  ;;  %v6007_v53 = vsel %vm696_vm0, %v6006_v5, %v6000_v57  ;;  %v6332_v57 = vld [vmem:[%s12352_s7 + $0x2b8] sm:$0xff]  ;;  %v6329_v5 = vld [vmem:[%s12352_s7 + $0x2a0] sm:$0xff] }
0x2c8a   : > { %9198 = vmatprep.subr.bf16.mxu1 %v9819_v55 }
0x2c8b   : > { %v9770_v25 = vpop.eup %9769 }
0x2c8c   : > { %v5896_v9 = vmul.f32 %v9770_v25, %v9768_v41  ;;  %v7402_v25 = vld [vmem:[%s12349_s4 + $0x150] ss:$0 sm:$0xff] }
0x2c8e   : > { %8584 = vmatmul.mubr.msk.f32.vlgmr.msra.gmra.mrb[98].mxu1 %vm2799_vm6, %v5896_v9 }
0x2c8f   : > { %8594 = vmatprep.mubr.msk.f32.mxu1 %vm9820_vm2, %v9818_v10  ;;  %9200 = vmatpush3.bf16.msra.mxu1 %v9199_v54  ;;  %v6328_v54 = vld [vmem:[%s12352_s7 + $0x298] sm:$0xff] }
0x2c90   : > { %9201 = vmatprep.subr.bf16.mxu1 %v9819_v55 }
0x2c93   : > { %9203 = vmatpush3.bf16.msra.mxu1 %v9202_v22  ;;  %v6325_v22 = vld [vmem:[%s12352_s7 + $0x280] sm:$0xff] }
0x2c94   : > { %9210 = vmatprep.subr.bf16.mxu1 %v9819_v55 }
0x2d61   : > { %v5990_v63 = vpop.f32.mrb[98].mxu1 }
0x2d62   : > { %6003 = vrot.lane.b32.xlu1 %v5990_v63, %s12360_s25  ;;  %v8585_v50 = vpop.f32.mrb[99].mxu1  ;;  %v6327_v63 = vld [vmem:[%s12352_s7 + $0x290] sm:$0xff] }
0x2d63   : > { %v6330_v50 = vld [vmem:[%s12352_s7 + $0x2a8] sm:$0xff]  ;;  %v9224_v33 = vpack.c.bf16 %v6327_v63, %v6325_v22  ;;  %v6593_v22 = vld [vmem:[%s12349_s4 + $0x2c0] sm:$0xff] }
0x2d64   : > { %v6594_v63 = vld [vmem:[%s12349_s4 + $0x2c8] sm:$0xff] }
0x2dd4   : > { %v6004_v36 = vpop.permute.xlu1 %6003 }
0x2dd5   : > { %v6008_v15 = vsel %vm2214_vm4, %v6007_v53, %v6004_v36  ;;  %v6331_v53 = vld [vmem:[%s12352_s7 + $0x2b0] sm:$0xff]  ;;  %v9226_v36 = vpack.c.bf16 %v6332_v57, %v6330_v50  ;;  %v9300_v57 = vpack.c.bf16 %v6594_v63, %v6593_v22 }
0x2dd6   : > { %8595 = vmatmul.mubr.msk.f32.vlgmr.msra.gmra.mrb[100].mxu1 %vm846_vm1, %v6008_v15  ;;  %v9228_v15 = vpack.c.bf16 %v6331_v53, %v6329_v5  ;;  %v6611_v50 = vld [vmem:[%s12349_s4 + $0x350] sm:$0xff] }
0x2dd7   : > { %8624 = vmatprep.mubr.msk.f32.mxu1 %vm9820_vm2, %v9818_v10  ;;  %v6595_v53 = vld [vmem:[%s12349_s4 + $0x2d0] sm:$0xff] }
0x2dd8   : > { %v7406_v22 = vld [vmem:[%s12349_s4 + $0xf0] ss:$0 sm:$0xff] }
0x2ea9   : > { %v6082_v58 = vpop.f32.mrb[100].mxu1 }
0x2eaa   : > { %v6083_v3 = vadd.f32 %v7400_v28, %v6082_v58  ;;  %v8596_v11 = vpop.f32.mrb[101].mxu1  ;;  %v6195_v28 = vld [vmem:[%s12349_s4 + $0xf8] sm:$0xff]  ;;  %v6196_v58 = vld [vmem:[%s12349_s4 + $0x100] sm:$0xff] }
0x2eab   : > { %v9211_v11 = vpack.c.bf16 %v6196_v58, %v6195_v28  ;;  %v6614_v28 = vld [vmem:[%s12349_s4 + $0x368] sm:$0xff] }
0x2eac   : > { %v6086_v18 = vadd.f32 %v6083_v3, %v11517_v37  ;;  %v6113_v37 = vld [vmem:[%s12350_s5 + $0x38] sm:$0xff]  ;;  %v6197_v3 = vld [vmem:[%s12349_s4 + $0x108] sm:$0xff] }
0x2ead   : > { %v9205_v16 = vpack.c.bf16 %v6113_v37, %v6112_v52  ;;  %9212 = vmatpush3.bf16.msra.mxu1 %v9211_v11  ;;  %v6607_v52 = vld [vmem:[%s12349_s4 + $0x330] sm:$0xff]  ;;  %v6608_v37 = vld [vmem:[%s12349_s4 + $0x338] sm:$0xff]  ;;  %v6597_v11 = vld [vmem:[%s12349_s4 + $0x2e0] sm:$0xff] }
0x2eae   : > { %v6089_v14 = vsel %vm846_vm1, %v6086_v18, 0.0  ;;  %9213 = vmatprep.subr.bf16.mxu1 %v9819_v55 }
0x2eaf   : > { %6090 = vadd.xlane.f32.xlu0 %v6089_v14  ;;  %9206 = vmatpush3.bf16.msra.mxu0 %v9205_v16  ;;  %v9294_v16 = vpack.c.bf16 %v6608_v37, %v6607_v52  ;;  %v6618_v52 = vld [vmem:[%s12349_s4 + $0x388] sm:$0xff] }
0x2eb0   : > { %9207 = vmatprep.subr.bf16.mxu0 %v9819_v55 }
0x2eb3   : > { %9209 = vmatpush3.bf16.msra.mxu0 %v9208_v29 }
0x2f3c   : > { %v6091_v45 = vpop.xlane.xlu0 %6090 }
0x2f3d   : > { %v6092_v6 = vmul.f32 0.03125, %v6091_v45  ;;  %v6199_v45 = vld [vmem:[%s12349_s4 + $0x118] sm:$0xff] }
0x2f3f   : > { %v6093_v0 = vsub.f32 %v6086_v18, %v6092_v6  ;;  %v6198_v18 = vld [vmem:[%s12349_s4 + $0x110] sm:$0xff]  ;;  %v6200_v6 = vld [vmem:[%s12349_s4 + $0x120] sm:$0xff] }
0x2f40   : > { %v9214_v14 = vpack.c.bf16 %v6198_v18, %v6197_v3  ;;  %v6598_v18 = vld [vmem:[%s12349_s4 + $0x2e8] sm:$0xff] }
0x2f41   : > { %v6094_v8 = vmul.f32 %v6093_v0, %v6093_v0 }
0x2f42   : > { %9215 = vmatpush3.bf16.msra.mxu1 %v9214_v14  ;;  %v6615_v14 = vld [vmem:[%s12349_s4 + $0x370] sm:$0xff] }
0x2f43   : > { %v6095_v26 = vsel %vm846_vm1, %v6094_v8, 0.0  ;;  %9216 = vmatprep.subr.bf16.mxu1 %v9819_v55  ;;  %v6201_v8 = vld [vmem:[%s12349_s4 + $0x128] sm:$0xff] }
0x2f44   : > { %6096 = vadd.xlane.f32.xlu1 %v6095_v26  ;;  %v6202_v26 = vld [vmem:[%s12349_s4 + $0x130] sm:$0xff] }
0x2f48   : > { %3848 = vadd.xlane.f32.xlu1 %v3847_v4  ;;  %v9220_v4 = vpack.c.bf16 %v6202_v26, %v6201_v8  ;;  %v6599_v8 = vld [vmem:[%s12349_s4 + $0x2f0] sm:$0xff]  ;;  %v6600_v26 = vld [vmem:[%s12349_s4 + $0x2f8] sm:$0xff] }
0x2f49   : > { %v9312_v37 = vpack.c.bf16 %v6600_v26, %v6599_v8  ;;  %v6434_v8 = vld [vmem:[%s12352_s7 + $0x2c8] sm:$0xff]  ;;  %v6436_v26 = vld [vmem:[%s12352_s7 + $0x2d8] sm:$0xff] }
0x2fd1   : > { %v6097_v34 = vpop.xlane.xlu1 %6096 }
0x2fd2   : > { %v6098_v13 = vmul.f32 0.03125, %v6097_v34  ;;  %v11816_v34 = vld [vmem:[%s12349_s4 + $0x198] ss:$0 sm:$0xff] }
0x2fd4   : > { %v6099_v41 = vadd.f32 1e-05, %v6098_v13 }
0x2fd5   : > { %v3849_v48 = vpop.xlane.xlu1 %3848 }
0x2fd6   : > { %9771 = vrsqrt.f32 %v6099_v41  ;;  %v3850_v62 = vmul.f32 0.03125, %v3849_v48  ;;  %v11821_v41 = vld [vmem:[%s12349_s4 + $0x190] ss:$0 sm:$0xff] }
0x2fd8   : > { %v3851_v42 = vsub.f32 %v11320_v56, %v3850_v62  ;;  %v6326_v56 = vld [vmem:[%s12352_s7 + $0x288] sm:$0xff] }
0x2fd9   : > { %v9222_v21 = vpack.c.bf16 %v6328_v54, %v6326_v56 }
0x2fda   : > { %v3852_v40 = vmul.f32 %v3851_v42, %v3851_v42 }
0x2fdb   : > { %9223 = vmatprep.subr.bf16.mxu0 %v9222_v21 }
0x2fdc   : > { %v3853_v20 = vsel %vm846_vm1, %v3852_v40, 0.0 }
0x2fdd   : > { %3854 = vadd.xlane.f32.xlu1 %v3853_v20  ;;  %v6591_v20 = vld [vmem:[%s12349_s4 + $0x2b0] sm:$0xff] }
0x2fe0   : > { %v9772_v30 = vpop.eup %9771 }
0x2fe1   : > { %v6101_v9 = vmul.f32 %v9772_v30, %v6093_v0  ;;  %v9217_v0 = vpack.c.bf16 %v6200_v6, %v6199_v45  ;;  %v6592_v30 = vld [vmem:[%s12349_s4 + $0x2b8] sm:$0xff]  ;;  %v9308_v6 = vpack.c.bf16 %v6598_v18, %v6597_v11  ;;  %v7408_v18 = vld [vmem:[%s12349_s4 + $0x160] ss:$0 sm:$0xff] }
0x2fe2   : > { %v9296_v56 = vpack.c.bf16 %v6592_v30, %v6591_v20  ;;  %v6616_v45 = vld [vmem:[%s12349_s4 + $0x378] sm:$0xff]  ;;  %v6622_v20 = vld [vmem:[%s12349_s4 + $0x3a8] sm:$0xff] }
0x2fe3   : > { %v6106_v59 = vmul.f32 %v7402_v25, %v6101_v9  ;;  %9218 = vmatpush3.bf16.msra.mxu1 %v9217_v0  ;;  %v6609_v9 = vld [vmem:[%s12349_s4 + $0x340] sm:$0xff]  ;;  %v9310_v0 = vpack.c.bf16 %v6616_v45, %v6615_v14  ;;  %v7409_v14 = vld [vmem:[%s12349_s4 + $0x158] ss:$0 sm:$0xff] }
0x2fe4   : > { %9219 = vmatprep.subr.bf16.mxu1 %v9819_v55 }
0x2fe5   : > { %v11751_v51 = vadd.f32 %v7403_v43, %v6106_v59 }
0x2fe7   : > { %8606 = vmatmul.mubr.msk.f32.vlgmr.msra.gmra.mrb[86].mxu0 %vm846_vm1, %v11751_v51  ;;  %9221 = vmatpush3.bf16.msra.mxu1 %v9220_v4  ;;  %v6617_v4 = vld [vmem:[%s12349_s4 + $0x380] sm:$0xff] }
0x2fe8   : > { %6416 = vmatprep.mubr.f32.mxu0 %v9818_v10  ;;  %9225 = vmatpush1.bf16.msra.mxu0 %v9224_v33  ;;  %v6612_v33 = vld [vmem:[%s12349_s4 + $0x358] sm:$0xff] }
0x2fe9   : > { %9227 = vmatprep.subr.bf16.mxu0 %v9226_v36  ;;  %9295 = vmatprep.subr.bf16.mxu1 %v9294_v16  ;;  %v9302_v5 = vpack.c.bf16 %v6612_v33, %v6611_v50  ;;  %v6596_v36 = vld [vmem:[%s12349_s4 + $0x2d8] sm:$0xff]  ;;  %v9314_v16 = vpack.c.bf16 %v6618_v52, %v6617_v4  ;;  %v6433_v4 = vld [vmem:[%s12352_s7 + $0x2c0] sm:$0xff]  ;;  %v9230_v52 = vpack.c.bf16 %v6436_v26, %v6434_v8  ;;  %v6462_v8 = vld [vmem:[%s12352_s7 + $0x3a8] sm:$0xff] }
0x2fea   : > { %v9304_v58 = vpack.c.bf16 %v6596_v36, %v6595_v53  ;;  %v6464_v26 = vld [vmem:[%s12352_s7 + $0x3b8] sm:$0xff] }
0x2fec   : > { %9229 = vmatpush1.bf16.msra.mxu0 %v9228_v15  ;;  %v6613_v15 = vld [vmem:[%s12349_s4 + $0x360] sm:$0xff] }
0x2fed   : > { %v9306_v3 = vpack.c.bf16 %v6614_v28, %v6613_v15  ;;  %9231 = vmatprep.subr.bf16.mxu0 %v9230_v52  ;;  %v9258_v52 = vpack.c.bf16 %v6464_v26, %v6462_v8  ;;  %v6486_v8 = vld [vmem:[%s12352_s7 + $0x468] sm:$0xff]  ;;  %v6488_v26 = vld [vmem:[%s12352_s7 + $0x478] sm:$0xff] }
0x306a   : > { %v3855_v55 = vpop.xlane.xlu1 %3854 }
0x306b   : > { %v3856_v61 = vmul.f32 0.03125, %v3855_v55  ;;  %v6601_v55 = vld [vmem:[%s12349_s4 + $0x300] sm:$0xff] }
0x306d   : > { %v3857_v24 = vadd.f32 1e-05, %v3856_v61  ;;  %v6602_v61 = vld [vmem:[%s12349_s4 + $0x308] sm:$0xff] }
0x306f   : > { %9773 = vrsqrt.f32 %v3857_v24  ;;  %v6619_v24 = vld [vmem:[%s12349_s4 + $0x390] sm:$0xff] }
0x3079   : > { %v9774_v29 = vpop.eup %9773 }
0x307a   : > { %v3859_v13 = vmul.f32 %v9774_v29, %v3851_v42  ;;  %v7404_v42 = vld [vmem:[%s12350_s5 + $0x28] ss:$0 sm:$0xff]  ;;  %v6620_v29 = vld [vmem:[%s12349_s4 + $0x398] sm:$0xff] }
0x307c   : > { %v3864_v48 = vmul.f32 %v11816_v34, %v3859_v13  ;;  %v9316_v13 = vpack.c.bf16 %v6602_v61, %v6601_v55  ;;  %v6440_v55 = vld [vmem:[%s12352_s7 + $0x2f8] sm:$0xff] }
0x307e   : > { %v3869_v62 = vadd.f32 %v11821_v41, %v3864_v48  ;;  %v9318_v48 = vpack.c.bf16 %v6620_v29, %v6619_v24  ;;  %v6437_v29 = vld [vmem:[%s12352_s7 + $0x2e0] sm:$0xff] }
0x3080   : > { %3870 = vst.msk [vmem:[#allocation2] sm:$0xff] %vm846_vm1, %v3869_v62  ;;  %v6603_v62 = vld [vmem:[%s12349_s4 + $0x310] sm:$0xff] }
0x3087   : > { %v6323_v40 = vld [vmem:[#allocation2] sm:$0xff] }
0x3088   : > { %7411 = vmatmul.mubr.msk.f32.vlgmr.msra.gmra.mrb[88].mxu0 %vm846_vm1, %v6323_v40  ;;  %v6604_v40 = vld [vmem:[%s12349_s4 + $0x318] sm:$0xff] }
0x3089   : > { %6422 = vmatprep.mubr.f32.mxu0 %v9818_v10  ;;  %v6610_v10 = vld [vmem:[%s12349_s4 + $0x348] sm:$0xff]  ;;  %v9320_v30 = vpack.c.bf16 %v6604_v40, %v6603_v62  ;;  %v6444_v62 = vld [vmem:[%s12352_s7 + $0x318] sm:$0xff] }
0x308a   : > { %v9298_v21 = vpack.c.bf16 %v6610_v10, %v6609_v9  ;;  %v6605_v9 = vld [vmem:[%s12349_s4 + $0x320] sm:$0xff]  ;;  %v6606_v10 = vld [vmem:[%s12349_s4 + $0x328] sm:$0xff] }
0x30ba   : > { %v6190_v25 = vpop.f32.mrb[86].mxu0 }
0x30bb   : > { %v6191_v43 = vadd.f32 %v7404_v42, %v6190_v25  ;;  %v8607_v59 = vpop.f32.mrb[87].mxu0  ;;  %v6621_v42 = vld [vmem:[%s12349_s4 + $0x3a0] sm:$0xff] }
0x30bc   : > { %v9322_v25 = vpack.c.bf16 %v6622_v20, %v6621_v42  ;;  %v6441_v20 = vld [vmem:[%s12352_s7 + $0x300] sm:$0xff] }
0x30bd   : > { %v6194_v54 = vmax.f32 %v6191_v43, 0.0  ;;  %v9324_v43 = vpack.c.bf16 %v6606_v10, %v6605_v9  ;;  %v6448_v9 = vld [vmem:[%s12352_s7 + $0x338] sm:$0xff] }
0x30bf   : > { %8625 = vmatmul.mubr.msk.f32.vlgmr.msra.gmra.mrb[102].mxu1 %vm2799_vm6, %v6194_v54 }
0x30c0   : > { %9297 = vmatpush3.bf16.msra.mxu1 %v9296_v56  ;;  %v11930_v56 = vpack.c.bf16 %v10895_v60, %v10879_v38 }
0x30c1   : > { %9299 = vmatprep.subr.bf16.mxu1 %v9298_v21 }
0x30c4   : > { %9301 = vmatpush3.bf16.msra.mxu1 %v9300_v57 }
0x30c5   : > { %9303 = vmatprep.subr.bf16.mxu1 %v9302_v5 }
0x30c8   : > { %9305 = vmatpush3.bf16.msra.mxu1 %v9304_v58 }
0x30c9   : > { %9307 = vmatprep.subr.bf16.mxu1 %v9306_v3 }
0x30cc   : > { %9309 = vmatpush3.bf16.msra.mxu1 %v9308_v6 }
0x30cd   : > { %9311 = vmatprep.subr.bf16.mxu1 %v9310_v0 }
0x30d0   : > { %9313 = vmatpush3.bf16.msra.mxu1 %v9312_v37  ;;  %v6435_v37 = vld [vmem:[%s12352_s7 + $0x2d0] sm:$0xff] }
0x30d1   : > { %9315 = vmatprep.subr.bf16.mxu1 %v9314_v16  ;;  %v6438_v16 = vld [vmem:[%s12352_s7 + $0x2e8] sm:$0xff]  ;;  %v9232_v61 = vpack.c.bf16 %v6435_v37, %v6433_v4  ;;  %v6461_v37 = vld [vmem:[%s12352_s7 + $0x3a0] sm:$0xff] }
0x30d2   : > { %v9234_v24 = vpack.c.bf16 %v6440_v55, %v6438_v16  ;;  %v6463_v16 = vld [vmem:[%s12352_s7 + $0x3b0] sm:$0xff] }
0x30d3   : > { %9233 = vmatpush1.bf16.msra.mxu0 %v9232_v61  ;;  %v9260_v55 = vpack.c.bf16 %v6463_v16, %v6461_v37  ;;  %v6487_v37 = vld [vmem:[%s12352_s7 + $0x470] sm:$0xff]  ;;  %v6490_v16 = vld [vmem:[%s12352_s7 + $0x488] sm:$0xff] }
0x30d4   : > { %9317 = vmatpush3.bf16.msra.mxu1 %v9316_v13  ;;  %v6439_v13 = vld [vmem:[%s12352_s7 + $0x2f0] sm:$0xff]  ;;  %9235 = vmatprep.subr.bf16.mxu0 %v9234_v24 }
0x30d5   : > { %9319 = vmatprep.subr.bf16.mxu1 %v9318_v48  ;;  %v6442_v48 = vld [vmem:[%s12352_s7 + $0x308] sm:$0xff]  ;;  %v9236_v40 = vpack.c.bf16 %v6439_v13, %v6437_v29 }
0x30d6   : > { %v9238_v42 = vpack.c.bf16 %v6444_v62, %v6442_v48  ;;  %v6466_v62 = vld [vmem:[%s12352_s7 + $0x3c8] sm:$0xff] }
0x30d7   : > { %9237 = vmatpush1.bf16.msra.mxu0 %v9236_v40  ;;  %v6468_v40 = vld [vmem:[%s12352_s7 + $0x3d8] sm:$0xff] }
0x30d8   : > { %9321 = vmatpush3.bf16.msra.mxu1 %v9320_v30  ;;  %v6443_v30 = vld [vmem:[%s12352_s7 + $0x310] sm:$0xff]  ;;  %9239 = vmatprep.subr.bf16.mxu0 %v9238_v42  ;;  %v9262_v42 = vpack.c.bf16 %v6468_v40, %v6466_v62  ;;  %v6494_v40 = vld [vmem:[%s12352_s7 + $0x4a8] sm:$0xff] }
0x30d9   : > { %9323 = vmatprep.subr.bf16.mxu1 %v9322_v25  ;;  %v6446_v25 = vld [vmem:[%s12352_s7 + $0x328] sm:$0xff]  ;;  %v9240_v10 = vpack.c.bf16 %v6443_v30, %v6441_v20  ;;  %v6467_v20 = vld [vmem:[%s12352_s7 + $0x3d0] sm:$0xff] }
0x30db   : > { %9241 = vmatpush1.bf16.msra.mxu0 %v9240_v10 }
0x30dc   : > { %9325 = vmatpush3.bf16.msra.mxu1 %v9324_v43  ;;  %v9242_v43 = vpack.c.bf16 %v6448_v9, %v6446_v25  ;;  %v6470_v25 = vld [vmem:[%s12352_s7 + $0x3e8] sm:$0xff]  ;;  %v6472_v9 = vld [vmem:[%s12352_s7 + $0x3f8] sm:$0xff] }
0x30dd   : > { %9328 = vmatprep.subr.msk.bf16.mxu1 %vm11924_vm7, %v11930_v56  ;;  %v9266_v10 = vpack.c.bf16 %v6472_v9, %v6470_v25 }
0x30de   : > { %9243 = vmatprep.subr.bf16.mxu0 %v9242_v43  ;;  %v6469_v43 = vld [vmem:[%s12352_s7 + $0x3e0] sm:$0xff] }
0x315b   : > { %v11935_v54 = vpop.f32.mrb[88].mxu0 }
0x315c   : > { %v11937_v21 = vpop.f32.mrb[89].mxu0 }
0x3192   : > { %v6277_v63 = vpop.f32.mrb[102].mxu1 }
0x3193   : > { %v6278_v50 = vadd.f32 %v7406_v22, %v6277_v63  ;;  %v8626_v33 = vpop.f32.mrb[103].mxu1  ;;  %v6445_v22 = vld [vmem:[%s12352_s7 + $0x320] sm:$0xff]  ;;  %v6447_v63 = vld [vmem:[%s12352_s7 + $0x330] sm:$0xff] }
0x3194   : > { %v6452_v33 = vld [vmem:[%s12352_s7 + $0x358] sm:$0xff] }
0x3195   : > { %v6281_v57 = vadd.f32 %v6278_v50, %v11751_v51  ;;  %v6450_v50 = vld [vmem:[%s12352_s7 + $0x348] sm:$0xff] }
0x3197   : > { %v6284_v38 = vsel %vm846_vm1, %v6281_v57, 0.0 }
0x3198   : > { %6285 = vadd.xlane.f32.xlu0 %v6284_v38  ;;  %v9246_v38 = vpack.c.bf16 %v6452_v33, %v6450_v50  ;;  %v6474_v50 = vld [vmem:[%s12352_s7 + $0x408] sm:$0xff]  ;;  %v6476_v33 = vld [vmem:[%s12352_s7 + $0x418] sm:$0xff] }
0x3225   : > { %v6286_v60 = vpop.xlane.xlu0 %6285 }
0x3226   : > { %v6287_v5 = vmul.f32 0.03125, %v6286_v60  ;;  %v6449_v60 = vld [vmem:[%s12352_s7 + $0x340] sm:$0xff] }
0x3228   : > { %v6288_v53 = vsub.f32 %v6281_v57, %v6287_v5  ;;  %v9244_v57 = vpack.c.bf16 %v6447_v63, %v6445_v22  ;;  %v6451_v5 = vld [vmem:[%s12352_s7 + $0x350] sm:$0xff] }
0x3229   : > { %v6471_v22 = vld [vmem:[%s12352_s7 + $0x3f0] sm:$0xff] }
0x322a   : > { %v6289_v36 = vmul.f32 %v6288_v53, %v6288_v53  ;;  %9245 = vmatpush1.bf16.msra.mxu0 %v9244_v57  ;;  %v9268_v63 = vpack.c.bf16 %v6471_v22, %v6469_v43  ;;  %v9270_v57 = vpack.c.bf16 %v6476_v33, %v6474_v50  ;;  %v7410_v50 = vld [vmem:[%s12352_s7 + $0x260] ss:$8 sm:$0x3] }
0x322b   : > { %9247 = vmatprep.subr.bf16.mxu0 %v9246_v38  ;;  %v6473_v38 = vld [vmem:[%s12352_s7 + $0x400] sm:$0xff] }
0x322c   : > { %v6290_v15 = vsel %vm846_vm1, %v6289_v36, 0.0  ;;  %v6456_v36 = vld [vmem:[%s12352_s7 + $0x378] sm:$0xff] }
0x322d   : > { %6291 = vadd.xlane.f32.xlu0 %v6290_v15  ;;  %v9248_v15 = vpack.c.bf16 %v6451_v5, %v6449_v60  ;;  %v6475_v60 = vld [vmem:[%s12352_s7 + $0x410] sm:$0xff] }
0x322e   : > { %v9272_v5 = vpack.c.bf16 %v6475_v60, %v6473_v38  ;;  %v6343_v38 = vrot.slane %v7410_v50, %v10620_v47  ;;  %v6339_v60 = vrot.slane %v7410_v50, %v10615_v44 }
0x322f   : > { %9249 = vmatpush1.bf16.msra.mxu0 %v9248_v15 }
0x32ba   : > { %v6292_v28 = vpop.xlane.xlu0 %6291 }
0x32bb   : > { %v6293_v58 = vmul.f32 0.03125, %v6292_v28 }
0x32bd   : > { %v6294_v3 = vadd.f32 1e-05, %v6293_v58  ;;  %v6453_v58 = vld [vmem:[%s12352_s7 + $0x360] sm:$0xff] }
0x32bf   : > { %9775 = vrsqrt.f32 %v6294_v3  ;;  %v6455_v3 = vld [vmem:[%s12352_s7 + $0x370] sm:$0xff] }
0x32c9   : > { %v9776_v11 = vpop.eup %9775 }
0x32ca   : > { %v6296_v51 = vmul.f32 %v9776_v11, %v6288_v53  ;;  %v6454_v53 = vld [vmem:[%s12352_s7 + $0x368] sm:$0xff] }
0x32cb   : > { %v9250_v28 = vpack.c.bf16 %v6456_v36, %v6454_v53  ;;  %v6458_v11 = vld [vmem:[%s12352_s7 + $0x388] sm:$0xff]  ;;  %v6480_v36 = vld [vmem:[%s12352_s7 + $0x438] sm:$0xff] }
0x32cc   : > { %v6301_v45 = vmul.f32 %v7408_v18, %v6296_v51  ;;  %v6460_v18 = vld [vmem:[%s12352_s7 + $0x398] sm:$0xff]  ;;  %v9252_v51 = vpack.c.bf16 %v6455_v3, %v6453_v58  ;;  %v6478_v53 = vld [vmem:[%s12352_s7 + $0x428] sm:$0xff]  ;;  %v6479_v58 = vld [vmem:[%s12352_s7 + $0x430] sm:$0xff] }
0x32cd   : > { %9251 = vmatprep.subr.bf16.mxu0 %v9250_v28  ;;  %v9274_v15 = vpack.c.bf16 %v6480_v36, %v6478_v53  ;;  %v6477_v28 = vld [vmem:[%s12352_s7 + $0x420] sm:$0xff]  ;;  %v6419_v53 = vadd.f32 %v11935_v54, %v6339_v60  ;;  %v6818_v54 = vld [vmem:[%s12348_s3 + $0x10] sm:$0xff] }
0x32ce   : > { %v11951_v6 = vadd.f32 %v7409_v14, %v6301_v45  ;;  %v9254_v14 = vpack.c.bf16 %v6460_v18, %v6458_v11  ;;  %v6457_v45 = vld [vmem:[%s12352_s7 + $0x380] sm:$0xff]  ;;  %9253 = vmatpush1.bf16.msra.mxu0 %v9252_v51  ;;  %v9276_v3 = vpack.c.bf16 %v6479_v58, %v6477_v28  ;;  %v6482_v11 = vld [vmem:[%s12352_s7 + $0x448] sm:$0xff]  ;;  %v6484_v18 = vld [vmem:[%s12352_s7 + $0x458] sm:$0xff] }
0x32cf   : > { %v9278_v51 = vpack.c.bf16 %v6484_v18, %v6482_v11 }
0x32d0   : > { %v6307_v0 = vsel %vm846_vm1, %v11951_v6, 0.0  ;;  %9255 = vmatprep.subr.bf16.mxu0 %v9254_v14  ;;  %v6481_v14 = vld [vmem:[%s12352_s7 + $0x440] sm:$0xff] }
0x32d1   : > { %6308 = vadd.xlane.f32.xlu0 %v6307_v0  ;;  %v6459_v0 = vld [vmem:[%s12352_s7 + $0x390] sm:$0xff] }
0x32d2   : > { %v9256_v4 = vpack.c.bf16 %v6459_v0, %v6457_v45  ;;  %v6483_v45 = vld [vmem:[%s12352_s7 + $0x450] sm:$0xff] }
0x32d3   : > { %v9280_v0 = vpack.c.bf16 %v6483_v45, %v6481_v14 }
0x32d4   : > { %9257 = vmatpush1.bf16.msra.mxu0 %v9256_v4  ;;  %v9282_v4 = vpack.c.bf16 %v6488_v26, %v6486_v8 }
0x32d5   : > { %9259 = vmatprep.subr.bf16.mxu0 %v9258_v52  ;;  %v6485_v52 = vld [vmem:[%s12352_s7 + $0x460] sm:$0xff] }
0x32d8   : > { %9261 = vmatpush1.bf16.msra.mxu0 %v9260_v55  ;;  %v9284_v55 = vpack.c.bf16 %v6487_v37, %v6485_v52 }
0x32d9   : > { %9263 = vmatprep.subr.bf16.mxu0 %v9262_v42  ;;  %v6496_v42 = vld [vmem:[%s12352_s7 + $0x4b8] sm:$0xff] }
0x335e   : > { %v6309_v61 = vpop.xlane.xlu0 %6308 }
0x335f   : > { %v6310_v24 = vmul.f32 0.03125, %v6309_v61  ;;  %v6492_v61 = vld [vmem:[%s12352_s7 + $0x498] sm:$0xff] }
0x3361   : > { %v12052_v29 = vsub.f32 %v11951_v6, %v6310_v24  ;;  %v6465_v6 = vld [vmem:[%s12352_s7 + $0x3c0] sm:$0xff] }
0x3362   : > { %v9264_v30 = vpack.c.bf16 %v6467_v20, %v6465_v6  ;;  %v6489_v24 = vld [vmem:[%s12352_s7 + $0x480] sm:$0xff]  ;;  %v9290_v6 = vpack.c.bf16 %v6496_v42, %v6494_v40 }
0x3363   : > { %v6312_v13 = vmul.f32 %v12052_v29, %v12052_v29  ;;  %v6493_v20 = vld [vmem:[%s12352_s7 + $0x4a0] sm:$0xff] }
0x3364   : > { %9265 = vmatpush1.bf16.msra.mxu0 %v9264_v30  ;;  %v6495_v30 = vld [vmem:[%s12352_s7 + $0x4b0] sm:$0xff] }
0x3365   : > { %v6313_v48 = vsel %vm846_vm1, %v6312_v13, 0.0  ;;  %9267 = vmatprep.subr.bf16.mxu0 %v9266_v10  ;;  %v6491_v13 = vld [vmem:[%s12352_s7 + $0x490] sm:$0xff]  ;;  %v9292_v25 = vpack.c.bf16 %v6495_v30, %v6493_v20 }
0x3366   : > { %6314 = vadd.xlane.f32.xlu0 %v6313_v48  ;;  %v9286_v48 = vpack.c.bf16 %v6492_v61, %v6490_v16  ;;  %v9288_v62 = vpack.c.bf16 %v6491_v13, %v6489_v24 }
0x3368   : > { %9269 = vmatpush1.bf16.msra.mxu0 %v9268_v63 }
0x3369   : > { %9271 = vmatprep.subr.bf16.mxu0 %v9270_v57 }
0x336c   : > { %9273 = vmatpush1.bf16.msra.mxu0 %v9272_v5  ;;  %v6421_v5 = vadd.f32 %v11937_v21, %v6343_v38  ;;  %v6819_v21 = vld [vmem:[%s12348_s3 + $0x18] sm:$0xff] }
0x336d   : > { %9275 = vmatprep.subr.bf16.mxu0 %v9274_v15  ;;  %v6429_v15 = vmax.f32 %v6419_v53, 0.0  ;;  %v9354_v58 = vpack.c.bf16 %v6819_v21, %v6818_v54 }
0x336e   : > { %v6430_v36 = vmax.f32 %v6421_v5, 0.0 }
0x3370   : > { %9277 = vmatpush1.bf16.msra.mxu0 %v9276_v3  ;;  %v7413_v3 = vld [vmem:[%s12352_s7 + $0x270] ss:$8 sm:$0x3] }
0x3371   : > { %9279 = vmatprep.subr.bf16.mxu0 %v9278_v51  ;;  %v6503_v14 = vrot.slane %v7413_v3, %v10615_v44  ;;  %v9332_v44 = vpack.c.bf16 %v10910_v12, %v10901_v1  ;;  %v7414_v12 = vld [vmem:[%s12349_s4 + $0x2a8] ss:$0 sm:$0xff] }
0x3374   : > { %9281 = vmatpush1.bf16.msra.mxu0 %v9280_v0  ;;  %v6507_v0 = vrot.slane %v7413_v3, %v10620_v47 }
0x3375   : > { %9283 = vmatprep.subr.bf16.mxu0 %v9282_v4 }
0x3378   : > { %9285 = vmatpush1.bf16.msra.mxu0 %v9284_v55 }
0x3379   : > { %9287 = vmatprep.subr.bf16.mxu0 %v9286_v48 }
0x337c   : > { %9289 = vmatpush1.bf16.msra.mxu0 %v9288_v62 }
0x337d   : > { %9291 = vmatprep.subr.bf16.mxu0 %v9290_v6 }
0x3380   : > { %9293 = vmatpush1.bf16.msra.mxu0 %v9292_v25 }
0x33f3   : > { %v6315_v9 = vpop.xlane.xlu0 %6314 }
0x33f4   : > { %v6316_v10 = vmul.f32 0.03125, %v6315_v9 }
0x33f6   : > { %v6317_v43 = vadd.f32 1e-05, %v6316_v10 }
0x33f8   : > { %9777 = vrsqrt.f32 %v6317_v43 }
0x3402   : > { %v9778_v22 = vpop.eup %9777 }
0x3403   : > { %v6319_v63 = vmul.f32 %v9778_v22, %v12052_v29 }
0x3405   : > { %v6320_v33 = vmul.f32 %v11816_v34, %v6319_v63  ;;  %v6816_v34 = vld [vmem:[%s12348_s3] sm:$0xff] }
0x3407   : > { %v6321_v57 = vadd.f32 %v11821_v41, %v6320_v33  ;;  %v6817_v41 = vld [vmem:[%s12348_s3 + $0x8] sm:$0xff] }
0x3408   : > { %v9350_v28 = vpack.c.bf16 %v6817_v41, %v6816_v34 }
0x3409   : > { %6322 = vst.msk [vmem:[#allocation2 + $0x8] sm:$0xff] %vm846_vm1, %v6321_v57 }
0x340a   : > { %9351 = vmatprep.subr.bf16.mxu0 %v9350_v28 }
0x3410   : > { %v6324_v29 = vld [vmem:[#allocation2 + $0x8] sm:$0xff] }
0x3411   : > { %7412 = vmatmul.mubr.msk.f32.gmra.mrb[90].mxu0 %vm846_vm1, %v6324_v29 }
0x3412   : > { %6574 = vmatprep.mubr.f32.mxu0 %v6430_v36 }
0x3415   : > { %6575 = vmatmul.mubr.f32.vlgmr.msra.gmra.mrb[92].mxu0 %v6429_v15 }
0x3416   : > { %9353 = vmatpush3.bf16.msra.mxu0 %v9350_v28 }
0x3417   : > { %9355 = vmatprep.subr.bf16.mxu0 %v9354_v58 }
0x341a   : > { %9357 = vmatpush3.bf16.msra.mxu0 %v9354_v58 }
0x34e4   : > { %v6424_v11 = vpop.f32.mrb[90].mxu0 }
0x34e5   : > { %v6425_v18 = vadd.f32 %v6424_v11, %v6339_v60  ;;  %v6426_v51 = vpop.f32.mrb[91].mxu0 }
0x34e6   : > { %v6427_v45 = vadd.f32 %v6426_v51, %v6343_v38 }
0x34e7   : > { %v6431_v4 = vmax.f32 %v6425_v18, 0.0 }
0x34e8   : > { %v6432_v8 = vmax.f32 %v6427_v45, 0.0  ;;  %v6576_v26 = vpop.f32.mrb[92].mxu0 }
0x34e9   : > { %v6577_v52 = vadd.f32 %v6576_v26, %v6503_v14  ;;  %v6578_v37 = vpop.f32.mrb[93].mxu0 }
0x34ea   : > { %v6579_v16 = vadd.f32 %v6578_v37, %v6507_v0  ;;  %6580 = vmatprep.mubr.f32.mxu0 %v6432_v8 }
0x34eb   : > { %6581 = vmatmul.mubr.f32.gmra.mrb[94].mxu0 %v6431_v4  ;;  %v6587_v61 = vmax.f32 %v6577_v52, 0.0 }
0x34ec   : > { %v6588_v55 = vmax.f32 %v6579_v16, 0.0  ;;  %8654 = vmatprep.mubr.msk.f32.mxu0 %vm846_vm1, %v10296_v23  ;;  %v9344_v23 = vpack.c.bf16 %v10952_v32, %v10936_v7 }
0x34ee   : > { %6692 = vmatprep.mubr.f32.mxu1 %v6588_v55 }
0x34ef   : > { %6693 = vmatmul.mubr.f32.vlgmr.msra.gmra.mrb[104].mxu1 %v6587_v61  ;;  %8655 = vmatmul.mubr.msk.f32.vlgmr.msra.gmra.mrb[96].mxu0 %vm846_vm1, %v10288_v19  ;;  %v9338_v19 = vpack.c.bf16 %v10930_v17, %v10914_v2 }
0x34f0   : > { %9331 = vmatpush3.bf16.xpose.msk.msra.mxu1 %vm11924_vm7, %v11930_v56  ;;  %8657 = vmatprep.mubr.msk.f32.mxu0 %vm846_vm1, %v10315_v31 }
0x34f1   : > { %9334 = vmatprep.subr.msk.bf16.mxu1 %vm11924_vm7, %v9332_v44 }
0x34f3   : > { %8658 = vmatmul.mubr.msk.f32.gmra.mrb[98].mxu0 %vm846_vm1, %v10307_v27 }
0x34f4   : > { %8660 = vmatprep.mubr.msk.f32.mxu0 %vm846_vm1, %v10334_v39 }
0x34f7   : > { %8661 = vmatmul.mubr.msk.f32.gmra.mrb[100].mxu0 %vm846_vm1, %v10326_v35 }
0x34f8   : > { %9337 = vmatpush3.bf16.xpose.msk.msra.mxu1 %vm11924_vm7, %v9332_v44  ;;  %8663 = vmatprep.mubr.msk.f32.mxu0 %vm846_vm1, %v10359_v49 }
0x34f9   : > { %9340 = vmatprep.subr.msk.bf16.mxu1 %vm11924_vm7, %v9338_v19 }
0x34fb   : > { %8664 = vmatmul.mubr.msk.f32.gmra.mrb[102].mxu0 %vm846_vm1, %v10351_v46 }
0x3500   : > { %9343 = vmatpush3.bf16.xpose.msk.msra.mxu1 %vm11924_vm7, %v9338_v19 }
0x3501   : > { %9346 = vmatprep.subr.msk.bf16.mxu1 %vm11924_vm7, %v9344_v23 }
0x3508   : > { %9349 = vmatpush3.bf16.xpose.msk.msra.mxu1 %vm11924_vm7, %v9344_v23 }
0x35be   : > { %v6582_v27 = vpop.f32.mrb[94].mxu0 }
0x35bf   : > { %v6583_v31 = vadd.f32 %v6582_v27, %v6503_v14  ;;  %v6584_v35 = vpop.f32.mrb[95].mxu0 }
0x35c0   : > { %v6585_v39 = vadd.f32 %v6584_v35, %v6507_v0 }
0x35c1   : > { %v6589_v46 = vmax.f32 %v6583_v31, 0.0 }
0x35c2   : > { %v6590_v49 = vmax.f32 %v6585_v39, 0.0  ;;  %v7949_v47 = vpop.f32.mrb[104].mxu1  ;;  %v12219_v1 = vpop.f32.mrb[96].mxu0 }
0x35c3   : > { %v7950_v2 = vpop.f32.mrb[105].mxu1  ;;  %v12224_v17 = vpop.f32.mrb[97].mxu0  ;;  %v6928_v5 = vsel %vm696_vm0, %v12219_v1, 0.0 }
0x35c4   : > { %v7951_v7 = vadd.f32 %v7950_v2, %v7949_v47  ;;  %6697 = vmatprep.mubr.f32.mxu1 %v6590_v49  ;;  %v6925_v42 = vsel %vm696_vm0, %v12224_v17, 0.0 }
0x35c5   : > { %6698 = vmatmul.mubr.f32.gmra.mrb[106].mxu1 %v6589_v46 }
0x35c6   : > { %v6695_v32 = vadd.f32 %v7951_v7, %v7414_v12  ;;  %v12226_v59 = vpop.f32.mrb[98].mxu0 }
0x35c7   : > { %v12228_v56 = vpop.f32.mrb[99].mxu0  ;;  %v6934_v53 = vsel %vm696_vm0, %v12226_v59, 0.0 }
0x35c8   : > { %v6703_v24 = vmul.f32 %v6695_v32, %v6695_v32  ;;  %v6931_v20 = vsel %vm696_vm0, %v12228_v56, 0.0 }
0x35ca   : > { %v12230_v13 = vpop.f32.mrb[100].mxu0  ;;  %v6705_v48 = vsel %vm846_vm1, %v6703_v24, 0.0 }
0x35cb   : > { %v12233_v62 = vpop.f32.mrb[101].mxu0  ;;  %6706 = vadd.xlane.f32.xlu1 %v6705_v48  ;;  %v6940_v36 = vsel %vm696_vm0, %v12230_v13, 0.0 }
0x35cc   : > { %v6937_v30 = vsel %vm696_vm0, %v12233_v62, 0.0 }
0x35ce   : > { %v12235_v40 = vpop.f32.mrb[102].mxu0 }
0x35cf   : > { %v12239_v6 = vpop.f32.mrb[103].mxu0  ;;  %6926 = vadd.xlane.f32.xlu1 %v6925_v42  ;;  %v6946_v29 = vsel %vm696_vm0, %v12235_v40, 0.0 }
0x35d0   : > { %v6943_v25 = vsel %vm696_vm0, %v12239_v6, 0.0 }
0x35d3   : > { %6932 = vadd.xlane.f32.xlu1 %v6931_v20 }
0x35d7   : > { %6938 = vadd.xlane.f32.xlu1 %v6937_v30 }
0x35db   : > { %6944 = vadd.xlane.f32.xlu1 %v6943_v25 }
0x3658   : > { %v6707_v9 = vpop.xlane.xlu1 %6706 }
0x3659   : > { %v6711_v10 = vadd.f32 1e-24, %v6707_v9 }
0x365b   : > { %9779 = vrsqrt.f32 %v6711_v10 }
0x365c   : > { %v6927_v15 = vpop.xlane.xlu1 %6926 }
0x3660   : > { %v6933_v28 = vpop.xlane.xlu1 %6932 }
0x3664   : > { %v6939_v3 = vpop.xlane.xlu1 %6938 }
0x3665   : > { %v9780_v43 = vpop.eup %9779 }
0x3666   : > { %v6715_v22 = vmul.f32 %v9780_v43, %v6695_v32 }
0x3668   : > { %8643 = vmatprep.mubr.msk.f32.mxu1 %vm846_vm1, %v6715_v22  ;;  %v6945_v8 = vpop.xlane.xlu1 %6944 }
0x3698   : > { %v7952_v63 = vpop.f32.mrb[106].mxu1 }
0x3699   : > { %v7953_v50 = vpop.f32.mrb[107].mxu1 }
0x369a   : > { %v7954_v33 = vadd.f32 %v7953_v50, %v7952_v63 }
0x369c   : > { %v6700_v57 = vadd.f32 %v7954_v33, %v7414_v12 }
0x369e   : > { %v6704_v38 = vmul.f32 %v6700_v57, %v6700_v57 }
0x36a0   : > { %v6708_v60 = vsel %vm846_vm1, %v6704_v38, 0.0 }
0x36a1   : > { %6709 = vadd.xlane.f32.xlu0 %v6708_v60 }
0x36a5   : > { %6929 = vadd.xlane.f32.xlu0 %v6928_v5 }
0x36a9   : > { %6935 = vadd.xlane.f32.xlu0 %v6934_v53 }
0x36ad   : > { %6941 = vadd.xlane.f32.xlu0 %v6940_v36 }
0x36b1   : > { %6947 = vadd.xlane.f32.xlu0 %v6946_v29 }
0x372e   : > { %v6710_v34 = vpop.xlane.xlu0 %6709 }
0x372f   : > { %v6712_v41 = vadd.f32 1e-24, %v6710_v34 }
0x3731   : > { %9781 = vrsqrt.f32 %v6712_v41 }
0x3732   : > { %v6930_v54 = vpop.xlane.xlu0 %6929 }
0x3733   : > { %v6949_v21 = vadd.f32 %v6930_v54, %v6927_v15 }
0x3735   : > { %v6950_v58 = vadd.f32 %v6949_v21, %v6933_v28 }
0x3736   : > { %v6936_v11 = vpop.xlane.xlu0 %6935 }
0x3737   : > { %v6951_v18 = vadd.f32 %v6950_v58, %v6936_v11 }
0x3739   : > { %v6952_v51 = vadd.f32 %v6951_v18, %v6939_v3 }
0x373a   : > { %v6942_v14 = vpop.xlane.xlu0 %6941 }
0x373b   : > { %v9782_v45 = vpop.eup %9781  ;;  %v6953_v0 = vadd.f32 %v6952_v51, %v6942_v14 }
0x373c   : > { %v6716_v26 = vmul.f32 %v9782_v45, %v6700_v57 }
0x373d   : > { %v6954_v4 = vadd.f32 %v6953_v0, %v6945_v8 }
0x373e   : > { %v6948_v52 = vpop.xlane.xlu0 %6947  ;;  %8644 = vmatmul.mubr.msk.f32.vlgmr.msra.gmra.mrb[108].mxu1 %vm846_vm1, %v6716_v26 }
0x373f   : > { %v6955_v37 = vadd.f32 %v6954_v4, %v6948_v52 }
0x3741   : > { %v6956_v16 = vrot.slane %v6955_v37, 4 }
0x3743   : > { %v6957_v55 = vadd.f32 %v6956_v16, %v6955_v37 }
0x3745   : > { %v6958_v61 = vrot.slane %v6957_v55, 2 }
0x3747   : > { %v6959_v44 = vadd.f32 %v6958_v61, %v6957_v55 }
0x3749   : > { %v6960_v19 = vrot.slane %v6959_v44, 1 }
0x374b   : > { %v6961_v23 = vadd.f32 %v6960_v19, %v6959_v44 }
0x374d   : > { %v6963_v27 = vmul.f32 0.0009765625, %v6961_v23 }
0x374f   : > { %v6965_v31 = vsub.f32 %v12219_v1, %v6963_v27  ;;  %v12260_v35 = vsub.f32 %v12224_v17, %v6963_v27  ;;  %v6967_v39 = vsub.f32 %v12226_v59, %v6963_v27  ;;  %v6966_v49 = vsub.f32 %v12228_v56, %v6963_v27 }
0x3750   : > { %v6969_v12 = vsub.f32 %v12230_v13, %v6963_v27  ;;  %v6968_v2 = vsub.f32 %v12233_v62, %v6963_v27  ;;  %v6971_v17 = vsub.f32 %v12235_v40, %v6963_v27  ;;  %v6970_v59 = vsub.f32 %v12239_v6, %v6963_v27 }
0x3751   : > { %v6973_v47 = vmul.f32 %v6965_v31, %v6965_v31  ;;  %v6972_v46 = vmul.f32 %v12260_v35, %v12260_v35  ;;  %v6975_v1 = vmul.f32 %v6967_v39, %v6967_v39  ;;  %v6974_v24 = vmul.f32 %v6966_v49, %v6966_v49 }
0x3752   : > { %v6977_v42 = vmul.f32 %v6969_v12, %v6969_v12  ;;  %v6976_v13 = vmul.f32 %v6968_v2, %v6968_v2  ;;  %v6979_v30 = vmul.f32 %v6971_v17, %v6971_v17  ;;  %v6978_v25 = vmul.f32 %v6970_v59, %v6970_v59 }
0x3753   : > { %v6983_v7 = vsel %vm696_vm0, %v6973_v47, 0.0  ;;  %v6980_v32 = vsel %vm696_vm0, %v6972_v46, 0.0  ;;  %v6989_v56 = vsel %vm696_vm0, %v6975_v1, 0.0  ;;  %v6986_v48 = vsel %vm696_vm0, %v6974_v24, 0.0 }
0x3754   : > { %6984 = vadd.xlane.f32.xlu0 %v6983_v7  ;;  %6981 = vadd.xlane.f32.xlu1 %v6980_v32  ;;  %v6995_v62 = vsel %vm696_vm0, %v6977_v42, 0.0  ;;  %v6992_v20 = vsel %vm696_vm0, %v6976_v13, 0.0  ;;  %v7001_v40 = vsel %vm696_vm0, %v6979_v30, 0.0  ;;  %v6998_v6 = vsel %vm696_vm0, %v6978_v25, 0.0 }
0x3758   : > { %6990 = vadd.xlane.f32.xlu0 %v6989_v56  ;;  %6987 = vadd.xlane.f32.xlu1 %v6986_v48 }
0x375c   : > { %6996 = vadd.xlane.f32.xlu0 %v6995_v62  ;;  %6993 = vadd.xlane.f32.xlu1 %v6992_v20 }
0x3760   : > { %7002 = vadd.xlane.f32.xlu0 %v7001_v40  ;;  %6999 = vadd.xlane.f32.xlu1 %v6998_v6 }
0x37e1   : > { %v6985_v9 = vpop.xlane.xlu0 %6984  ;;  %v6982_v10 = vpop.xlane.xlu1 %6981 }
0x37e2   : > { %v7004_v43 = vadd.f32 %v6985_v9, %v6982_v10 }
0x37e5   : > { %v6991_v22 = vpop.xlane.xlu0 %6990  ;;  %v6988_v63 = vpop.xlane.xlu1 %6987 }
0x37e6   : > { %v7005_v50 = vadd.f32 %v7004_v43, %v6988_v63 }
0x37e8   : > { %v7006_v33 = vadd.f32 %v7005_v50, %v6991_v22 }
0x37e9   : > { %v6997_v57 = vpop.xlane.xlu0 %6996  ;;  %v6994_v38 = vpop.xlane.xlu1 %6993 }
0x37ea   : > { %v7007_v60 = vadd.f32 %v7006_v33, %v6994_v38 }
0x37ec   : > { %v7008_v5 = vadd.f32 %v7007_v60, %v6997_v57 }
0x37ed   : > { %v7000_v53 = vpop.xlane.xlu1 %6999  ;;  %v7003_v29 = vpop.xlane.xlu0 %7002 }
0x37ee   : > { %v7009_v36 = vadd.f32 %v7008_v5, %v7000_v53 }
0x37f0   : > { %v7010_v15 = vadd.f32 %v7009_v36, %v7003_v29 }
0x37f2   : > { %v7011_v34 = vrot.slane %v7010_v15, 4 }
0x37f4   : > { %v7012_v41 = vadd.f32 %v7011_v34, %v7010_v15 }
0x37f6   : > { %v7013_v28 = vrot.slane %v7012_v41, 2 }
0x37f8   : > { %v7014_v54 = vadd.f32 %v7013_v28, %v7012_v41 }
0x37fa   : > { %v7015_v21 = vrot.slane %v7014_v54, 1 }
0x37fc   : > { %v7016_v58 = vadd.f32 %v7015_v21, %v7014_v54 }
0x37fe   : > { %v7017_v3 = vmul.f32 0.0009765625, %v7016_v58 }
0x3800   : > { %v7018_v11 = vadd.f32 1e-05, %v7017_v3 }
0x3802   : > { %9783 = vrsqrt.f32 %v7018_v11 }
0x380c   : > { %v9784_v18 = vpop.eup %9783 }
0x380d   : > { %v7022_v51 = vmul.f32 %v9784_v18, %v6966_v49  ;;  %v12278_v14 = vmul.f32 %v9784_v18, %v6965_v31  ;;  %v12280_v45 = vmul.f32 %v9784_v18, %v6968_v2  ;;  %v12282_v0 = vmul.f32 %v9784_v18, %v6967_v39 }
0x380e   : > { %v12286_v4 = vmul.f32 %v9784_v18, %v6970_v59  ;;  %v12288_v52 = vmul.f32 %v9784_v18, %v6969_v12  ;;  %v12298_v23 = vmul.f32 %v9784_v18, %v6971_v17  ;;  %v12311_v2 = vmul.f32 %v9784_v18, %v12260_v35 }
0x380f   : > { %v7030_v8 = vmul.f32 %v7022_v51, %v7022_v51  ;;  %v7029_v26 = vmul.f32 %v12278_v14, %v12278_v14  ;;  %v7032_v61 = vmul.f32 %v12280_v45, %v12280_v45  ;;  %v7031_v44 = vmul.f32 %v12282_v0, %v12282_v0 }
0x3810   : > { %v7034_v39 = vmul.f32 %v12286_v4, %v12286_v4  ;;  %v7033_v49 = vmul.f32 %v12288_v52, %v12288_v52  ;;  %v7035_v12 = vmul.f32 %v12298_v23, %v12298_v23  ;;  %v7028_v32 = vmul.f32 %v12311_v2, %v12311_v2 }
0x3811   : > { %v8645_v37 = vpop.f32.mrb[108].mxu1  ;;  %v7042_v16 = vsel %vm696_vm0, %v7030_v8, 0.0  ;;  %v7039_v55 = vsel %vm696_vm0, %v7029_v26, 0.0  ;;  %v7048_v27 = vsel %vm696_vm0, %v7032_v61, 0.0  ;;  %v7045_v31 = vsel %vm696_vm0, %v7031_v44, 0.0 }
0x3812   : > { %v12296_v19 = vpop.f32.mrb[109].mxu1  ;;  %7043 = vadd.xlane.f32.xlu0 %v7042_v16  ;;  %7040 = vadd.xlane.f32.xlu1 %v7039_v55  ;;  %v7054_v47 = vsel %vm696_vm0, %v7034_v39, 0.0  ;;  %v7051_v46 = vsel %vm696_vm0, %v7033_v49, 0.0  ;;  %v7057_v7 = vsel %vm696_vm0, %v7035_v12, 0.0  ;;  %v7036_v1 = vsel %vm696_vm0, %v7028_v32, 0.0 }
0x3813   : > { %v6799_v24 = vsub.f32 0.0, %v8645_v37  ;;  %v6798_v21 = vsub.f32 0.0, %v12296_v19 }
0x3815   : > { %v6802_v17 = vmul.f32 1.442695, %v6799_v24  ;;  %v6800_v58 = vmul.f32 1.442695, %v6798_v21 }
0x3816   : > { %7049 = vadd.xlane.f32.xlu0 %v7048_v27  ;;  %7046 = vadd.xlane.f32.xlu1 %v7045_v31 }
0x3817   : > { %9785 = vpow2.f32 %v6802_v17 }
0x381a   : > { %7055 = vadd.xlane.f32.xlu0 %v7054_v47  ;;  %7052 = vadd.xlane.f32.xlu1 %v7051_v46 }
0x381e   : > { %7058 = vadd.xlane.f32.xlu1 %v7057_v7 }
0x3821   : > { %v9786_v35 = vpop.eup %9785 }
0x3822   : > { %7037 = vadd.xlane.f32.xlu1 %v7036_v1  ;;  %v6805_v25 = vadd.f32 1.0, %v9786_v35 }
0x389f   : > { %v7044_v59 = vpop.xlane.xlu0 %7043  ;;  %v7041_v56 = vpop.xlane.xlu1 %7040 }
0x38a0   : > { %v7062_v48 = vadd.f32 1e-12, %v7044_v59  ;;  %v7061_v42 = vadd.f32 1e-12, %v7041_v56 }
0x38a2   : > { %9787 = vrsqrt.f32 %v7062_v48 }
0x38a3   : > { %9789 = vrsqrt.f32 %v7061_v42  ;;  %v7050_v13 = vpop.xlane.xlu0 %7049  ;;  %v7047_v62 = vpop.xlane.xlu1 %7046 }
0x38a4   : > { %v7064_v20 = vadd.f32 1e-12, %v7050_v13  ;;  %v7063_v30 = vadd.f32 1e-12, %v7047_v62 }
0x38a6   : > { %9791 = vrsqrt.f32 %v7064_v20 }
0x38a7   : > { %9793 = vrsqrt.f32 %v7063_v30  ;;  %v7056_v40 = vpop.xlane.xlu0 %7055  ;;  %v7053_v6 = vpop.xlane.xlu1 %7052 }
0x38a8   : > { %v7066_v9 = vadd.f32 1e-12, %v7056_v40  ;;  %v7065_v10 = vadd.f32 1e-12, %v7053_v6  ;;  %9795 = vrcp.f32 %v6805_v25 }
0x38aa   : > { %9797 = vrsqrt.f32 %v7065_v10 }
0x38ab   : > { %v7059_v43 = vpop.xlane.xlu1 %7058  ;;  %9799 = vrsqrt.f32 %v7066_v9 }
0x38ac   : > { %v9788_v22 = vpop.eup %9787  ;;  %v7067_v63 = vadd.f32 1e-12, %v7059_v43 }
0x38ad   : > { %v9790_v50 = vpop.eup %9789  ;;  %v7078_v33 = vmul.f32 %v9788_v22, %v7022_v51 }
0x38ae   : > { %9801 = vrsqrt.f32 %v7067_v63  ;;  %v7077_v57 = vmul.f32 %v9790_v50, %v12278_v14 }
0x38af   : > { %7089 = vrot.lane.b32.xlu0 %v7078_v33, %s9832_s11  ;;  %9803 = vpow2.f32 %v6800_v58  ;;  %v7038_v3 = vpop.xlane.xlu1 %7037 }
0x38b0   : > { %v9792_v38 = vpop.eup %9791  ;;  %7085 = vrot.lane.b32.xlu1 %v7077_v57, %s9830_s19  ;;  %v7060_v11 = vadd.f32 1e-12, %v7038_v3 }
0x38b1   : > { %v9794_v60 = vpop.eup %9793  ;;  %v7080_v5 = vmul.f32 %v9792_v38, %v12280_v45 }
0x38b2   : > { %v7079_v53 = vmul.f32 %v9794_v60, %v12282_v0  ;;  %v9796_v36 = vpop.eup %9795  ;;  %9805 = vrsqrt.f32 %v7060_v11 }
0x38b3   : > { %7097 = vrot.lane.b32.xlu0 %v7080_v5, %s9821_s18 }
0x38b4   : > { %7093 = vrot.lane.b32.xlu1 %v7079_v53, %s9833_s12  ;;  %v9798_v29 = vpop.eup %9797 }
0x38b5   : > { %v9800_v15 = vpop.eup %9799  ;;  %v7081_v34 = vmul.f32 %v9798_v29, %v12288_v52 }
0x38b6   : > { %v7082_v28 = vmul.f32 %v9800_v15, %v12286_v4 }
0x38b7   : > { %6811 = vrot.lane.b32.xlu0 %v9796_v36, %s9821_s18  ;;  %s7214_s18 = sshll.u32 %s12364_s10, 3 }
0x38b8   : > { %v9802_v41 = vpop.eup %9801  ;;  %7101 = vrot.lane.b32.xlu1 %v7081_v34, %s9827_s24  ;;  %s337_s24 = scalar_lea.vmem %s12353_s8, %s7214_s18  ;;  %s341_s13 = scalar_lea.vmem %s12354_s9, %s7214_s18 }
0x38b9   : > { %v7083_v54 = vmul.f32 %v9802_v41, %v12298_v23  ;;  %v9804_v18 = vpop.eup %9803 }
0x38ba   : > { %v6804_v51 = vadd.f32 1.0, %v9804_v18 }
0x38bb   : > { %7105 = vrot.lane.b32.xlu0 %v7082_v28, %s9822_s21 }
0x38bc   : > { %7109 = vrot.lane.b32.xlu1 %v7083_v54, %s9825_s28  ;;  %9807 = vrcp.f32 %v6804_v51  ;;  %v9806_v14 = vpop.eup %9805 }
0x38bd   : > { %v7076_v8 = vmul.f32 %v9806_v14, %v12311_v2 }
0x38c6   : > { %v9808_v16 = vpop.eup %9807 }
0x3921   : > { %v7090_v45 = vpop.permute.xlu0 %7089 }
0x3922   : > { %v7086_v0 = vpop.permute.xlu1 %7085 }
0x3923   : > { %v7112_v26 = vsel %vm696_vm0, %v7076_v8, %v7086_v0 }
0x3924   : > { %v7113_v37 = vsel %vm846_vm1, %v7112_v26, %v7090_v45 }
0x3925   : > { %v7098_v4 = vpop.permute.xlu0 %7097 }
0x3926   : > { %v7094_v52 = vpop.permute.xlu1 %7093 }
0x3927   : > { %v7115_v55 = vsel %vm7114_vm8, %v7113_v37, %v7094_v52 }
0x3928   : > { %v7116_v23 = vsel %vm2799_vm6, %v7115_v55, %v7098_v4 }
0x3929   : > { %v6812_v61 = vpop.permute.xlu0 %6811 }
0x392a   : > { %v6814_v44 = vsel %vm2799_vm6, %v9808_v16, %v6812_v61  ;;  %v7102_v19 = vpop.permute.xlu1 %7101 }
0x392b   : > { %6815 = vst [vmem:[%s337_s24] sm:$0xff] %v6814_v44  ;;  %v7118_v27 = vsel %vm7117_vm9, %v7116_v23, %v7102_v19 }
0x392d   : > { %v7106_v31 = vpop.permute.xlu0 %7105 }
0x392e   : > { %v7120_v39 = vsel %vm7119_vm10, %v7118_v27, %v7106_v31  ;;  %v7110_v49 = vpop.permute.xlu1 %7109 }
0x392f   : > { %v7122_v47 = vsel %vm7121_vm11, %v7120_v39, %v7110_v49 }
0x3930   : > { %7123 = vst [vmem:[%s341_s13] sm:$0xff] %v7122_v47 }
0x3931 PF: > { %s20_s30 = sadd.s32 1, %s9816_s30  }
0x3932   : > { %p17_p4 = scmp.ge.s32.totalorder %s20_s30, 4  }
0x3934   :  { %19 = sbr.rel (!%p17_p4) target bundleno = 1 (0x1), region = 97 }

</bundles_post_ra>
